<compile_context>
chip_gen: v7x
topology: tpu7x:2x2x1
jax: 0.10.0
libtpu: 0.0.40
codegen_flags: <defaults>
</compile_context>

<pallas_src>
import functools

import jax
import jax.numpy as jnp
from jax.experimental import pallas as pl
from jax.experimental.pallas import tpu as pltpu


BT = 8  # batch tile; batch is zero-padded to a multiple of 8 in the wrapper


def conv2d_size_out(size, kernel_size, stride):
    return (size - (kernel_size - 1) - 1) // stride + 1


# ----------------------------- fused kernel ---------------------------------

def _dqn_kernel(x_ref, w1_ref, b1_ref, w2_ref, b2_ref, w3_ref, b3_ref,
                hw1_ref, hb1_ref, hw2_ref, hb2_ref, q_ref, *, spatial):
    """conv1/2/3 (3x3, stride 2) + ReLU + dueling head for one batch tile.

    x_ref   : [H0, W0, BT, C0] f32     (spatial dims on leading axes)
    wK_ref  : [9*IC, OC]       bf16    (K order = (kh, kw, ic))
    bK_ref  : [1, OC]          f32
    hw1_ref : [feat_dim, 512]  bf16    (rows permuted to kernel feature order)
    hb1_ref : [1, 512]         f32
    hw2_ref : [512, 1+A]       bf16    (block structured: v2 | a2)
    hb2_ref : [1, 1+A]         f32
    q_ref   : [BT, A]          f32
    """
    (_, _), (H1, W1), (H2, W2), (H3, W3) = spatial

    def conv_layer(x, w_ref, b_ref, OH, OW):
        # x: [H, W, BT, IC] f32 value.  3x3 / stride-2 / VALID conv + ReLU.
        H, W, _, IC = x.shape
        # Pad spatial dims to even so the parity split below is a pure
        # leading-dim reshape (padded rows/cols are never read).
        if H % 2:
            x = jnp.concatenate(
                [x, jnp.zeros((1, W, BT, IC), x.dtype)], axis=0)
            H += 1
        if W % 2:
            x = jnp.concatenate(
                [x, jnp.zeros((x.shape[0], 1, BT, IC), x.dtype)], axis=1)
            W += 1
        # Parity split: xp[i, p, j, q, b, c] == x[2*i + p, 2*j + q, b, c].
        xp = x.reshape(H // 2, 2, W // 2, 2, BT, IC)
        taps = []
        for kh in range(3):
            for kw in range(3):
                # input row 2*oh + kh == 2*(oh + kh//2) + (kh % 2) -> unit slice
                t = xp[kh // 2:kh // 2 + OH, kh % 2,
                       kw // 2:kw // 2 + OW, kw % 2]       # [OH, OW, BT, IC]
                taps.append(t.reshape(OH * OW * BT, IC))
        patch = jnp.concatenate(taps, axis=-1)             # [M, 9*IC]
        y = jnp.dot(patch.astype(jnp.bfloat16), w_ref[...],
                    preferred_element_type=jnp.float32)    # [M, OC]
        y = jnp.maximum(y + b_ref[...], 0.0)               # bias/relu in f32
        return y.reshape(OH, OW, BT, w_ref.shape[1])

    x0 = x_ref[...]                                        # [H0, W0, BT, C0]
    y1 = conv_layer(x0, w1_ref, b1_ref, H1, W1)
    y2 = conv_layer(y1, w2_ref, b2_ref, H2, W2)
    y3 = conv_layer(y2, w3_ref, b3_ref, H3, W3)            # [H3, W3, BT, 64]

    # Per-image features [BT, H3*W3*64]; kernel feature order is (s, c).
    S = H3 * W3
    c3 = y3.shape[-1]
    y3 = y3.reshape(S, BT, c3)
    if S == 1:
        feats = y3[0]
    else:
        feats = jnp.concatenate([y3[s] for s in range(S)], axis=-1)

    # Dueling head: h = relu(feats @ [v1 | a1]), o = h @ [[v2, 0], [0, a2]].
    h = jnp.dot(feats.astype(jnp.bfloat16), hw1_ref[...],
                preferred_element_type=jnp.float32) + hb1_ref[...]
    h = jnp.maximum(h, 0.0)
    o = jnp.dot(h.astype(jnp.bfloat16), hw2_ref[...],
                preferred_element_type=jnp.float32) + hb2_ref[...]   # [BT, 1+A]
    v = o[:, 0:1]
    adv = o[:, 1:]
    n_act = adv.shape[-1]
    q = v - jnp.sum(adv, axis=-1, keepdims=True) * (1.0 / n_act) + adv
    q_ref[...] = q.astype(q_ref.dtype)


# ----------------------------- forward wrapper -------------------------------

def dueling_dqn_forward(prep, state_nchw):
    """state_nchw: [B, n_frames, H, W] float32 (PyTorch NCHW convention)."""
    B, C0, H0, W0 = state_nchw.shape
    H1, W1 = conv2d_size_out(H0, 3, 2), conv2d_size_out(W0, 3, 2)
    H2, W2 = conv2d_size_out(H1, 3, 2), conv2d_size_out(W1, 3, 2)
    H3, W3 = conv2d_size_out(H2, 3, 2), conv2d_size_out(W2, 3, 2)
    spatial = ((H0, W0), (H1, W1), (H2, W2), (H3, W3))

    n_actions = prep["h2_w"].shape[1] - 1
    b_pad = ((B + BT - 1) // BT) * BT
    x = state_nchw
    if b_pad != B:
        x = jnp.pad(x, ((0, b_pad - B), (0, 0), (0, 0), (0, 0)))
    # [H0, W0, B_pad, C0]: spatial on leading dims, (batch, channel) tiled.
    x = jnp.transpose(x, (2, 3, 0, 1))

    def _full(a):
        return pl.BlockSpec(a.shape, lambda i, _n=a.ndim: (0,) * _n)

    args = (x, prep["c1_w"], prep["c1_b"], prep["c2_w"], prep["c2_b"],
            prep["c3_w"], prep["c3_b"], prep["h1_w"], prep["h1_b"],
            prep["h2_w"], prep["h2_b"])
    in_specs = [pl.BlockSpec((H0, W0, BT, C0), lambda i: (0, 0, i, 0))]
    in_specs += [_full(a) for a in args[1:]]

    q = pl.pallas_call(
        functools.partial(_dqn_kernel, spatial=spatial),
        out_shape=jax.ShapeDtypeStruct((b_pad, n_actions), jnp.float32),
        grid=(b_pad // BT,),
        in_specs=in_specs,
        out_specs=pl.BlockSpec((BT, n_actions), lambda i: (i, 0)),
        compiler_params=pltpu.CompilerParams(
            dimension_semantics=("parallel",),
            vmem_limit_bytes=32 * 1024 * 1024),
    )(*args)
    return q[:B]


# ----------------------------- params ----------------------------------------

def init_params(key, state_shape, n_actions):
    """Torch-layout float32 parameters (same convention as the nn.Module)."""
    n_frames, w, h = state_shape
    cw, ch = w, h
    for _ in range(3):
        cw, ch = conv2d_size_out(cw, 3, 2), conv2d_size_out(ch, 3, 2)
    feat_dim = 64 * ch * cw

    def nrm(k, shape, scale=0.05):
        return scale * jax.random.normal(k, shape, dtype=jnp.float32)

    ks = jax.random.split(key, 14)
    return {
        "conv1_w": nrm(ks[0], (16, n_frames, 3, 3)),
        "conv1_b": nrm(ks[1], (1, 16)),
        "conv2_w": nrm(ks[2], (32, 16, 3, 3)),
        "conv2_b": nrm(ks[3], (1, 32)),
        "conv3_w": nrm(ks[4], (64, 32, 3, 3)),
        "conv3_b": nrm(ks[5], (1, 64)),
        "v1_w": nrm(ks[6], (feat_dim, 256)),
        "v1_b": nrm(ks[7], (1, 256)),
        "v2_w": nrm(ks[8], (256, 1)),
        "v2_b": nrm(ks[9], (1, 1)),
        "a1_w": nrm(ks[10], (feat_dim, 256)),
        "a1_b": nrm(ks[11], (1, 256)),
        "a2_w": nrm(ks[12], (256, n_actions)),
        "a2_b": nrm(ks[13], (1, n_actions)),
    }


def prepare_params(p, state_shape):
    """One-time repack of torch-layout params into kernel-ready layouts."""
    # TODO(synk): state_shape is documented as (n_frames, w, h) in the torch
    # module; like the reference module, square frames are assumed here.
    _, w, h = state_shape
    cw, ch = w, h
    for _ in range(3):
        cw, ch = conv2d_size_out(cw, 3, 2), conv2d_size_out(ch, 3, 2)
    S = ch * cw          # conv-3 spatial positions
    C3 = 64

    def conv_w(wt):      # [OC, IC, 3, 3] -> [9*IC, OC] bf16, K order (kh,kw,ic)
        oc, ic = wt.shape[0], wt.shape[1]
        return (jnp.transpose(wt, (2, 3, 1, 0))
                .reshape(9 * ic, oc).astype(jnp.bfloat16))

    def conv_b(bt):
        return bt.reshape(1, -1).astype(jnp.float32)

    def perm_rows(wt):   # torch feature row c*S + s  ->  kernel row s*C3 + c
        f, n = wt.shape
        return wt.reshape(C3, S, n).transpose(1, 0, 2).reshape(f, n)

    n_actions = p["a2_w"].shape[1]
    h2_w = jnp.zeros((512, 1 + n_actions), jnp.float32)
    h2_w = h2_w.at[0:256, 0:1].set(p["v2_w"])
    h2_w = h2_w.at[256:512, 1:].set(p["a2_w"])

    return {
        "c1_w": conv_w(p["conv1_w"]), "c1_b": conv_b(p["conv1_b"]),
        "c2_w": conv_w(p["conv2_w"]), "c2_b": conv_b(p["conv2_b"]),
        "c3_w": conv_w(p["conv3_w"]), "c3_b": conv_b(p["conv3_b"]),
        # fused first head layer: [feat_dim, 512] = [v1 | a1], rows permuted.
        "h1_w": jnp.concatenate([perm_rows(p["v1_w"]), perm_rows(p["a1_w"])],
                                axis=1).astype(jnp.bfloat16),
        "h1_b": jnp.concatenate([p["v1_b"], p["a1_b"]],
                                axis=1).astype(jnp.float32),
        # fused second head layer: block-structured [512, 1 + A].
        "h2_w": h2_w.astype(jnp.bfloat16),
        "h2_b": jnp.concatenate([p["v2_b"], p["a2_b"]],
                                axis=1).astype(jnp.float32),
    }

# TODO(synk): get_qvalues / sample_actions are host-side numpy utilities
# (epsilon-greedy with np.random) and are intentionally not kernelized.


if __name__ == "__main__":
    key = jax.random.PRNGKey(0)
    k_params, k_state = jax.random.split(key)

    state_shape = (4, 16, 16)   # (n_frames, w, h), square frames
    n_actions = 6
    batch = 2

    params = init_params(k_params, state_shape, n_actions)
    prep = prepare_params(params, state_shape)
    state_t = jax.random.normal(k_state, (batch,) + state_shape,
                                dtype=jnp.float32)

    qvalues = jax.jit(dueling_dqn_forward)(prep, state_t)
    qvalues = jax.block_until_ready(qvalues)

    assert qvalues.ndim == 2
    assert qvalues.shape == (batch, n_actions)
    assert qvalues.dtype == jnp.float32
    assert bool(jnp.all(jnp.isfinite(qvalues)))

    print("KERNEL_OK")
</pallas_src>

<mosaic_0001>
module attributes {stable_mosaic.version = 11 : i64} {
  func.func @_dqn_kernel(%arg0: i32, %arg1: memref<16x16x8x4xf32, #tpu.memory_space<vmem>>, %arg2: memref<36x16xbf16, #tpu.memory_space<vmem>>, %arg3: memref<1x16xf32, #tpu.memory_space<vmem>>, %arg4: memref<144x32xbf16, #tpu.memory_space<vmem>>, %arg5: memref<1x32xf32, #tpu.memory_space<vmem>>, %arg6: memref<288x64xbf16, #tpu.memory_space<vmem>>, %arg7: memref<1x64xf32, #tpu.memory_space<vmem>>, %arg8: memref<64x512xbf16, #tpu.memory_space<vmem>>, %arg9: memref<1x512xf32, #tpu.memory_space<vmem>>, %arg10: memref<512x7xbf16, #tpu.memory_space<vmem>>, %arg11: memref<1x7xf32, #tpu.memory_space<vmem>>, %arg12: memref<8x6xf32, #tpu.memory_space<vmem>>) attributes {dimension_semantics = [#tpu.dimension_semantics<parallel>], iteration_bounds = array<i64: 1>, scalar_prefetch = 0 : i64, scratch_operands = 0 : i64, tpu.core_type = #tpu.core_type<tc>, window_params = [{transform_indices = @transform_0, window_bounds = array<i64: 16, 16, 8, 4>}, {pipeline_mode = #tpu.pipeline_mode<synchronous>, transform_indices = @transform_1, window_bounds = array<i64: 36, 16>}, {pipeline_mode = #tpu.pipeline_mode<synchronous>, transform_indices = @transform_2, window_bounds = array<i64: 1, 16>}, {pipeline_mode = #tpu.pipeline_mode<synchronous>, transform_indices = @transform_3, window_bounds = array<i64: 144, 32>}, {pipeline_mode = #tpu.pipeline_mode<synchronous>, transform_indices = @transform_4, window_bounds = array<i64: 1, 32>}, {pipeline_mode = #tpu.pipeline_mode<synchronous>, transform_indices = @transform_5, window_bounds = array<i64: 288, 64>}, {pipeline_mode = #tpu.pipeline_mode<synchronous>, transform_indices = @transform_6, window_bounds = array<i64: 1, 64>}, {pipeline_mode = #tpu.pipeline_mode<synchronous>, transform_indices = @transform_7, window_bounds = array<i64: 64, 512>}, {pipeline_mode = #tpu.pipeline_mode<synchronous>, transform_indices = @transform_8, window_bounds = array<i64: 1, 512>}, {pipeline_mode = #tpu.pipeline_mode<synchronous>, transform_indices = @transform_9, window_bounds = array<i64: 512, 7>}, {pipeline_mode = #tpu.pipeline_mode<synchronous>, transform_indices = @transform_10, window_bounds = array<i64: 1, 7>}, {transform_indices = @transform_11, window_bounds = array<i64: 8, 6>}]} {
    %c0 = arith.constant 0 : index
    %c0_0 = arith.constant 0 : index
    %c0_1 = arith.constant 0 : index
    %c0_2 = arith.constant 0 : index
    %0 = vector.load %arg1[%c0, %c0_0, %c0_1, %c0_2] : memref<16x16x8x4xf32, #tpu.memory_space<vmem>>, vector<16x16x8x4xf32>
    %1 = vector.shape_cast %0 : vector<16x16x8x4xf32> to vector<8x2x8x2x8x4xf32>
    %2 = vector.extract_strided_slice %1 {offsets = [0, 0, 0, 0, 0, 0], sizes = [7, 1, 7, 1, 8, 4], strides = [1, 1, 1, 1, 1, 1]} : vector<8x2x8x2x8x4xf32> to vector<7x1x7x1x8x4xf32>
    %3 = vector.shape_cast %2 : vector<7x1x7x1x8x4xf32> to vector<7x7x8x4xf32>
    %4 = vector.shape_cast %3 : vector<7x7x8x4xf32> to vector<392x4xf32>
    %5 = vector.extract_strided_slice %1 {offsets = [0, 0, 0, 1, 0, 0], sizes = [7, 1, 7, 1, 8, 4], strides = [1, 1, 1, 1, 1, 1]} : vector<8x2x8x2x8x4xf32> to vector<7x1x7x1x8x4xf32>
    %6 = vector.shape_cast %5 : vector<7x1x7x1x8x4xf32> to vector<7x7x8x4xf32>
    %7 = vector.shape_cast %6 : vector<7x7x8x4xf32> to vector<392x4xf32>
    %8 = vector.extract_strided_slice %1 {offsets = [0, 0, 1, 0, 0, 0], sizes = [7, 1, 7, 1, 8, 4], strides = [1, 1, 1, 1, 1, 1]} : vector<8x2x8x2x8x4xf32> to vector<7x1x7x1x8x4xf32>
    %9 = vector.shape_cast %8 : vector<7x1x7x1x8x4xf32> to vector<7x7x8x4xf32>
    %10 = vector.shape_cast %9 : vector<7x7x8x4xf32> to vector<392x4xf32>
    %11 = vector.extract_strided_slice %1 {offsets = [0, 1, 0, 0, 0, 0], sizes = [7, 1, 7, 1, 8, 4], strides = [1, 1, 1, 1, 1, 1]} : vector<8x2x8x2x8x4xf32> to vector<7x1x7x1x8x4xf32>
    %12 = vector.shape_cast %11 : vector<7x1x7x1x8x4xf32> to vector<7x7x8x4xf32>
    %13 = vector.shape_cast %12 : vector<7x7x8x4xf32> to vector<392x4xf32>
    %14 = vector.extract_strided_slice %1 {offsets = [0, 1, 0, 1, 0, 0], sizes = [7, 1, 7, 1, 8, 4], strides = [1, 1, 1, 1, 1, 1]} : vector<8x2x8x2x8x4xf32> to vector<7x1x7x1x8x4xf32>
    %15 = vector.shape_cast %14 : vector<7x1x7x1x8x4xf32> to vector<7x7x8x4xf32>
    %16 = vector.shape_cast %15 : vector<7x7x8x4xf32> to vector<392x4xf32>
    %17 = vector.extract_strided_slice %1 {offsets = [0, 1, 1, 0, 0, 0], sizes = [7, 1, 7, 1, 8, 4], strides = [1, 1, 1, 1, 1, 1]} : vector<8x2x8x2x8x4xf32> to vector<7x1x7x1x8x4xf32>
    %18 = vector.shape_cast %17 : vector<7x1x7x1x8x4xf32> to vector<7x7x8x4xf32>
    %19 = vector.shape_cast %18 : vector<7x7x8x4xf32> to vector<392x4xf32>
    %20 = vector.extract_strided_slice %1 {offsets = [1, 0, 0, 0, 0, 0], sizes = [7, 1, 7, 1, 8, 4], strides = [1, 1, 1, 1, 1, 1]} : vector<8x2x8x2x8x4xf32> to vector<7x1x7x1x8x4xf32>
    %21 = vector.shape_cast %20 : vector<7x1x7x1x8x4xf32> to vector<7x7x8x4xf32>
    %22 = vector.shape_cast %21 : vector<7x7x8x4xf32> to vector<392x4xf32>
    %23 = vector.extract_strided_slice %1 {offsets = [1, 0, 0, 1, 0, 0], sizes = [7, 1, 7, 1, 8, 4], strides = [1, 1, 1, 1, 1, 1]} : vector<8x2x8x2x8x4xf32> to vector<7x1x7x1x8x4xf32>
    %24 = vector.shape_cast %23 : vector<7x1x7x1x8x4xf32> to vector<7x7x8x4xf32>
    %25 = vector.shape_cast %24 : vector<7x7x8x4xf32> to vector<392x4xf32>
    %26 = vector.extract_strided_slice %1 {offsets = [1, 0, 1, 0, 0, 0], sizes = [7, 1, 7, 1, 8, 4], strides = [1, 1, 1, 1, 1, 1]} : vector<8x2x8x2x8x4xf32> to vector<7x1x7x1x8x4xf32>
    %27 = vector.shape_cast %26 : vector<7x1x7x1x8x4xf32> to vector<7x7x8x4xf32>
    %28 = vector.shape_cast %27 : vector<7x7x8x4xf32> to vector<392x4xf32>
    %29 = tpu.concatenate %4, %7, %10, %13, %16, %19, %22, %25, %28 in 1 : vector<392x4xf32>, vector<392x4xf32>, vector<392x4xf32>, vector<392x4xf32>, vector<392x4xf32>, vector<392x4xf32>, vector<392x4xf32>, vector<392x4xf32>, vector<392x4xf32> -> vector<392x36xf32>
    %30 = arith.truncf %29 : vector<392x36xf32> to vector<392x36xbf16>
    %c0_3 = arith.constant 0 : index
    %c0_4 = arith.constant 0 : index
    %31 = vector.load %arg2[%c0_3, %c0_4] : memref<36x16xbf16, #tpu.memory_space<vmem>>, vector<36x16xbf16>
    %cst = arith.constant dense<0.000000e+00> : vector<392x16xf32>
    %32 = tpu.matmul %30, %31, %cst {dimension_numbers = #tpu.dot_dimension_numbers<[1], [0], [0], [1], [0, 0, 1, 1], [], []>} : vector<392x36xbf16>, vector<36x16xbf16>, vector<392x16xf32> -> vector<392x16xf32>
    %c0_5 = arith.constant 0 : index
    %c0_6 = arith.constant 0 : index
    %33 = vector.load %arg3[%c0_5, %c0_6] : memref<1x16xf32, #tpu.memory_space<vmem>>, vector<1x16xf32>
    %34 = vector.broadcast %33 : vector<1x16xf32> to vector<392x16xf32>
    %35 = arith.addf %32, %34 : vector<392x16xf32>
    %cst_7 = arith.constant 0.000000e+00 : f32
    %36 = vector.broadcast %cst_7 : f32 to vector<392x16xf32>
    %37 = arith.maximumf %35, %36 : vector<392x16xf32>
    %38 = vector.shape_cast %37 : vector<392x16xf32> to vector<7x7x8x16xf32>
    %cst_8 = arith.constant 0.000000e+00 : f32
    %39 = vector.broadcast %cst_8 : f32 to vector<1x7x8x16xf32>
    %40 = tpu.concatenate %38, %39 in 0 : vector<7x7x8x16xf32>, vector<1x7x8x16xf32> -> vector<8x7x8x16xf32>
    %cst_9 = arith.constant 0.000000e+00 : f32
    %41 = vector.broadcast %cst_9 : f32 to vector<8x1x8x16xf32>
    %42 = tpu.concatenate %40, %41 in 1 : vector<8x7x8x16xf32>, vector<8x1x8x16xf32> -> vector<8x8x8x16xf32>
    %43 = vector.shape_cast %42 : vector<8x8x8x16xf32> to vector<4x2x4x2x8x16xf32>
    %44 = vector.extract_strided_slice %43 {offsets = [0, 0, 0, 0, 0, 0], sizes = [3, 1, 3, 1, 8, 16], strides = [1, 1, 1, 1, 1, 1]} : vector<4x2x4x2x8x16xf32> to vector<3x1x3x1x8x16xf32>
    %45 = vector.shape_cast %44 : vector<3x1x3x1x8x16xf32> to vector<3x3x8x16xf32>
    %46 = vector.shape_cast %45 : vector<3x3x8x16xf32> to vector<72x16xf32>
    %47 = vector.extract_strided_slice %43 {offsets = [0, 0, 0, 1, 0, 0], sizes = [3, 1, 3, 1, 8, 16], strides = [1, 1, 1, 1, 1, 1]} : vector<4x2x4x2x8x16xf32> to vector<3x1x3x1x8x16xf32>
    %48 = vector.shape_cast %47 : vector<3x1x3x1x8x16xf32> to vector<3x3x8x16xf32>
    %49 = vector.shape_cast %48 : vector<3x3x8x16xf32> to vector<72x16xf32>
    %50 = vector.extract_strided_slice %43 {offsets = [0, 0, 1, 0, 0, 0], sizes = [3, 1, 3, 1, 8, 16], strides = [1, 1, 1, 1, 1, 1]} : vector<4x2x4x2x8x16xf32> to vector<3x1x3x1x8x16xf32>
    %51 = vector.shape_cast %50 : vector<3x1x3x1x8x16xf32> to vector<3x3x8x16xf32>
    %52 = vector.shape_cast %51 : vector<3x3x8x16xf32> to vector<72x16xf32>
    %53 = vector.extract_strided_slice %43 {offsets = [0, 1, 0, 0, 0, 0], sizes = [3, 1, 3, 1, 8, 16], strides = [1, 1, 1, 1, 1, 1]} : vector<4x2x4x2x8x16xf32> to vector<3x1x3x1x8x16xf32>
    %54 = vector.shape_cast %53 : vector<3x1x3x1x8x16xf32> to vector<3x3x8x16xf32>
    %55 = vector.shape_cast %54 : vector<3x3x8x16xf32> to vector<72x16xf32>
    %56 = vector.extract_strided_slice %43 {offsets = [0, 1, 0, 1, 0, 0], sizes = [3, 1, 3, 1, 8, 16], strides = [1, 1, 1, 1, 1, 1]} : vector<4x2x4x2x8x16xf32> to vector<3x1x3x1x8x16xf32>
    %57 = vector.shape_cast %56 : vector<3x1x3x1x8x16xf32> to vector<3x3x8x16xf32>
    %58 = vector.shape_cast %57 : vector<3x3x8x16xf32> to vector<72x16xf32>
    %59 = vector.extract_strided_slice %43 {offsets = [0, 1, 1, 0, 0, 0], sizes = [3, 1, 3, 1, 8, 16], strides = [1, 1, 1, 1, 1, 1]} : vector<4x2x4x2x8x16xf32> to vector<3x1x3x1x8x16xf32>
    %60 = vector.shape_cast %59 : vector<3x1x3x1x8x16xf32> to vector<3x3x8x16xf32>
    %61 = vector.shape_cast %60 : vector<3x3x8x16xf32> to vector<72x16xf32>
    %62 = vector.extract_strided_slice %43 {offsets = [1, 0, 0, 0, 0, 0], sizes = [3, 1, 3, 1, 8, 16], strides = [1, 1, 1, 1, 1, 1]} : vector<4x2x4x2x8x16xf32> to vector<3x1x3x1x8x16xf32>
    %63 = vector.shape_cast %62 : vector<3x1x3x1x8x16xf32> to vector<3x3x8x16xf32>
    %64 = vector.shape_cast %63 : vector<3x3x8x16xf32> to vector<72x16xf32>
    %65 = vector.extract_strided_slice %43 {offsets = [1, 0, 0, 1, 0, 0], sizes = [3, 1, 3, 1, 8, 16], strides = [1, 1, 1, 1, 1, 1]} : vector<4x2x4x2x8x16xf32> to vector<3x1x3x1x8x16xf32>
    %66 = vector.shape_cast %65 : vector<3x1x3x1x8x16xf32> to vector<3x3x8x16xf32>
    %67 = vector.shape_cast %66 : vector<3x3x8x16xf32> to vector<72x16xf32>
    %68 = vector.extract_strided_slice %43 {offsets = [1, 0, 1, 0, 0, 0], sizes = [3, 1, 3, 1, 8, 16], strides = [1, 1, 1, 1, 1, 1]} : vector<4x2x4x2x8x16xf32> to vector<3x1x3x1x8x16xf32>
    %69 = vector.shape_cast %68 : vector<3x1x3x1x8x16xf32> to vector<3x3x8x16xf32>
    %70 = vector.shape_cast %69 : vector<3x3x8x16xf32> to vector<72x16xf32>
    %71 = tpu.concatenate %46, %49, %52, %55, %58, %61, %64, %67, %70 in 1 : vector<72x16xf32>, vector<72x16xf32>, vector<72x16xf32>, vector<72x16xf32>, vector<72x16xf32>, vector<72x16xf32>, vector<72x16xf32>, vector<72x16xf32>, vector<72x16xf32> -> vector<72x144xf32>
    %72 = arith.truncf %71 : vector<72x144xf32> to vector<72x144xbf16>
    %c0_10 = arith.constant 0 : index
    %c0_11 = arith.constant 0 : index
    %73 = vector.load %arg4[%c0_10, %c0_11] : memref<144x32xbf16, #tpu.memory_space<vmem>>, vector<144x32xbf16>
    %cst_12 = arith.constant dense<0.000000e+00> : vector<72x32xf32>
    %74 = tpu.matmul %72, %73, %cst_12 {dimension_numbers = #tpu.dot_dimension_numbers<[1], [0], [0], [1], [0, 0, 1, 1], [], []>} : vector<72x144xbf16>, vector<144x32xbf16>, vector<72x32xf32> -> vector<72x32xf32>
    %c0_13 = arith.constant 0 : index
    %c0_14 = arith.constant 0 : index
    %75 = vector.load %arg5[%c0_13, %c0_14] : memref<1x32xf32, #tpu.memory_space<vmem>>, vector<1x32xf32>
    %76 = vector.broadcast %75 : vector<1x32xf32> to vector<72x32xf32>
    %77 = arith.addf %74, %76 : vector<72x32xf32>
    %cst_15 = arith.constant 0.000000e+00 : f32
    %78 = vector.broadcast %cst_15 : f32 to vector<72x32xf32>
    %79 = arith.maximumf %77, %78 : vector<72x32xf32>
    %80 = vector.shape_cast %79 : vector<72x32xf32> to vector<3x3x8x32xf32>
    %cst_16 = arith.constant 0.000000e+00 : f32
    %81 = vector.broadcast %cst_16 : f32 to vector<1x3x8x32xf32>
    %82 = tpu.concatenate %80, %81 in 0 : vector<3x3x8x32xf32>, vector<1x3x8x32xf32> -> vector<4x3x8x32xf32>
    %cst_17 = arith.constant 0.000000e+00 : f32
    %83 = vector.broadcast %cst_17 : f32 to vector<4x1x8x32xf32>
    %84 = tpu.concatenate %82, %83 in 1 : vector<4x3x8x32xf32>, vector<4x1x8x32xf32> -> vector<4x4x8x32xf32>
    %85 = vector.shape_cast %84 : vector<4x4x8x32xf32> to vector<2x2x2x2x8x32xf32>
    %86 = vector.extract_strided_slice %85 {offsets = [0, 0, 0, 0, 0, 0], sizes = [1, 1, 1, 1, 8, 32], strides = [1, 1, 1, 1, 1, 1]} : vector<2x2x2x2x8x32xf32> to vector<1x1x1x1x8x32xf32>
    %87 = vector.shape_cast %86 : vector<1x1x1x1x8x32xf32> to vector<1x1x8x32xf32>
    %88 = vector.shape_cast %87 : vector<1x1x8x32xf32> to vector<8x32xf32>
    %89 = vector.extract_strided_slice %85 {offsets = [0, 0, 0, 1, 0, 0], sizes = [1, 1, 1, 1, 8, 32], strides = [1, 1, 1, 1, 1, 1]} : vector<2x2x2x2x8x32xf32> to vector<1x1x1x1x8x32xf32>
    %90 = vector.shape_cast %89 : vector<1x1x1x1x8x32xf32> to vector<1x1x8x32xf32>
    %91 = vector.shape_cast %90 : vector<1x1x8x32xf32> to vector<8x32xf32>
    %92 = vector.extract_strided_slice %85 {offsets = [0, 0, 1, 0, 0, 0], sizes = [1, 1, 1, 1, 8, 32], strides = [1, 1, 1, 1, 1, 1]} : vector<2x2x2x2x8x32xf32> to vector<1x1x1x1x8x32xf32>
    %93 = vector.shape_cast %92 : vector<1x1x1x1x8x32xf32> to vector<1x1x8x32xf32>
    %94 = vector.shape_cast %93 : vector<1x1x8x32xf32> to vector<8x32xf32>
    %95 = vector.extract_strided_slice %85 {offsets = [0, 1, 0, 0, 0, 0], sizes = [1, 1, 1, 1, 8, 32], strides = [1, 1, 1, 1, 1, 1]} : vector<2x2x2x2x8x32xf32> to vector<1x1x1x1x8x32xf32>
    %96 = vector.shape_cast %95 : vector<1x1x1x1x8x32xf32> to vector<1x1x8x32xf32>
    %97 = vector.shape_cast %96 : vector<1x1x8x32xf32> to vector<8x32xf32>
    %98 = vector.extract_strided_slice %85 {offsets = [0, 1, 0, 1, 0, 0], sizes = [1, 1, 1, 1, 8, 32], strides = [1, 1, 1, 1, 1, 1]} : vector<2x2x2x2x8x32xf32> to vector<1x1x1x1x8x32xf32>
    %99 = vector.shape_cast %98 : vector<1x1x1x1x8x32xf32> to vector<1x1x8x32xf32>
    %100 = vector.shape_cast %99 : vector<1x1x8x32xf32> to vector<8x32xf32>
    %101 = vector.extract_strided_slice %85 {offsets = [0, 1, 1, 0, 0, 0], sizes = [1, 1, 1, 1, 8, 32], strides = [1, 1, 1, 1, 1, 1]} : vector<2x2x2x2x8x32xf32> to vector<1x1x1x1x8x32xf32>
    %102 = vector.shape_cast %101 : vector<1x1x1x1x8x32xf32> to vector<1x1x8x32xf32>
    %103 = vector.shape_cast %102 : vector<1x1x8x32xf32> to vector<8x32xf32>
    %104 = vector.extract_strided_slice %85 {offsets = [1, 0, 0, 0, 0, 0], sizes = [1, 1, 1, 1, 8, 32], strides = [1, 1, 1, 1, 1, 1]} : vector<2x2x2x2x8x32xf32> to vector<1x1x1x1x8x32xf32>
    %105 = vector.shape_cast %104 : vector<1x1x1x1x8x32xf32> to vector<1x1x8x32xf32>
    %106 = vector.shape_cast %105 : vector<1x1x8x32xf32> to vector<8x32xf32>
    %107 = vector.extract_strided_slice %85 {offsets = [1, 0, 0, 1, 0, 0], sizes = [1, 1, 1, 1, 8, 32], strides = [1, 1, 1, 1, 1, 1]} : vector<2x2x2x2x8x32xf32> to vector<1x1x1x1x8x32xf32>
    %108 = vector.shape_cast %107 : vector<1x1x1x1x8x32xf32> to vector<1x1x8x32xf32>
    %109 = vector.shape_cast %108 : vector<1x1x8x32xf32> to vector<8x32xf32>
    %110 = vector.extract_strided_slice %85 {offsets = [1, 0, 1, 0, 0, 0], sizes = [1, 1, 1, 1, 8, 32], strides = [1, 1, 1, 1, 1, 1]} : vector<2x2x2x2x8x32xf32> to vector<1x1x1x1x8x32xf32>
    %111 = vector.shape_cast %110 : vector<1x1x1x1x8x32xf32> to vector<1x1x8x32xf32>
    %112 = vector.shape_cast %111 : vector<1x1x8x32xf32> to vector<8x32xf32>
    %113 = tpu.concatenate %88, %91, %94, %97, %100, %103, %106, %109, %112 in 1 : vector<8x32xf32>, vector<8x32xf32>, vector<8x32xf32>, vector<8x32xf32>, vector<8x32xf32>, vector<8x32xf32>, vector<8x32xf32>, vector<8x32xf32>, vector<8x32xf32> -> vector<8x288xf32>
    %114 = arith.truncf %113 : vector<8x288xf32> to vector<8x288xbf16>
    %c0_18 = arith.constant 0 : index
    %c0_19 = arith.constant 0 : index
    %115 = vector.load %arg6[%c0_18, %c0_19] : memref<288x64xbf16, #tpu.memory_space<vmem>>, vector<288x64xbf16>
    %cst_20 = arith.constant dense<0.000000e+00> : vector<8x64xf32>
    %116 = tpu.matmul %114, %115, %cst_20 {dimension_numbers = #tpu.dot_dimension_numbers<[1], [0], [0], [1], [0, 0, 1, 1], [], []>} : vector<8x288xbf16>, vector<288x64xbf16>, vector<8x64xf32> -> vector<8x64xf32>
    %c0_21 = arith.constant 0 : index
    %c0_22 = arith.constant 0 : index
    %117 = vector.load %arg7[%c0_21, %c0_22] : memref<1x64xf32, #tpu.memory_space<vmem>>, vector<1x64xf32>
    %118 = vector.broadcast %117 : vector<1x64xf32> to vector<8x64xf32>
    %119 = arith.addf %116, %118 : vector<8x64xf32>
    %cst_23 = arith.constant 0.000000e+00 : f32
    %120 = vector.broadcast %cst_23 : f32 to vector<8x64xf32>
    %121 = arith.maximumf %119, %120 : vector<8x64xf32>
    %122 = vector.shape_cast %121 : vector<8x64xf32> to vector<1x1x8x64xf32>
    %123 = vector.shape_cast %122 : vector<1x1x8x64xf32> to vector<1x8x64xf32>
    %124 = vector.shape_cast %123 : vector<1x8x64xf32> to vector<8x64xf32>
    %125 = arith.truncf %124 : vector<8x64xf32> to vector<8x64xbf16>
    %c0_24 = arith.constant 0 : index
    %c0_25 = arith.constant 0 : index
    %126 = vector.load %arg8[%c0_24, %c0_25] : memref<64x512xbf16, #tpu.memory_space<vmem>>, vector<64x512xbf16>
    %cst_26 = arith.constant dense<0.000000e+00> : vector<8x512xf32>
    %127 = tpu.matmul %125, %126, %cst_26 {dimension_numbers = #tpu.dot_dimension_numbers<[1], [0], [0], [1], [0, 0, 1, 1], [], []>} : vector<8x64xbf16>, vector<64x512xbf16>, vector<8x512xf32> -> vector<8x512xf32>
    %c0_27 = arith.constant 0 : index
    %c0_28 = arith.constant 0 : index
    %128 = vector.load %arg9[%c0_27, %c0_28] : memref<1x512xf32, #tpu.memory_space<vmem>>, vector<1x512xf32>
    %129 = vector.broadcast %128 : vector<1x512xf32> to vector<8x512xf32>
    %130 = arith.addf %127, %129 : vector<8x512xf32>
    %cst_29 = arith.constant 0.000000e+00 : f32
    %131 = vector.broadcast %cst_29 : f32 to vector<8x512xf32>
    %132 = arith.maximumf %130, %131 : vector<8x512xf32>
    %133 = arith.truncf %132 : vector<8x512xf32> to vector<8x512xbf16>
    %c0_30 = arith.constant 0 : index
    %c0_31 = arith.constant 0 : index
    %134 = vector.load %arg10[%c0_30, %c0_31] : memref<512x7xbf16, #tpu.memory_space<vmem>>, vector<512x7xbf16>
    %cst_32 = arith.constant dense<0.000000e+00> : vector<8x7xf32>
    %135 = tpu.matmul %133, %134, %cst_32 {dimension_numbers = #tpu.dot_dimension_numbers<[1], [0], [0], [1], [0, 0, 1, 1], [], []>} : vector<8x512xbf16>, vector<512x7xbf16>, vector<8x7xf32> -> vector<8x7xf32>
    %c0_33 = arith.constant 0 : index
    %c0_34 = arith.constant 0 : index
    %136 = vector.load %arg11[%c0_33, %c0_34] : memref<1x7xf32, #tpu.memory_space<vmem>>, vector<1x7xf32>
    %137 = vector.broadcast %136 : vector<1x7xf32> to vector<8x7xf32>
    %138 = arith.addf %135, %137 : vector<8x7xf32>
    %139 = vector.extract_strided_slice %138 {offsets = [0, 0], sizes = [8, 1], strides = [1, 1]} : vector<8x7xf32> to vector<8x1xf32>
    %140 = vector.extract_strided_slice %138 {offsets = [0, 1], sizes = [8, 6], strides = [1, 1]} : vector<8x7xf32> to vector<8x6xf32>
    %cst_35 = arith.constant dense<0.000000e+00> : vector<8xf32>
    %141 = vector.multi_reduction <add>, %140, %cst_35 [1] : vector<8x6xf32> to vector<8xf32>
    %142 = vector.shape_cast %141 : vector<8xf32> to vector<8x1xf32>
    %cst_36 = arith.constant 0.166666672 : f32
    %143 = vector.broadcast %cst_36 : f32 to vector<8x1xf32>
    %144 = arith.mulf %142, %143 : vector<8x1xf32>
    %145 = arith.subf %139, %144 : vector<8x1xf32>
    %146 = vector.broadcast %145 : vector<8x1xf32> to vector<8x6xf32>
    %147 = arith.addf %146, %140 : vector<8x6xf32>
    %c0_37 = arith.constant 0 : index
    %c0_38 = arith.constant 0 : index
    %148 = vector.load %arg12[%c0_37, %c0_38] : memref<8x6xf32, #tpu.memory_space<vmem>>, vector<8x6xf32>
    tpu.vector_store %arg12[%c0_37, %c0_38], %147 {strides = array<i32>} : memref<8x6xf32, #tpu.memory_space<vmem>>, vector<8x6xf32>,
    return
  }
  func.func @transform_0(%arg0: i32) -> (i32, i32, i32, i32) {
    %c0_i32 = arith.constant 0 : i32
    %c0_i32_0 = arith.constant 0 : i32
    %c0_i32_1 = arith.constant 0 : i32
    %c0_i32_2 = arith.constant 0 : i32
    return %c0_i32, %c0_i32_0, %arg0, %c0_i32_1 : i32, i32, i32, i32
  }
  func.func @transform_1(%arg0: i32) -> (i32, i32) {
    %c0_i32 = arith.constant 0 : i32
    %c0_i32_0 = arith.constant 0 : i32
    %c0_i32_1 = arith.constant 0 : i32
    return %c0_i32, %c0_i32_0 : i32, i32
  }
  func.func @transform_2(%arg0: i32) -> (i32, i32) {
    %c0_i32 = arith.constant 0 : i32
    %c0_i32_0 = arith.constant 0 : i32
    %c0_i32_1 = arith.constant 0 : i32
    return %c0_i32, %c0_i32_0 : i32, i32
  }
  func.func @transform_3(%arg0: i32) -> (i32, i32) {
    %c0_i32 = arith.constant 0 : i32
    %c0_i32_0 = arith.constant 0 : i32
    %c0_i32_1 = arith.constant 0 : i32
    return %c0_i32, %c0_i32_0 : i32, i32
  }
  func.func @transform_4(%arg0: i32) -> (i32, i32) {
    %c0_i32 = arith.constant 0 : i32
    %c0_i32_0 = arith.constant 0 : i32
    %c0_i32_1 = arith.constant 0 : i32
    return %c0_i32, %c0_i32_0 : i32, i32
  }
  func.func @transform_5(%arg0: i32) -> (i32, i32) {
    %c0_i32 = arith.constant 0 : i32
    %c0_i32_0 = arith.constant 0 : i32
    %c0_i32_1 = arith.constant 0 : i32
    return %c0_i32, %c0_i32_0 : i32, i32
  }
  func.func @transform_6(%arg0: i32) -> (i32, i32) {
    %c0_i32 = arith.constant 0 : i32
    %c0_i32_0 = arith.constant 0 : i32
    %c0_i32_1 = arith.constant 0 : i32
    return %c0_i32, %c0_i32_0 : i32, i32
  }
  func.func @transform_7(%arg0: i32) -> (i32, i32) {
    %c0_i32 = arith.constant 0 : i32
    %c0_i32_0 = arith.constant 0 : i32
    %c0_i32_1 = arith.constant 0 : i32
    return %c0_i32, %c0_i32_0 : i32, i32
  }
  func.func @transform_8(%arg0: i32) -> (i32, i32) {
    %c0_i32 = arith.constant 0 : i32
    %c0_i32_0 = arith.constant 0 : i32
    %c0_i32_1 = arith.constant 0 : i32
    return %c0_i32, %c0_i32_0 : i32, i32
  }
  func.func @transform_9(%arg0: i32) -> (i32, i32) {
    %c0_i32 = arith.constant 0 : i32
    %c0_i32_0 = arith.constant 0 : i32
    %c0_i32_1 = arith.constant 0 : i32
    return %c0_i32, %c0_i32_0 : i32, i32
  }
  func.func @transform_10(%arg0: i32) -> (i32, i32) {
    %c0_i32 = arith.constant 0 : i32
    %c0_i32_0 = arith.constant 0 : i32
    %c0_i32_1 = arith.constant 0 : i32
    return %c0_i32, %c0_i32_0 : i32, i32
  }
  func.func @transform_11(%arg0: i32) -> (i32, i32) {
    %c0_i32 = arith.constant 0 : i32
    %c0_i32_0 = arith.constant 0 : i32
    return %arg0, %c0_i32 : i32, i32
  }
}

</mosaic_0001>

<bundles_post_ra>
// kernel: dueling_dqn_forward.1
= control target key start
LH: loop header
LB: loop body
LE: loop exit
PB: predicated region body
PF: predicated region fallthrough
CT: control target
= control target key end

     0   :  { %v5399_v2 = vmov 0.0   ;;  %s5400_s14 = smov 12   ;;  %s5401_s15 = smov 4   ;;  %vm5404_vm0 = vmmov 0   ;;  %vm2192_vm1 = vcmask 1041408   ;;  %vm1664_vm2 = vcmask 31744   ;;  %s7957_s0 = inlined_call_operand.vmem [shape: f32[16,16,8,4], index: 0, kind: input, shape index: {}]   ;;  %s7958_s1 = inlined_call_operand.vmem [shape: bf16[36,16], index: 1, kind: input, shape index: {}]   ;;  %s7959_s2 = inlined_call_operand.vmem [shape: f32[1,16], index: 2, kind: input, shape index: {}]   ;;  %s7960_s3 = inlined_call_operand.vmem [shape: bf16[144,32], index: 3, kind: input, shape index: {}]   ;;  %s7961_s4 = inlined_call_operand.vmem [shape: f32[1,32], index: 4, kind: input, shape index: {}]   ;;  %s7962_s5 = inlined_call_operand.vmem [shape: bf16[288,64], index: 5, kind: input, shape index: {}]   ;;  %s7963_s7 = inlined_call_operand.vmem [shape: bf16[64,512], index: 7, kind: input, shape index: {}]   ;;  %s7964_s9 = inlined_call_operand.vmem [shape: bf16[512,7], index: 9, kind: input, shape index: {}]   ;;  %s7965_s6 = inlined_call_operand.vmem [shape: f32[1,64], index: 6, kind: input, shape index: {}]   ;;  %s7966_s8 = inlined_call_operand.vmem [shape: f32[1,512], index: 8, kind: input, shape index: {}]   ;;  %s7967_s10 = inlined_call_operand.vmem [shape: f32[1,7], index: 10, kind: input, shape index: {}]   ;;  %s7968_s11 = inlined_call_operand.vmem [shape: f32[8,6], index: 11, kind: output, shape index: {}]  }
   0x1   :  { %v56_v0 = vld [vmem:[%s7957_s0 + $0x90] sm:$0xff]  ;;  %v54_v1 = vld [vmem:[%s7957_s0 + $0x80] sm:$0xff]  ;;  %4026 = vmatprep.subr.bf16.mxu0 %v5399_v2  ;;  %v40_v4 = vld [vmem:[%s7957_s0 + $0x8] sm:$0xff]  ;;  %s5402_s22 = smov 16   ;;  %s5403_s23 = smov 8   ;;  %4032 = vmatprep.mubr.msk.bf16.mxu0 %vm5404_vm0, %v5399_v2  ;;  %vm1714_vm3 = vcmask 64512  }
   0x2   :  { %v4167_v3 = vpack.i.bf16 %v56_v0, %v54_v1  ;;  %v42_v5 = vld [vmem:[%s7957_s0 + $0x18] sm:$0xff]  ;;  %v55_v6 = vld [vmem:[%s7957_s0 + $0x88] sm:$0xff]  ;;  %v5498_v9 = vld [vmem:[%s7957_s0 + $0x10] sm:$0xff]  ;;  %s5405_s30 = smov 24   ;;  %s5406_s12 = smov 20   ;;  %vm1764_vm4 = vcmask 97280  }
   0x3   :  { %v4157_v7 = vpack.i.bf16 %v42_v5, %v40_v4  ;;  %v57_v8 = vld [vmem:[%s7957_s0 + $0x98] sm:$0xff]  ;;  %v5503_v10 = vld [vmem:[%s7957_s0 + $0x20] sm:$0xff]  ;;  %v5517_v14 = vld [vmem:[%s7957_s0 + $0x110] sm:$0xff]  ;;  %s5407_s25 = smov 32   ;;  %s5408_s26 = smov 28   ;;  %vm1814_vm5 = vcmask 130048  }
   0x4   :  { %4168 = vrot.lane.b32.xlu1 %v4167_v3, %s5400_s14  ;;  %v4172_v11 = vpack.i.bf16 %v57_v8, %v55_v6  ;;  %v4162_v12 = vpack.i.bf16 %v5503_v10, %v5498_v9  ;;  %v5512_v13 = vld [vmem:[%s7957_s0 + $0x100] sm:$0xff]  ;;  %v5534_v19 = vld [vmem:[%s7957_s0 + $0x108] sm:$0xff]  ;;  %v5539_v20 = vld [vmem:[%s7957_s0 + $0x118] sm:$0xff]  ;;  %vm1864_vm6 = vcmask 162816   ;;  %vm1914_vm7 = vcmask 195584   ;;  %s5409_s18 = smov 48  }
   0x5   :  { %4158 = vrot.lane.b32.xlu0 %v4157_v7, %s5401_s15  ;;  %v58_v15 = vld [vmem:[%s7957_s0 + $0xa0] sm:$0xff]  ;;  %v4182_v16 = vpack.i.bf16 %v5517_v14, %v5512_v13  ;;  %v4187_v22 = vpack.i.bf16 %v5539_v20, %v5534_v19  ;;  %v5552_v23 = vld [vmem:[%s7957_s0 + $0x30] sm:$0xff]  ;;  %v44_v25 = vld [vmem:[%s7957_s0 + $0x28] sm:$0xff]  ;;  %vm1964_vm8 = vcmask 228352   ;;  %vm2014_vm9 = vcmask 261120   ;;  %s5411_s24 = smov 80  }
   0x6   :  { %v4177_v17 = vpack.i.bf16 %v58_v15, %v56_v0  ;;  %v5529_v18 = vld [vmem:[%s7957_s0 + $0x120] sm:$0xff]  ;;  %v46_v26 = vld [vmem:[%s7957_s0 + $0x38] sm:$0xff]  ;;  %v59_v29 = vld [vmem:[%s7957_s0 + $0xa8] sm:$0xff]  ;;  %vm2116_vm10 = vcmask 293888   ;;  %s5414_s27 = smov 112   ;;  %vm2731_vm11 = vcmask 392192  }
   0x7   :  { %v4192_v21 = vpack.i.bf16 %v5529_v18, %v5517_v14  ;;  %v5557_v24 = vld [vmem:[%s7957_s0 + $0x40] sm:$0xff]  ;;  %v4197_v28 = vpack.i.bf16 %v46_v26, %v44_v25  ;;  %v61_v30 = vld [vmem:[%s7957_s0 + $0xb8] sm:$0xff]  ;;  %v60_v31 = vld [vmem:[%s7957_s0 + $0xb0] sm:$0xff]  ;;  %vm2741_vm12 = vcmask 523264   ;;  %vm2751_vm13 = vcmask 654336  }
   0x8   :  { %4173 = vrot.lane.b32.xlu1 %v4172_v11, %s5402_s22  ;;  %v4202_v27 = vpack.i.bf16 %v5557_v24, %v5552_v23  ;;  %v4212_v32 = vpack.i.bf16 %v61_v30, %v59_v29  ;;  %v4207_v33 = vpack.i.bf16 %v60_v31, %v58_v15  ;;  %v75_v34 = vld [vmem:[%s7957_s0 + $0x130] sm:$0xff]  ;;  %v62_v35 = vld [vmem:[%s7957_s0 + $0xc0] sm:$0xff]  ;;  %v5597_v39 = vld [vmem:[%s7957_s0 + $0x128] sm:$0xff]  ;;  %vm2761_vm14 = vcmask 785408  }
   0x9   :  { %4163 = vrot.lane.b32.xlu0 %v4162_v12, %s5403_s23  ;;  %v5588_v36 = vpack.i.bf16 %v75_v34, %v5529_v18  ;;  %v4217_v37 = vpack.i.bf16 %v62_v35, %v60_v31  ;;  %v77_v38 = vld [vmem:[%s7957_s0 + $0x140] sm:$0xff]  ;;  %v5602_v40 = vld [vmem:[%s7957_s0 + $0x138] sm:$0xff]  ;;  %v5609_v42 = vld [vmem:[%s7957_s0 + $0x50] sm:$0xff]  ;;  %vm2771_vm15 = vcmask 916480  }
   0xa   :  { %v4232_v41 = vpack.i.bf16 %v77_v38, %v75_v34  ;;  %v4227_v43 = vpack.i.bf16 %v5602_v40, %v5597_v39  ;;  %v5617_v44 = vld [vmem:[%s7957_s0 + $0x60] sm:$0xff]  ;;  %v48_v45 = vld [vmem:[%s7957_s0 + $0x48] sm:$0xff]  ;;  %v50_v47 = vld [vmem:[%s7957_s0 + $0x58] sm:$0xff] }
   0xb   :  { %v5273_v46 = vld [vmem:[%s7958_s1] sm:$0xff]   ;;  %v5274_v48 = vld [vmem:[%s7958_s1 + $0x8] sm:$0xff]   ;;  %v4242_v49 = vpack.i.bf16 %v5617_v44, %v5609_v42  ;;  %v5275_v50 = vld [vmem:[%s7958_s1 + $0x10] ss:$0 sps:$4 sm:$0x33]   ;;  %v4237_v51 = vpack.i.bf16 %v50_v47, %v48_v45 }
   0xc   :  { %4183 = vrot.lane.b32.xlu1 %v4182_v16, %s5405_s30  ;;  %4027 = vmatpush3.bf16.msra.mxu0 %v5273_v46  ;;  %v63_v52 = vld [vmem:[%s7957_s0 + $0xc8] sm:$0xff]  ;;  %v65_v53 = vld [vmem:[%s7957_s0 + $0xd8] sm:$0xff]  ;;  %v64_v54 = vld [vmem:[%s7957_s0 + $0xd0] sm:$0xff]  ;;  %v2194_v56 = vsel %vm2192_vm1, %v5275_v50, 0 }
   0xd   :  { %4178 = vrot.lane.b32.xlu0 %v4177_v17, %s5406_s12  ;;  %4028 = vmatprep.subr.bf16.mxu0 %v5399_v2  ;;  %v4252_v55 = vpack.i.bf16 %v65_v53, %v63_v52  ;;  %v4247_v57 = vpack.i.bf16 %v64_v54, %v62_v35  ;;  %v79_v58 = vld [vmem:[%s7957_s0 + $0x150] sm:$0xff]  ;;  %v66_v59 = vld [vmem:[%s7957_s0 + $0xe0] sm:$0xff]  ;;  %v5669_v63 = vld [vmem:[%s7957_s0 + $0x148] sm:$0xff] }
   0xe   :  { %v5658_v60 = vpack.i.bf16 %v79_v58, %v77_v38  ;;  %v4257_v61 = vpack.i.bf16 %v66_v59, %v64_v54  ;;  %v5664_v62 = vld [vmem:[%s7957_s0 + $0x160] sm:$0xff]  ;;  %v5674_v0 = vld [vmem:[%s7957_s0 + $0x158] sm:$0xff]  ;;  %v53_v4 = vld [vmem:[%s7957_s0 + $0x70] sm:$0xff] }
   0xf   :  { %v4272_v1 = vpack.i.bf16 %v5664_v62, %v79_v58  ;;  %v4267_v3 = vpack.i.bf16 %v5674_v0, %v5669_v63  ;;  %v52_v5 = vld [vmem:[%s7957_s0 + $0x68] sm:$0xff]  ;;  %v4282_v6 = vpack.i.bf16 %v5517_v14, %v53_v4  ;;  %v84_v12 = vld [vmem:[%s7957_s0 + $0x180] sm:$0xff]  ;;  %v83_v26 = vld [vmem:[%s7957_s0 + $0x170] sm:$0xff] }
  0x10   :  { %4193 = vrot.lane.b32.xlu1 %v4192_v21, %s5407_s25  ;;  %4029 = vmatpush3.bf16.msra.mxu0 %v5274_v48  ;;  %v4277_v7 = vpack.i.bf16 %v5534_v19, %v52_v5  ;;  %v67_v8 = vld [vmem:[%s7957_s0 + $0xe8] sm:$0xff]  ;;  %v4287_v16 = vpack.i.bf16 %v84_v12, %v66_v59  ;;  %v99_v17 = vld [vmem:[%s7957_s0 + $0x200] sm:$0xff]  ;;  %v68_v19 = vld [vmem:[%s7957_s0 + $0xf0] sm:$0xff] }
  0x11   :  { %4188 = vrot.lane.b32.xlu0 %v4187_v22, %s5408_s26  ;;  %4030 = vmatprep.subr.bf16.mxu0 %v5399_v2  ;;  %v85_v11 = vld [vmem:[%s7957_s0 + $0x188] sm:$0xff]  ;;  %v86_v21 = vld [vmem:[%s7957_s0 + $0x190] sm:$0xff]  ;;  %v4302_v22 = vpack.i.bf16 %v99_v17, %v5664_v62  ;;  %v88_v35 = vld [vmem:[%s7957_s0 + $0x1a0] sm:$0xff] }
  0x12   :  { %v4292_v15 = vpack.i.bf16 %v85_v11, %v67_v8  ;;  %v4297_v25 = vpack.i.bf16 %v86_v21, %v68_v19  ;;  %v5727_v29 = vld [vmem:[%s7957_s0 + $0x208] sm:$0xff]  ;;  %v4327_v38 = vpack.i.bf16 %v88_v35, %v86_v21  ;;  %v102_v45 = vld [vmem:[%s7957_s0 + $0x218] sm:$0xff]  ;;  %v92_v52 = vld [vmem:[%s7957_s0 + $0x1c0] sm:$0xff] }
  0x13   :  { %v89_v34 = vld [vmem:[%s7957_s0 + $0x1a8] sm:$0xff]  ;;  %v91_v50 = vld [vmem:[%s7957_s0 + $0x1b8] sm:$0xff]  ;;  %v109_v58 = vld [vmem:[%s7957_s0 + $0x250] sm:$0xff] }
  0x14   :  { %4203 = vrot.lane.b32.xlu1 %v4202_v27, %s5403_s23  ;;  %4031 = vmatpush3.bf16.msra.mxu0 %v2194_v56  ;;  %v101_v27 = vld [vmem:[%s7957_s0 + $0x210] sm:$0xff]  ;;  %v5767_v46 = vld [vmem:[%s7957_s0 + $0x228] sm:$0xff]  ;;  %v5805_v59 = vld [vmem:[%s7957_s0 + $0x238] sm:$0xff] }
  0x15   :  { %4198 = vrot.lane.b32.xlu0 %v4197_v28, %s5401_s15  ;;  %v82_v28 = vld [vmem:[%s7957_s0 + $0x168] sm:$0xff]  ;;  %v4312_v30 = vpack.i.bf16 %v101_v27, %v83_v26  ;;  %v4347_v48 = vpack.i.bf16 %v5767_v46, %v102_v45  ;;  %v95_v4 = vld [vmem:[%s7957_s0 + $0x1d8] sm:$0xff]  ;;  %v98_v8 = vld [vmem:[%s7957_s0 + $0x1f0] sm:$0xff] }
  0x16   :  { %v4307_v31 = vpack.i.bf16 %v5727_v29, %v82_v28  ;;  %v97_v5 = vld [vmem:[%s7957_s0 + $0x1e8] sm:$0xff] }
  0x17   :  { %v5855_v17 = vld [vmem:[%s7957_s0 + $0x268] sm:$0xff] }
  0x18   :  { %4213 = vrot.lane.b32.xlu1 %v4212_v32, %s5402_s22  ;;  %v4317_v32 = vpack.i.bf16 %v5597_v39, %v5539_v20  ;;  %v103_v20 = vld [vmem:[%s7957_s0 + $0x220] sm:$0xff]  ;;  %v90_v39 = vld [vmem:[%s7957_s0 + $0x1b0] sm:$0xff] }
  0x19   :  { %4208 = vrot.lane.b32.xlu0 %v4207_v33, %s5400_s14  ;;  %v87_v33 = vld [vmem:[%s7957_s0 + $0x198] sm:$0xff]  ;;  %v4367_v54 = vpack.i.bf16 %v92_v52, %v90_v39 }
  0x1c   :  { %4223 = vrot.lane.b32.xlu1 %v5588_v36, %s5405_s30 }
  0x1d   :  { %4218 = vrot.lane.b32.xlu0 %v4217_v37, %s5406_s12  ;;  %v4332_v37 = vpack.i.bf16 %v89_v34, %v87_v33  ;;  %v5892_v34 = vld [vmem:[%s7957_s0 + $0x2a0] sm:$0xff] }
  0x20   :  { %4233 = vrot.lane.b32.xlu1 %v4232_v41, %s5407_s25  ;;  %v5755_v41 = vpack.i.bf16 %v103_v20, %v101_v27  ;;  %v114_v27 = vld [vmem:[%s7957_s0 + $0x280] sm:$0xff] }
  0x21   :  { %4228 = vrot.lane.b32.xlu0 %v4227_v43, %s5408_s26  ;;  %v4337_v43 = vpack.i.bf16 %v90_v39, %v88_v35  ;;  %v5909_v39 = vld [vmem:[%s7957_s0 + $0x318] sm:$0xff] }
  0x24   :  { %4243 = vrot.lane.b32.xlu1 %v4242_v49, %s5403_s23  ;;  %v4357_v49 = vpack.i.bf16 %v5669_v63, %v5602_v40  ;;  %v107_v40 = vld [vmem:[%s7957_s0 + $0x240] sm:$0xff] }
  0x25   :  { %4238 = vrot.lane.b32.xlu0 %v4237_v51, %s5401_s15  ;;  %v93_v51 = vld [vmem:[%s7957_s0 + $0x1c8] sm:$0xff] }
  0x26   :  { %v4372_v53 = vpack.i.bf16 %v93_v51, %v91_v50 }
  0x28   :  { %4253 = vrot.lane.b32.xlu1 %v4252_v55, %s5402_s22  ;;  %v94_v55 = vld [vmem:[%s7957_s0 + $0x1d0] sm:$0xff] }
  0x29   :  { %4248 = vrot.lane.b32.xlu0 %v4247_v57, %s5400_s14  ;;  %v4377_v57 = vpack.i.bf16 %v94_v55, %v92_v52 }
  0x2c   :  { %4263 = vrot.lane.b32.xlu1 %v5658_v60, %s5405_s30 }
  0x2d   :  { %4258 = vrot.lane.b32.xlu0 %v4257_v61, %s5406_s12  ;;  %v4392_v61 = vpack.i.bf16 %v109_v58, %v107_v40 }
  0x30   :  { %4273 = vrot.lane.b32.xlu1 %v4272_v1, %s5407_s25  ;;  %v4402_v1 = vpack.i.bf16 %v83_v26, %v5664_v62  ;;  %v117_v26 = vld [vmem:[%s7957_s0 + $0x298] sm:$0xff] }
  0x31   :  { %4268 = vrot.lane.b32.xlu0 %v4267_v3, %s5408_s26  ;;  %v4397_v3 = vpack.i.bf16 %v82_v28, %v5674_v0  ;;  %v111_v0 = vld [vmem:[%s7957_s0 + $0x260] sm:$0xff]  ;;  %v116_v28 = vld [vmem:[%s7957_s0 + $0x290] sm:$0xff] }
  0x32   :  { %v5839_v11 = vpack.i.bf16 %v111_v0, %v109_v58 }
  0x34   :  { %4283 = vrot.lane.b32.xlu1 %v4282_v6, %s5403_s23  ;;  %v96_v6 = vld [vmem:[%s7957_s0 + $0x1e0] sm:$0xff] }
  0x35   :  { %4278 = vrot.lane.b32.xlu0 %v4277_v7, %s5401_s15  ;;  %v4412_v7 = vpack.i.bf16 %v97_v5, %v95_v4  ;;  %v4407_v62 = vpack.i.bf16 %v96_v6, %v94_v55  ;;  %v4417_v12 = vpack.i.bf16 %v98_v8, %v96_v6 }
  0x38   :  { %4293 = vrot.lane.b32.xlu1 %v4292_v15, %s5402_s22  ;;  %v5845_v15 = vld [vmem:[%s7957_s0 + $0x270] sm:$0xff] }
  0x39   :  { %4288 = vrot.lane.b32.xlu0 %v4287_v16, %s5400_s14  ;;  %v5850_v16 = vld [vmem:[%s7957_s0 + $0x258] sm:$0xff]  ;;  %v4432_v19 = vpack.i.bf16 %v5845_v15, %v111_v0 }
  0x3a   :  { %v4427_v21 = vpack.i.bf16 %v5855_v17, %v5850_v16 }
  0x3c   :  { %4303 = vrot.lane.b32.xlu1 %v4302_v22, %s5405_s30  ;;  %v4437_v22 = vpack.i.bf16 %v102_v45, %v5727_v29  ;;  %v39_v45 = vld [vmem:[%s7957_s0] sm:$0xff] }
  0x3d   :  { %4298 = vrot.lane.b32.xlu0 %v4297_v25, %s5406_s12  ;;  %v115_v25 = vld [vmem:[%s7957_s0 + $0x288] sm:$0xff] }
  0x3e   :  { %v4452_v29 = vpack.i.bf16 %v117_v26, %v115_v25 }
  0x40   :  { %4313 = vrot.lane.b32.xlu1 %v4312_v30, %s5407_s25  ;;  %v4447_v30 = vpack.i.bf16 %v116_v28, %v114_v27  ;;  %v120_v27 = vld [vmem:[%s7957_s0 + $0x2b0] sm:$0xff] }
  0x41   :  { %4308 = vrot.lane.b32.xlu0 %v4307_v31, %s5408_s26  ;;  %v129_v31 = vld [vmem:[%s7957_s0 + $0x300] sm:$0xff] }
  0x44   :  { %4323 = vrot.lane.b32.xlu1 %v5588_v36, %s5403_s23  ;;  %v105_v36 = vld [vmem:[%s7957_s0 + $0x230] sm:$0xff] }
  0x45   :  { %4318 = vrot.lane.b32.xlu0 %v4317_v32, %s5401_s15  ;;  %v4352_v47 = vpack.i.bf16 %v105_v36, %v103_v20  ;;  %v5796_v56 = vpack.i.bf16 %v107_v40, %v105_v36  ;;  %v5887_v32 = vld [vmem:[%s7957_s0 + $0x310] sm:$0xff]  ;;  %v5904_v20 = vld [vmem:[%s7957_s0 + $0x308] sm:$0xff]  ;;  %v4457_v36 = vpack.i.bf16 %v5892_v34, %v116_v28 }
  0x46   :  { %v4467_v50 = vpack.i.bf16 %v5909_v39, %v5904_v20 }
  0x48   :  { %4333 = vrot.lane.b32.xlu1 %v4332_v37, %s5402_s22  ;;  %v4462_v37 = vpack.i.bf16 %v5887_v32, %v129_v31 }
  0x49   :  { %4328 = vrot.lane.b32.xlu0 %v4327_v38, %s5400_s14  ;;  %v5899_v38 = vld [vmem:[%s7957_s0 + $0x320] sm:$0xff] }
  0x4c   :  { %4343 = vrot.lane.b32.xlu1 %v5755_v41, %s5405_s30 }
  0x4d   :  { %4338 = vrot.lane.b32.xlu0 %v4337_v43, %s5406_s12 }
  0x50   :  { %4353 = vrot.lane.b32.xlu1 %v4352_v47, %s5407_s25 }
  0x51   :  { %4348 = vrot.lane.b32.xlu0 %v4347_v48, %s5408_s26 }
  0x54   :  { %4363 = vrot.lane.b32.xlu1 %v5658_v60, %s5403_s23  ;;  %v5810_v60 = vld [vmem:[%s7957_s0 + $0x248] sm:$0xff] }
  0x55   :  { %4358 = vrot.lane.b32.xlu0 %v4357_v49, %s5401_s15  ;;  %v4387_v63 = vpack.i.bf16 %v5810_v60, %v5805_v59  ;;  %v4472_v49 = vpack.i.bf16 %v5899_v38, %v5887_v32 }
  0x58   :  { %4373 = vrot.lane.b32.xlu1 %v4372_v53, %s5402_s22 }
  0x59   :  { %4368 = vrot.lane.b32.xlu0 %v4367_v54, %s5400_s14 }
  0x5c   :  { %4383 = vrot.lane.b32.xlu1 %v5796_v56, %s5405_s30 }
  0x5d   :  { %4378 = vrot.lane.b32.xlu0 %v4377_v57, %s5406_s12 }
  0x60   :  { %4393 = vrot.lane.b32.xlu1 %v4392_v61, %s5407_s25 }
  0x61   :  { %4388 = vrot.lane.b32.xlu0 %v4387_v63, %s5408_s26 }
  0x64   :  { %4403 = vrot.lane.b32.xlu1 %v4402_v1, %s5403_s23 }
  0x65   :  { %4398 = vrot.lane.b32.xlu0 %v4397_v3, %s5401_s15 }
  0x68   :  { %4413 = vrot.lane.b32.xlu1 %v4412_v7, %s5402_s22 }
  0x69   :  { %4408 = vrot.lane.b32.xlu0 %v4407_v62, %s5400_s14 }
  0x6c   :  { %4423 = vrot.lane.b32.xlu1 %v5839_v11, %s5405_s30 }
  0x6d   :  { %4418 = vrot.lane.b32.xlu0 %v4417_v12, %s5406_s12  ;;  %v4477_v12 = vpack.i.bf16 %v5805_v59, %v5767_v46 }
  0x70   :  { %4433 = vrot.lane.b32.xlu1 %v4432_v19, %s5407_s25  ;;  %v119_v19 = vld [vmem:[%s7957_s0 + $0x2a8] sm:$0xff] }
  0x71   :  { %4428 = vrot.lane.b32.xlu0 %v4427_v21, %s5408_s26  ;;  %v121_v21 = vld [vmem:[%s7957_s0 + $0x2b8] sm:$0xff] }
  0x72   :  { %v4492_v31 = vpack.i.bf16 %v121_v21, %v119_v19 }
  0x74   :  { %4443 = vrot.lane.b32.xlu1 %v5755_v41, %s5403_s23 }
  0x75   :  { %4438 = vrot.lane.b32.xlu0 %v4437_v22, %s5401_s15 }
  0x76   :  { %v4169_v33 = vpop.permute.xlu1 %4168 }
  0x77   :  { %v4159_v35 = vpop.permute.xlu0 %4158  ;;  %v4171_v40 = vunpack.i.h.bf16 %v4169_v33  ;;  %v4170_v55 = vunpack.i.l.bf16 %v4169_v33 }
  0x78   :  { %4453 = vrot.lane.b32.xlu1 %v4452_v29, %s5402_s22  ;;  %v4161_v41 = vunpack.i.h.bf16 %v4159_v35  ;;  %v4160_v43 = vunpack.i.l.bf16 %v4159_v35 }
  0x79   :  { %4448 = vrot.lane.b32.xlu0 %v4447_v30, %s5400_s14 }
  0x7a   :  { %v4174_v47 = vpop.permute.xlu1 %4173  ;;  %v1666_v57 = vsel %vm1664_vm2, %v5498_v9, %v4161_v41  ;;  %v1665_v58 = vsel %vm1664_vm2, %v39_v45, %v4160_v43  ;;  %v135_v41 = vld [vmem:[%s7957_s0 + $0x330] sm:$0xff] }
  0x7b   :  { %v4164_v48 = vpop.permute.xlu0 %4163  ;;  %v4176_v51 = vunpack.i.h.bf16 %v4174_v47  ;;  %v4175_v52 = vunpack.i.l.bf16 %v4174_v47 }
  0x7c   :  { %v4166_v53 = vunpack.i.h.bf16 %v4164_v48  ;;  %v4165_v54 = vunpack.i.l.bf16 %v4164_v48  ;;  %4463 = vrot.lane.b32.xlu1 %v4462_v37, %s5405_s30  ;;  %v4487_v37 = vpack.i.bf16 %v120_v27, %v5892_v34 }
  0x7d   :  { %4458 = vrot.lane.b32.xlu0 %v4457_v36, %s5406_s12 }
  0x7e   :  { %v1715_v61 = vsel %vm1714_vm3, %v1665_v58, %v4165_v54  ;;  %v1716_v63 = vsel %vm1714_vm3, %v1666_v57, %v4166_v53  ;;  %v4184_v1 = vpop.permute.xlu1 %4183  ;;  %v5976_v57 = vld [vmem:[%s7957_s0 + $0x328] sm:$0xff] }
  0x7f   :  { %v1765_v3 = vsel %vm1764_vm4, %v1715_v61, %v4170_v55  ;;  %v1766_v4 = vsel %vm1764_vm4, %v1716_v63, %v4171_v40  ;;  %v4179_v5 = vpop.permute.xlu0 %4178  ;;  %v4186_v0 = vunpack.i.h.bf16 %v4184_v1  ;;  %v4185_v8 = vunpack.i.l.bf16 %v4184_v1  ;;  %v137_v55 = vld [vmem:[%s7957_s0 + $0x340] sm:$0xff] }
  0x80   :  { %v4181_v6 = vunpack.i.h.bf16 %v4179_v5  ;;  %v4180_v7 = vunpack.i.l.bf16 %v4179_v5  ;;  %v1815_v62 = vsel %vm1814_vm5, %v1765_v3, %v4175_v52  ;;  %v1816_v9 = vsel %vm1814_vm5, %v1766_v4, %v4176_v51  ;;  %4473 = vrot.lane.b32.xlu1 %v4472_v49, %s5407_s25 }
  0x81   :  { %4468 = vrot.lane.b32.xlu0 %v4467_v50, %s5408_s26  ;;  %v5966_v52 = vpack.i.bf16 %v135_v41, %v5899_v38  ;;  %v5981_v38 = vld [vmem:[%s7957_s0 + $0x338] sm:$0xff]  ;;  %v4512_v5 = vpack.i.bf16 %v137_v55, %v135_v41 }
  0x82   :  { %v1865_v22 = vsel %vm1864_vm6, %v1815_v62, %v4180_v7  ;;  %v1866_v25 = vsel %vm1864_vm6, %v1816_v9, %v4181_v6  ;;  %v4194_v26 = vpop.permute.xlu1 %4193  ;;  %v4507_v6 = vpack.i.bf16 %v5981_v38, %v5976_v57 }
  0x83   :  { %v4196_v28 = vunpack.i.h.bf16 %v4194_v26  ;;  %v4195_v46 = vunpack.i.l.bf16 %v4194_v26  ;;  %v4189_v59 = vpop.permute.xlu0 %4188  ;;  %v1915_v33 = vsel %vm1914_vm7, %v1865_v22, %v4185_v8  ;;  %v1916_v35 = vsel %vm1914_vm7, %v1866_v25, %v4186_v0 }
  0x84   :  { %v4191_v29 = vunpack.i.h.bf16 %v4189_v59  ;;  %v4190_v30 = vunpack.i.l.bf16 %v4189_v59  ;;  %4483 = vrot.lane.b32.xlu1 %v5796_v56, %s5403_s23  ;;  %v5960_v56 = vld [vmem:[%s7957_s0 + $0x2c0] sm:$0xff]  ;;  %v4517_v22 = vpack.i.bf16 %v5850_v16, %v5810_v60  ;;  %v125_v59 = vld [vmem:[%s7957_s0 + $0x2d8] sm:$0xff] }
  0x85   :  { %4478 = vrot.lane.b32.xlu0 %v4477_v12, %s5401_s15  ;;  %v4497_v40 = vpack.i.bf16 %v5960_v56, %v120_v27 }
  0x86   :  { %v1965_v43 = vsel %vm1964_vm8, %v1915_v33, %v4190_v30  ;;  %v1966_v36 = vsel %vm1964_vm8, %v1916_v35, %v4191_v29  ;;  %v4204_v45 = vpop.permute.xlu1 %4203  ;;  %v124_v30 = vld [vmem:[%s7957_s0 + $0x2d0] sm:$0xff] }
  0x87   :  { %v4199_v47 = vpop.permute.xlu0 %4198  ;;  %v2015_v48 = vsel %vm2014_vm9, %v1965_v43, %v4195_v46  ;;  %v2016_v49 = vsel %vm2014_vm9, %v1966_v36, %v4196_v28  ;;  %v4206_v53 = vunpack.i.h.bf16 %v4204_v45  ;;  %v4205_v54 = vunpack.i.l.bf16 %v4204_v45  ;;  %v123_v46 = vld [vmem:[%s7957_s0 + $0x2c8] sm:$0xff] }
  0x88   :  { %v4201_v34 = vunpack.i.h.bf16 %v4199_v47  ;;  %v4200_v50 = vunpack.i.l.bf16 %v4199_v47  ;;  %4493 = vrot.lane.b32.xlu1 %v4492_v31, %s5402_s22  ;;  %v2064_v51 = vpack.c.bf16 %v2016_v49, %v2015_v48  ;;  %v4532_v43 = vpack.i.bf16 %v125_v59, %v123_v46  ;;  %v139_v48 = vld [vmem:[%s7957_s0 + $0x350] sm:$0xff] }
  0x89   :  { %4488 = vrot.lane.b32.xlu0 %v4487_v37, %s5400_s14  ;;  %v4527_v47 = vpack.i.bf16 %v124_v30, %v5960_v56  ;;  %v4562_v46 = vpack.i.bf16 %v5887_v32, %v5845_v15  ;;  %v4557_v59 = vpack.i.bf16 %v5904_v20, %v5855_v17  ;;  %v144_v20 = vld [vmem:[%s7957_s0 + $0x380] sm:$0xff] }
  0x8a   :  { %v1668_v58 = vsel %vm1664_vm2, %v5552_v23, %v4201_v34  ;;  %v1667_v61 = vsel %vm1664_vm2, %v5503_v10, %v4200_v50  ;;  %4033 = vmatmul.mubr.msk.bf16.vlgmr.msra.gmra.mrb[0].mxu0 %vm2116_vm10, %v2064_v51  ;;  %v4214_v63 = vpop.permute.xlu1 %4213 }
  0x8b   :  { %v4209_v1 = vpop.permute.xlu0 %4208  ;;  %4036 = vmatprep.mubr.msk.bf16.mxu0 %vm5404_vm0, %v5399_v2  ;;  %v4216_v23 = vunpack.i.h.bf16 %v4214_v63  ;;  %v4215_v7 = vunpack.i.l.bf16 %v4214_v63  ;;  %v1717_v10 = vsel %vm1714_vm3, %v1667_v61, %v4205_v54  ;;  %v1718_v62 = vsel %vm1714_vm3, %v1668_v58, %v4206_v53 }
  0x8c   :  { %v4211_v3 = vunpack.i.h.bf16 %v4209_v1  ;;  %v4210_v4 = vunpack.i.l.bf16 %v4209_v1  ;;  %4503 = vrot.lane.b32.xlu1 %v5966_v52, %s5405_s30  ;;  %v6035_v61 = vpack.i.bf16 %v139_v48, %v137_v55  ;;  %v6052_v55 = vld [vmem:[%s7957_s0 + $0x358] sm:$0xff] }
  0x8d   :  { %4498 = vrot.lane.b32.xlu0 %v4497_v40, %s5406_s12 }
  0x8e   :  { %v1767_v9 = vsel %vm1764_vm4, %v1717_v10, %v4210_v4  ;;  %v1768_v0 = vsel %vm1764_vm4, %v1718_v62, %v4211_v3  ;;  %v4224_v8 = vpop.permute.xlu1 %4223  ;;  %v6042_v4 = vld [vmem:[%s7957_s0 + $0x360] sm:$0xff] }
  0x8f   :  { %v4219_v12 = vpop.permute.xlu0 %4218  ;;  %v4226_v25 = vunpack.i.h.bf16 %v4224_v8  ;;  %v4225_v26 = vunpack.i.l.bf16 %v4224_v8  ;;  %v1817_v27 = vsel %vm1814_vm5, %v1767_v9, %v4215_v7  ;;  %v1818_v28 = vsel %vm1814_vm5, %v1768_v0, %v4216_v23 }
  0x90   :  { %v4221_v19 = vunpack.i.h.bf16 %v4219_v12  ;;  %v4220_v21 = vunpack.i.l.bf16 %v4219_v12  ;;  %4513 = vrot.lane.b32.xlu1 %v4512_v5, %s5407_s25  ;;  %v6047_v5 = vld [vmem:[%s7957_s0 + $0x348] sm:$0xff]  ;;  %v4552_v0 = vpack.i.bf16 %v6042_v4, %v139_v48 }
  0x91   :  { %4508 = vrot.lane.b32.xlu0 %v4507_v6, %s5408_s26 }
  0x92   :  { %v1867_v29 = vsel %vm1864_vm6, %v1817_v27, %v4220_v21  ;;  %v1868_v60 = vsel %vm1864_vm6, %v1818_v28, %v4221_v19  ;;  %v4234_v16 = vpop.permute.xlu1 %4233 }
  0x93   :  { %v4236_v31 = vunpack.i.h.bf16 %v4234_v16  ;;  %v4235_v33 = vunpack.i.l.bf16 %v4234_v16  ;;  %v4229_v35 = vpop.permute.xlu0 %4228  ;;  %v1917_v36 = vsel %vm1914_vm7, %v1867_v29, %v4225_v26  ;;  %v1918_v45 = vsel %vm1914_vm7, %v1868_v60, %v4226_v25 }
  0x94   :  { %v4231_v37 = vunpack.i.h.bf16 %v4229_v35  ;;  %v4230_v41 = vunpack.i.l.bf16 %v4229_v35  ;;  %4523 = vrot.lane.b32.xlu1 %v5839_v11, %s5403_s23  ;;  %v6030_v11 = vld [vmem:[%s7957_s0 + $0x2e0] sm:$0xff] }
  0x95   :  { %4518 = vrot.lane.b32.xlu0 %v4517_v22, %s5401_s15  ;;  %v4537_v3 = vpack.i.bf16 %v6030_v11, %v124_v30 }
  0x96   :  { %v1967_v49 = vsel %vm1964_vm8, %v1917_v36, %v4230_v41  ;;  %v1968_v34 = vsel %vm1964_vm8, %v1918_v45, %v4231_v37  ;;  %v4244_v50 = vpop.permute.xlu1 %4243 }
  0x97   :  { %v4239_v51 = vpop.permute.xlu0 %4238  ;;  %v2017_v53 = vsel %vm2014_vm9, %v1967_v49, %v4235_v33  ;;  %v2018_v54 = vsel %vm2014_vm9, %v1968_v34, %v4236_v31  ;;  %v4246_v63 = vunpack.i.h.bf16 %v4244_v50  ;;  %v4245_v1 = vunpack.i.l.bf16 %v4244_v50  ;;  %v127_v31 = vld [vmem:[%s7957_s0 + $0x2e8] sm:$0xff]  ;;  %v159_v34 = vld [vmem:[%s7957_s0 + $0x400] sm:$0xff] }
  0x98   :  { %v4241_v56 = vunpack.i.h.bf16 %v4239_v51  ;;  %v4240_v40 = vunpack.i.l.bf16 %v4239_v51  ;;  %4533 = vrot.lane.b32.xlu1 %v4532_v43, %s5402_s22  ;;  %v2065_v58 = vpack.c.bf16 %v2018_v54, %v2017_v53  ;;  %v145_v33 = vld [vmem:[%s7957_s0 + $0x388] sm:$0xff]  ;;  %v4567_v49 = vpack.i.bf16 %v144_v20, %v6030_v11  ;;  %v128_v54 = vld [vmem:[%s7957_s0 + $0x2f0] sm:$0xff]  ;;  %v147_v20 = vld [vmem:[%s7957_s0 + $0x398] sm:$0xff] }
  0x99   :  { %4528 = vrot.lane.b32.xlu0 %v4527_v47, %s5400_s14  ;;  %v4572_v45 = vpack.i.bf16 %v145_v33, %v127_v31  ;;  %v4597_v31 = vpack.i.bf16 %v5976_v57, %v5909_v39 }
  0x9a   :  { %v1670_v6 = vsel %vm1664_vm2, %v5609_v42, %v4241_v56  ;;  %v1669_v23 = vsel %vm1664_vm2, %v5557_v24, %v4240_v40  ;;  %4037 = vmatmul.mubr.msk.bf16.gmra.mrb[4].mxu0 %vm2116_vm10, %v2065_v58  ;;  %v4254_v7 = vpop.permute.xlu1 %4253  ;;  %v4547_v42 = vpack.i.bf16 %v6052_v55, %v6047_v5  ;;  %v6106_v56 = vld [vmem:[%s7957_s0 + $0x390] sm:$0xff] }
  0x9b   :  { %v4249_v10 = vpop.permute.xlu0 %4248  ;;  %4040 = vmatprep.mubr.msk.bf16.mxu0 %vm5404_vm0, %v5399_v2  ;;  %v4256_v8 = vunpack.i.h.bf16 %v4254_v7  ;;  %v4255_v12 = vunpack.i.l.bf16 %v4254_v7  ;;  %v1719_v24 = vsel %vm1714_vm3, %v1669_v23, %v4245_v1  ;;  %v1720_v19 = vsel %vm1714_vm3, %v1670_v6, %v4246_v63  ;;  %v6115_v23 = vld [vmem:[%s7957_s0 + $0x370] sm:$0xff] }
  0x9c   :  { %v4251_v62 = vunpack.i.h.bf16 %v4249_v10  ;;  %v4250_v9 = vunpack.i.l.bf16 %v4249_v10  ;;  %4543 = vrot.lane.b32.xlu1 %v6035_v61, %s5405_s30  ;;  %v4582_v6 = vpack.i.bf16 %v159_v34, %v6042_v4 }
  0x9d   :  { %4538 = vrot.lane.b32.xlu0 %v4537_v3, %s5406_s12 }
  0x9e   :  { %v1769_v21 = vsel %vm1764_vm4, %v1719_v24, %v4250_v9  ;;  %v1770_v22 = vsel %vm1764_vm4, %v1720_v19, %v4251_v62  ;;  %v4264_v25 = vpop.permute.xlu1 %4263  ;;  %v4577_v62 = vpack.i.bf16 %v6106_v56, %v128_v54  ;;  %v161_v9 = vld [vmem:[%s7957_s0 + $0x410] sm:$0xff] }
  0x9f   :  { %v4259_v26 = vpop.permute.xlu0 %4258  ;;  %v4266_v29 = vunpack.i.h.bf16 %v4264_v25  ;;  %v4265_v60 = vunpack.i.l.bf16 %v4264_v25  ;;  %v1819_v16 = vsel %vm1814_vm5, %v1769_v21, %v4255_v12  ;;  %v1820_v30 = vsel %vm1814_vm5, %v1770_v22, %v4256_v8 }
  0xa0   :  { %v4261_v27 = vunpack.i.h.bf16 %v4259_v26  ;;  %v4260_v28 = vunpack.i.l.bf16 %v4259_v26  ;;  %4553 = vrot.lane.b32.xlu1 %v4552_v0, %s5407_s25  ;;  %v6125_v0 = vld [vmem:[%s7957_s0 + $0x368] sm:$0xff]  ;;  %v4592_v25 = vpack.i.bf16 %v161_v9, %v6115_v23 }
  0xa1   :  { %4548 = vrot.lane.b32.xlu0 %v4547_v42, %s5408_s26  ;;  %v6130_v42 = vld [vmem:[%s7957_s0 + $0x408] sm:$0xff] }
  0xa2   :  { %v1869_v15 = vsel %vm1864_vm6, %v1819_v16, %v4260_v28  ;;  %v1870_v17 = vsel %vm1864_vm6, %v1820_v30, %v4261_v27  ;;  %v4274_v32 = vpop.permute.xlu1 %4273  ;;  %v4587_v26 = vpack.i.bf16 %v6130_v42, %v6125_v0 }
  0xa3   :  { %v4276_v35 = vunpack.i.h.bf16 %v4274_v32  ;;  %v4275_v37 = vunpack.i.l.bf16 %v4274_v32  ;;  %v4269_v41 = vpop.permute.xlu0 %4268  ;;  %v1919_v47 = vsel %vm1914_vm7, %v1869_v15, %v4265_v60  ;;  %v1920_v48 = vsel %vm1914_vm7, %v1870_v17, %v4266_v29 }
  0xa4   :  { %v4271_v43 = vunpack.i.h.bf16 %v4269_v41  ;;  %v4270_v36 = vunpack.i.l.bf16 %v4269_v41  ;;  %4563 = vrot.lane.b32.xlu1 %v4562_v46, %s5403_s23  ;;  %v148_v41 = vld [vmem:[%s7957_s0 + $0x3a0] sm:$0xff] }
  0xa5   :  { %4558 = vrot.lane.b32.xlu0 %v4557_v59, %s5401_s15 }
  0xa6   :  { %v1969_v50 = vsel %vm1964_vm8, %v1919_v47, %v4270_v36  ;;  %v1970_v51 = vsel %vm1964_vm8, %v1920_v48, %v4271_v43  ;;  %v4284_v53 = vpop.permute.xlu1 %4283 }
  0xa7   :  { %v4279_v40 = vpop.permute.xlu0 %4278  ;;  %v2019_v11 = vsel %vm2014_vm9, %v1969_v50, %v4275_v37  ;;  %v2020_v58 = vsel %vm2014_vm9, %v1970_v51, %v4276_v35  ;;  %v4286_v7 = vunpack.i.h.bf16 %v4284_v53  ;;  %v4285_v10 = vunpack.i.l.bf16 %v4284_v53  ;;  %v149_v35 = vld [vmem:[%s7957_s0 + $0x3a8] sm:$0xff]  ;;  %v163_v53 = vld [vmem:[%s7957_s0 + $0x420] sm:$0xff] }
  0xa8   :  { %v4281_v63 = vunpack.i.h.bf16 %v4279_v40  ;;  %v4280_v1 = vunpack.i.l.bf16 %v4279_v40  ;;  %4573 = vrot.lane.b32.xlu1 %v4572_v45, %s5402_s22  ;;  %v2066_v3 = vpack.c.bf16 %v2020_v58, %v2019_v11  ;;  %v4607_v51 = vpack.i.bf16 %v148_v41, %v6106_v56 }
  0xa9   :  { %4568 = vrot.lane.b32.xlu0 %v4567_v49, %s5400_s14  ;;  %v4612_v49 = vpack.i.bf16 %v149_v35, %v147_v20  ;;  %v151_v35 = vld [vmem:[%s7957_s0 + $0x3b8] sm:$0xff] }
  0xaa   :  { %v1672_v8 = vsel %vm1664_vm2, %v5512_v13, %v4281_v63  ;;  %v1671_v12 = vsel %vm1664_vm2, %v5617_v44, %v4280_v1  ;;  %4041 = vmatmul.mubr.msk.bf16.gmra.mrb[8].mxu0 %vm2116_vm10, %v2066_v3  ;;  %v4294_v24 = vpop.permute.xlu1 %4293 }
  0xab   :  { %v4289_v19 = vpop.permute.xlu0 %4288  ;;  %4044 = vmatprep.mubr.msk.bf16.mxu0 %vm5404_vm0, %v5399_v2  ;;  %v4296_v13 = vunpack.i.h.bf16 %v4294_v24  ;;  %v4295_v27 = vunpack.i.l.bf16 %v4294_v24  ;;  %v1721_v44 = vsel %vm1714_vm3, %v1671_v12, %v4285_v10  ;;  %v1722_v28 = vsel %vm1714_vm3, %v1672_v8, %v4286_v7  ;;  %v165_v12 = vld [vmem:[%s7957_s0 + $0x430] sm:$0xff]  ;;  %v6194_v24 = vld [vmem:[%s7957_s0 + $0x428] sm:$0xff] }
  0xac   :  { %v4291_v21 = vunpack.i.h.bf16 %v4289_v19  ;;  %v4290_v22 = vunpack.i.l.bf16 %v4289_v19  ;;  %4583 = vrot.lane.b32.xlu1 %v4582_v6, %s5405_s30  ;;  %v6184_v7 = vpack.i.bf16 %v163_v53, %v161_v9  ;;  %v6199_v9 = vld [vmem:[%s7957_s0 + $0x418] sm:$0xff] }
  0xad   :  { %4578 = vrot.lane.b32.xlu0 %v4577_v62, %s5406_s12 }
  0xae   :  { %v1771_v46 = vsel %vm1764_vm4, %v1721_v44, %v4290_v22  ;;  %v1772_v59 = vsel %vm1764_vm4, %v1722_v28, %v4291_v21  ;;  %v4304_v29 = vpop.permute.xlu1 %4303  ;;  %v4627_v44 = vpack.i.bf16 %v6194_v24, %v6199_v9 }
  0xaf   :  { %v4299_v60 = vpop.permute.xlu0 %4298  ;;  %v4306_v33 = vunpack.i.h.bf16 %v4304_v29  ;;  %v4305_v15 = vunpack.i.l.bf16 %v4304_v29  ;;  %v1821_v17 = vsel %vm1814_vm5, %v1771_v46, %v4295_v27  ;;  %v1822_v32 = vsel %vm1814_vm5, %v1772_v59, %v4296_v13 }
  0xb0   :  { %v4301_v16 = vunpack.i.h.bf16 %v4299_v60  ;;  %v4300_v30 = vunpack.i.l.bf16 %v4299_v60  ;;  %4593 = vrot.lane.b32.xlu1 %v4592_v25, %s5407_s25  ;;  %v4632_v27 = vpack.i.bf16 %v165_v12, %v163_v53 }
  0xb1   :  { %4588 = vrot.lane.b32.xlu0 %v4587_v26, %s5408_s26 }
  0xb2   :  { %v1871_v37 = vsel %vm1864_vm6, %v1821_v17, %v4300_v30  ;;  %v1872_v39 = vsel %vm1864_vm6, %v1822_v32, %v4301_v16  ;;  %v4314_v57 = vpop.permute.xlu1 %4313 }
  0xb3   :  { %v4316_v43 = vunpack.i.h.bf16 %v4314_v57  ;;  %v4315_v36 = vunpack.i.l.bf16 %v4314_v57  ;;  %v4309_v45 = vpop.permute.xlu0 %4308  ;;  %v1921_v34 = vsel %vm1914_vm7, %v1871_v37, %v4305_v15  ;;  %v1922_v50 = vsel %vm1914_vm7, %v1872_v39, %v4306_v33  ;;  %v153_v37 = vld [vmem:[%s7957_s0 + $0x3c8] sm:$0xff] }
  0xb4   :  { %v4311_v47 = vunpack.i.h.bf16 %v4309_v45  ;;  %v4310_v48 = vunpack.i.l.bf16 %v4309_v45  ;;  %4603 = vrot.lane.b32.xlu1 %v5966_v52, %s5403_s23  ;;  %v6179_v52 = vld [vmem:[%s7957_s0 + $0x3b0] sm:$0xff]  ;;  %v4637_v33 = vpack.i.bf16 %v6047_v5, %v5981_v38  ;;  %v152_v38 = vld [vmem:[%s7957_s0 + $0x3c0] sm:$0xff] }
  0xb5   :  { %4598 = vrot.lane.b32.xlu0 %v4597_v31, %s5401_s15  ;;  %v4617_v8 = vpack.i.bf16 %v6179_v52, %v148_v41 }
  0xb6   :  { %v1971_v54 = vsel %vm1964_vm8, %v1921_v34, %v4310_v48  ;;  %v1972_v40 = vsel %vm1964_vm8, %v1922_v50, %v4311_v47  ;;  %v4324_v11 = vpop.permute.xlu1 %4323  ;;  %v4652_v48 = vpack.i.bf16 %v153_v37, %v151_v35 }
  0xb7   :  { %v4319_v58 = vpop.permute.xlu0 %4318  ;;  %v2021_v63 = vsel %vm2014_vm9, %v1971_v54, %v4315_v36  ;;  %v2022_v1 = vsel %vm2014_vm9, %v1972_v40, %v4316_v43  ;;  %v4326_v10 = vunpack.i.h.bf16 %v4324_v11  ;;  %v4325_v62 = vunpack.i.l.bf16 %v4324_v11 }
  0xb8   :  { %v4321_v56 = vunpack.i.h.bf16 %v4319_v58  ;;  %v4320_v3 = vunpack.i.l.bf16 %v4319_v58  ;;  %4613 = vrot.lane.b32.xlu1 %v4612_v49, %s5402_s22  ;;  %v2067_v6 = vpack.c.bf16 %v2022_v1, %v2021_v63  ;;  %v4647_v49 = vpack.i.bf16 %v152_v38, %v6179_v52 }
  0xb9   :  { %4608 = vrot.lane.b32.xlu0 %v4607_v51, %s5400_s14  ;;  %v167_v51 = vld [vmem:[%s7957_s0 + $0x440] sm:$0xff] }
  0xba   :  { %v1674_v19 = vsel %vm1664_vm2, %v5529_v18, %v4321_v56  ;;  %v1673_v21 = vsel %vm1664_vm2, %v5517_v14, %v4320_v3  ;;  %4045 = vmatmul.mubr.msk.bf16.gmra.mrb[12].mxu0 %vm2116_vm10, %v2067_v6  ;;  %v4334_v22 = vpop.permute.xlu1 %4333  ;;  %v6253_v3 = vpack.i.bf16 %v167_v51, %v165_v12  ;;  %v6258_v6 = vld [vmem:[%s7957_s0 + $0x438] sm:$0xff]  ;;  %v6270_v12 = vld [vmem:[%s7957_s0 + $0x448] sm:$0xff] }
  0xbb   :  { %v4329_v25 = vpop.permute.xlu0 %4328  ;;  %4048 = vmatprep.mubr.msk.bf16.mxu0 %vm5404_vm0, %v5399_v2  ;;  %v4336_v18 = vunpack.i.h.bf16 %v4334_v22  ;;  %v4335_v28 = vunpack.i.l.bf16 %v4334_v22  ;;  %v1723_v14 = vsel %vm1714_vm3, %v1673_v21, %v4325_v62  ;;  %v1724_v46 = vsel %vm1714_vm3, %v1674_v19, %v4326_v10  ;;  %v6265_v19 = vld [vmem:[%s7957_s0 + $0x450] sm:$0xff]  ;;  %v5359_v21 = vld [vmem:[%s7957_s0 + $0x140] sm:$0xff] }
  0xbc   :  { %v4331_v26 = vunpack.i.h.bf16 %v4329_v25  ;;  %v4330_v13 = vunpack.i.l.bf16 %v4329_v25  ;;  %4623 = vrot.lane.b32.xlu1 %v6184_v7, %s5405_s30  ;;  %v5360_v25 = vld [vmem:[%s7957_s0 + $0x130] sm:$0xff] }
  0xbd   :  { %4618 = vrot.lane.b32.xlu0 %v4617_v8, %s5406_s12 }
  0xbe   :  { %v1773_v59 = vsel %vm1764_vm4, %v1723_v14, %v4330_v13  ;;  %v1774_v29 = vsel %vm1764_vm4, %v1724_v46, %v4331_v26  ;;  %v4344_v60 = vpop.permute.xlu1 %4343  ;;  %v4667_v14 = vpack.i.bf16 %v6270_v12, %v6258_v6 }
  0xbf   :  { %v4339_v16 = vpop.permute.xlu0 %4338  ;;  %v4346_v15 = vunpack.i.h.bf16 %v4344_v60  ;;  %v4345_v17 = vunpack.i.l.bf16 %v4344_v60  ;;  %v1823_v32 = vsel %vm1814_vm5, %v1773_v59, %v4335_v28  ;;  %v1824_v20 = vsel %vm1814_vm5, %v1774_v29, %v4336_v18 }
  0xc0   :  { %v4341_v30 = vunpack.i.h.bf16 %v4339_v16  ;;  %v4340_v31 = vunpack.i.l.bf16 %v4339_v16  ;;  %4633 = vrot.lane.b32.xlu1 %v4632_v27, %s5407_s25  ;;  %v4672_v28 = vpack.i.bf16 %v6265_v19, %v167_v51  ;;  %v171_v51 = vld [vmem:[%s7957_s0 + $0x460] sm:$0xff] }
  0xc1   :  { %4628 = vrot.lane.b32.xlu0 %v4627_v44, %s5408_s26 }
  0xc2   :  { %v1873_v5 = vsel %vm1864_vm6, %v1823_v32, %v4340_v31  ;;  %v1874_v39 = vsel %vm1864_vm6, %v1824_v20, %v4341_v30  ;;  %v4354_v57 = vpop.permute.xlu1 %4353 }
  0xc3   :  { %v4356_v41 = vunpack.i.h.bf16 %v4354_v57  ;;  %v4355_v43 = vunpack.i.l.bf16 %v4354_v57  ;;  %v4349_v36 = vpop.permute.xlu0 %4348  ;;  %v1923_v34 = vsel %vm1914_vm7, %v1873_v5, %v4345_v17  ;;  %v1924_v50 = vsel %vm1914_vm7, %v1874_v39, %v4346_v15  ;;  %v155_v39 = vld [vmem:[%s7957_s0 + $0x3d8] sm:$0xff]  ;;  %v156_v57 = vld [vmem:[%s7957_s0 + $0x3e0] sm:$0xff] }
  0xc4   :  { %v4351_v45 = vunpack.i.h.bf16 %v4349_v36  ;;  %v4350_v47 = vunpack.i.l.bf16 %v4349_v36  ;;  %4643 = vrot.lane.b32.xlu1 %v6035_v61, %s5403_s23  ;;  %v6248_v61 = vld [vmem:[%s7957_s0 + $0x3d0] sm:$0xff]  ;;  %v4682_v15 = vpack.i.bf16 %v6115_v23, %v6042_v4  ;;  %v4677_v17 = vpack.i.bf16 %v6125_v0, %v6052_v55  ;;  %v157_v4 = vld [vmem:[%s7957_s0 + $0x3e8] sm:$0xff] }
  0xc5   :  { %4638 = vrot.lane.b32.xlu0 %v4637_v33, %s5401_s15  ;;  %v4657_v8 = vpack.i.bf16 %v6248_v61, %v152_v38 }
  0xc6   :  { %v1973_v53 = vsel %vm1964_vm8, %v1923_v34, %v4350_v47  ;;  %v1974_v54 = vsel %vm1964_vm8, %v1924_v50, %v4351_v45  ;;  %v4364_v40 = vpop.permute.xlu1 %4363  ;;  %v4687_v50 = vpack.i.bf16 %v156_v57, %v6248_v61 }
  0xc7   :  { %v4359_v11 = vpop.permute.xlu0 %4358  ;;  %v2023_v52 = vsel %vm2014_vm9, %v1973_v53, %v4355_v43  ;;  %v2024_v58 = vsel %vm2014_vm9, %v1974_v54, %v4356_v41  ;;  %v4366_v10 = vunpack.i.h.bf16 %v4364_v40  ;;  %v4365_v62 = vunpack.i.l.bf16 %v4364_v40 }
  0xc8   :  { %v4361_v63 = vunpack.i.h.bf16 %v4359_v11  ;;  %v4360_v1 = vunpack.i.l.bf16 %v4359_v11  ;;  %4653 = vrot.lane.b32.xlu1 %v4652_v48, %s5402_s22  ;;  %v2068_v56 = vpack.c.bf16 %v2024_v58, %v2023_v52  ;;  %v4692_v48 = vpack.i.bf16 %v157_v4, %v155_v39  ;;  %v158_v11 = vld [vmem:[%s7957_s0 + $0x3f0] sm:$0xff] }
  0xc9   :  { %4648 = vrot.lane.b32.xlu0 %v4647_v49, %s5400_s14 }
  0xca   :  { %v1676_v22 = vsel %vm1664_vm2, %v5359_v21, %v4361_v63  ;;  %v1675_v26 = vsel %vm1664_vm2, %v5360_v25, %v4360_v1  ;;  %4049 = vmatmul.mubr.msk.bf16.gmra.mrb[16].mxu0 %vm2116_vm10, %v2068_v56  ;;  %v4374_v13 = vpop.permute.xlu1 %4373  ;;  %v4697_v21 = vpack.i.bf16 %v158_v11, %v156_v57  ;;  %v6340_v25 = vld [vmem:[%s7957_s0 + $0x458] sm:$0xff]  ;;  %v174_v57 = vld [vmem:[%s7957_s0 + $0x480] sm:$0xff] }
  0xcb   :  { %v4369_v27 = vpop.permute.xlu0 %4368  ;;  %4052 = vmatprep.mubr.msk.bf16.mxu0 %vm5404_vm0, %v5399_v2  ;;  %v4376_v46 = vunpack.i.h.bf16 %v4374_v13  ;;  %v4375_v59 = vunpack.i.l.bf16 %v4374_v13  ;;  %v1725_v29 = vsel %vm1714_vm3, %v1675_v26, %v4365_v62  ;;  %v1726_v60 = vsel %vm1714_vm3, %v1676_v22, %v4366_v10  ;;  %v6335_v22 = vld [vmem:[%s7957_s0 + $0x470] sm:$0xff]  ;;  %v5361_v26 = vld [vmem:[%s7957_s0 + $0x160] sm:$0xff] }
  0xcc   :  { %v4371_v44 = vunpack.i.h.bf16 %v4369_v27  ;;  %v4370_v18 = vunpack.i.l.bf16 %v4369_v27  ;;  %4663 = vrot.lane.b32.xlu1 %v6253_v3, %s5405_s30  ;;  %v6329_v10 = vpack.i.bf16 %v171_v51, %v6265_v19  ;;  %v6345_v19 = vld [vmem:[%s7957_s0 + $0x468] sm:$0xff]  ;;  %v5362_v27 = vld [vmem:[%s7957_s0 + $0x150] sm:$0xff] }
  0xcd   :  { %4658 = vrot.lane.b32.xlu0 %v4657_v8, %s5406_s12 }
  0xce   :  { %v1775_v16 = vsel %vm1764_vm4, %v1725_v29, %v4370_v18  ;;  %v1776_v30 = vsel %vm1764_vm4, %v1726_v60, %v4371_v44  ;;  %v4384_v31 = vpop.permute.xlu1 %4383  ;;  %v4707_v29 = vpack.i.bf16 %v6345_v19, %v6340_v25 }
  0xcf   :  { %v4379_v33 = vpop.permute.xlu0 %4378  ;;  %v4386_v35 = vunpack.i.h.bf16 %v4384_v31  ;;  %v4385_v37 = vunpack.i.l.bf16 %v4384_v31  ;;  %v1825_v38 = vsel %vm1814_vm5, %v1775_v16, %v4375_v59  ;;  %v1826_v5 = vsel %vm1814_vm5, %v1776_v30, %v4376_v46 }
  0xd0   :  { %v4381_v32 = vunpack.i.h.bf16 %v4379_v33  ;;  %v4380_v20 = vunpack.i.l.bf16 %v4379_v33  ;;  %4673 = vrot.lane.b32.xlu1 %v4672_v28, %s5407_s25  ;;  %v4712_v59 = vpack.i.bf16 %v6335_v22, %v171_v51 }
  0xd1   :  { %4668 = vrot.lane.b32.xlu0 %v4667_v14, %s5408_s26 }
  0xd2   :  { %v1875_v55 = vsel %vm1864_vm6, %v1825_v38, %v4380_v20  ;;  %v1876_v23 = vsel %vm1864_vm6, %v1826_v5, %v4381_v32  ;;  %v4394_v0 = vpop.permute.xlu1 %4393  ;;  %v4717_v20 = vpack.i.bf16 %v6199_v9, %v6130_v42  ;;  %v177_v42 = vld [vmem:[%s7957_s0 + $0x498] sm:$0xff] }
  0xd3   :  { %v4396_v41 = vunpack.i.h.bf16 %v4394_v0  ;;  %v4395_v43 = vunpack.i.l.bf16 %v4394_v0  ;;  %v4389_v36 = vpop.permute.xlu0 %4388  ;;  %v1925_v49 = vsel %vm1914_vm7, %v1875_v55, %v4385_v37  ;;  %v1926_v34 = vsel %vm1914_vm7, %v1876_v23, %v4386_v35  ;;  %v175_v55 = vld [vmem:[%s7957_s0 + $0x488] sm:$0xff] }
  0xd4   :  { %v4391_v45 = vunpack.i.h.bf16 %v4389_v36  ;;  %v4390_v47 = vunpack.i.l.bf16 %v4389_v36  ;;  %4683 = vrot.lane.b32.xlu1 %v4682_v15, %s5403_s23 }
  0xd5   :  { %4678 = vrot.lane.b32.xlu0 %v4677_v17, %s5401_s15 }
  0xd6   :  { %v1975_v53 = vsel %vm1964_vm8, %v1925_v49, %v4390_v47  ;;  %v1976_v54 = vsel %vm1964_vm8, %v1926_v34, %v4391_v45  ;;  %v4404_v40 = vpop.permute.xlu1 %4403  ;;  %v4732_v49 = vpack.i.bf16 %v177_v42, %v175_v55 }
  0xd7   :  { %v4399_v52 = vpop.permute.xlu0 %4398  ;;  %v2025_v58 = vsel %vm2014_vm9, %v1975_v53, %v4395_v43  ;;  %v2026_v63 = vsel %vm2014_vm9, %v1976_v54, %v4396_v41  ;;  %v4406_v62 = vunpack.i.h.bf16 %v4404_v40  ;;  %v4405_v8 = vunpack.i.l.bf16 %v4404_v40  ;;  %v176_v41 = vld [vmem:[%s7957_s0 + $0x490] sm:$0xff]  ;;  %v189_v53 = vld [vmem:[%s7957_s0 + $0x500] sm:$0xff] }
  0xd8   :  { %v4401_v1 = vunpack.i.h.bf16 %v4399_v52  ;;  %v4400_v61 = vunpack.i.l.bf16 %v4399_v52  ;;  %4693 = vrot.lane.b32.xlu1 %v4692_v48, %s5402_s22  ;;  %v2069_v56 = vpack.c.bf16 %v2026_v63, %v2025_v58  ;;  %v4727_v51 = vpack.i.bf16 %v176_v41, %v174_v57  ;;  %v6399_v54 = vld [vmem:[%s7957_s0 + $0x510] sm:$0xff]  ;;  %v6406_v52 = vld [vmem:[%s7957_s0 + $0x4a0] sm:$0xff]  ;;  %v179_v57 = vld [vmem:[%s7957_s0 + $0x4a8] sm:$0xff] }
  0xd9   :  { %4688 = vrot.lane.b32.xlu0 %v4687_v50, %s5400_s14 }
  0xda   :  { %v1678_v13 = vsel %vm1664_vm2, %v5361_v26, %v4401_v1  ;;  %v1677_v44 = vsel %vm1664_vm2, %v5362_v27, %v4400_v61  ;;  %4053 = vmatmul.mubr.msk.bf16.gmra.mrb[20].mxu0 %vm2116_vm10, %v2069_v56  ;;  %v4414_v18 = vpop.permute.xlu1 %4413  ;;  %v6417_v27 = vld [vmem:[%s7957_s0 + $0x520] sm:$0xff] }
  0xdb   :  { %v4409_v28 = vpop.permute.xlu0 %4408  ;;  %4056 = vmatprep.mubr.msk.bf16.mxu0 %vm5404_vm0, %v5399_v2  ;;  %v4416_v60 = vunpack.i.h.bf16 %v4414_v18  ;;  %v4415_v16 = vunpack.i.l.bf16 %v4414_v18  ;;  %v1727_v30 = vsel %vm1714_vm3, %v1677_v44, %v4405_v8  ;;  %v1728_v31 = vsel %vm1714_vm3, %v1678_v13, %v4406_v62  ;;  %v6422_v44 = vld [vmem:[%s7957_s0 + $0x508] sm:$0xff]  ;;  %v6427_v18 = vld [vmem:[%s7957_s0 + $0x518] sm:$0xff] }
  0xdc   :  { %v4411_v14 = vunpack.i.h.bf16 %v4409_v28  ;;  %v4410_v46 = vunpack.i.l.bf16 %v4409_v28  ;;  %4703 = vrot.lane.b32.xlu1 %v6329_v10, %s5405_s30  ;;  %v4742_v8 = vpack.i.bf16 %v6399_v54, %v189_v53  ;;  %v4737_v13 = vpack.i.bf16 %v6406_v52, %v176_v41  ;;  %v5363_v28 = vld [vmem:[%s7957_s0 + $0x210] sm:$0xff] }
  0xdd   :  { %4698 = vrot.lane.b32.xlu0 %v4697_v21, %s5406_s12 }
  0xde   :  { %v1777_v33 = vsel %vm1764_vm4, %v1727_v30, %v4410_v46  ;;  %v1778_v15 = vsel %vm1764_vm4, %v1728_v31, %v4411_v14  ;;  %v4424_v17 = vpop.permute.xlu1 %4423  ;;  %v5364_v46 = vld [vmem:[%s7957_s0 + $0x200] sm:$0xff]  ;;  %v4752_v31 = vpack.i.bf16 %v6417_v27, %v6399_v54 }
  0xdf   :  { %v4419_v32 = vpop.permute.xlu0 %4418  ;;  %v4426_v38 = vunpack.i.h.bf16 %v4424_v17  ;;  %v4425_v5 = vunpack.i.l.bf16 %v4424_v17  ;;  %v1827_v39 = vsel %vm1814_vm5, %v1777_v33, %v4415_v16  ;;  %v1828_v4 = vsel %vm1814_vm5, %v1778_v15, %v4416_v60 }
  0xe0   :  { %v4421_v35 = vunpack.i.h.bf16 %v4419_v32  ;;  %v4420_v37 = vunpack.i.l.bf16 %v4419_v32  ;;  %4713 = vrot.lane.b32.xlu1 %v4712_v59, %s5407_s25  ;;  %v4747_v33 = vpack.i.bf16 %v6427_v18, %v6422_v44 }
  0xe1   :  { %4708 = vrot.lane.b32.xlu0 %v4707_v29, %s5408_s26 }
  0xe2   :  { %v1877_v9 = vsel %vm1864_vm6, %v1827_v39, %v4420_v37  ;;  %v1878_v23 = vsel %vm1864_vm6, %v1828_v4, %v4421_v35  ;;  %v4434_v0 = vpop.permute.xlu1 %4433  ;;  %v4757_v39 = vpack.i.bf16 %v6258_v6, %v6194_v24  ;;  %v181_v24 = vld [vmem:[%s7957_s0 + $0x4b8] sm:$0xff] }
  0xe3   :  { %v4436_v43 = vunpack.i.h.bf16 %v4434_v0  ;;  %v4435_v36 = vunpack.i.l.bf16 %v4434_v0  ;;  %v4429_v45 = vpop.permute.xlu0 %4428  ;;  %v1927_v34 = vsel %vm1914_vm7, %v1877_v9, %v4425_v5  ;;  %v1928_v50 = vsel %vm1914_vm7, %v1878_v23, %v4426_v38 }
  0xe4   :  { %v4431_v47 = vunpack.i.h.bf16 %v4429_v45  ;;  %v4430_v48 = vunpack.i.l.bf16 %v4429_v45  ;;  %4723 = vrot.lane.b32.xlu1 %v6184_v7, %s5403_s23 }
  0xe5   :  { %4718 = vrot.lane.b32.xlu0 %v4717_v20, %s5401_s15 }
  0xe6   :  { %v1977_v40 = vsel %vm1964_vm8, %v1927_v34, %v4430_v48  ;;  %v1978_v7 = vsel %vm1964_vm8, %v1928_v50, %v4431_v47  ;;  %v4444_v11 = vpop.permute.xlu1 %4443  ;;  %v4772_v50 = vpack.i.bf16 %v181_v24, %v179_v57 }
  0xe7   :  { %v4439_v58 = vpop.permute.xlu0 %4438  ;;  %v2027_v63 = vsel %vm2014_vm9, %v1977_v40, %v4435_v36  ;;  %v2028_v1 = vsel %vm2014_vm9, %v1978_v7, %v4436_v43  ;;  %v4446_v21 = vunpack.i.h.bf16 %v4444_v11  ;;  %v4445_v26 = vunpack.i.l.bf16 %v4444_v11  ;;  %v180_v36 = vld [vmem:[%s7957_s0 + $0x4b0] sm:$0xff] }
  0xe8   :  { %v4441_v61 = vunpack.i.h.bf16 %v4439_v58  ;;  %v4440_v56 = vunpack.i.l.bf16 %v4439_v58  ;;  %4733 = vrot.lane.b32.xlu1 %v4732_v49, %s5402_s22  ;;  %v2070_v62 = vpack.c.bf16 %v2028_v1, %v2027_v63  ;;  %v4767_v40 = vpack.i.bf16 %v180_v36, %v6406_v52  ;;  %v195_v7 = vld [vmem:[%s7957_s0 + $0x530] sm:$0xff] }
  0xe9   :  { %4728 = vrot.lane.b32.xlu0 %v4727_v51, %s5400_s14 }
  0xea   :  { %v1680_v14 = vsel %vm1664_vm2, %v5363_v28, %v4441_v61  ;;  %v1679_v59 = vsel %vm1664_vm2, %v5364_v46, %v4440_v56  ;;  %4057 = vmatmul.mubr.msk.bf16.gmra.mrb[24].mxu0 %vm2116_vm10, %v2070_v62  ;;  %v4454_v29 = vpop.permute.xlu1 %4453  ;;  %v6499_v46 = vld [vmem:[%s7957_s0 + $0x528] sm:$0xff] }
  0xeb   :  { %v4449_v60 = vpop.permute.xlu0 %4448  ;;  %4060 = vmatprep.mubr.msk.bf16.mxu0 %vm5404_vm0, %v5399_v2  ;;  %v4456_v15 = vunpack.i.h.bf16 %v4454_v29  ;;  %v4455_v17 = vunpack.i.l.bf16 %v4454_v29  ;;  %v1729_v32 = vsel %vm1714_vm3, %v1679_v59, %v4445_v26  ;;  %v1730_v20 = vsel %vm1714_vm3, %v1680_v14, %v4446_v21  ;;  %v6494_v14 = vld [vmem:[%s7957_s0 + $0x540] sm:$0xff]  ;;  %v5365_v59 = vld [vmem:[%s7957_s0 + $0x230] sm:$0xff] }
  0xec   :  { %v4451_v16 = vunpack.i.h.bf16 %v4449_v60  ;;  %v4450_v30 = vunpack.i.l.bf16 %v4449_v60  ;;  %4743 = vrot.lane.b32.xlu1 %v4742_v8, %s5405_s30  ;;  %v6487_v21 = vpack.i.bf16 %v195_v7, %v6417_v27  ;;  %v6504_v27 = vld [vmem:[%s7957_s0 + $0x538] sm:$0xff]  ;;  %v5366_v60 = vld [vmem:[%s7957_s0 + $0x220] sm:$0xff] }
  0xed   :  { %4738 = vrot.lane.b32.xlu0 %v4737_v13, %s5406_s12 }
  0xee   :  { %v1779_v35 = vsel %vm1764_vm4, %v1729_v32, %v4450_v30  ;;  %v1780_v37 = vsel %vm1764_vm4, %v1730_v20, %v4451_v16  ;;  %v4464_v38 = vpop.permute.xlu1 %4463  ;;  %v4787_v32 = vpack.i.bf16 %v6504_v27, %v6499_v46 }
  0xef   :  { %v4459_v5 = vpop.permute.xlu0 %4458  ;;  %v4466_v42 = vunpack.i.h.bf16 %v4464_v38  ;;  %v4465_v9 = vunpack.i.l.bf16 %v4464_v38  ;;  %v1829_v23 = vsel %vm1814_vm5, %v1779_v35, %v4455_v17  ;;  %v1830_v0 = vsel %vm1814_vm5, %v1780_v37, %v4456_v15 }
  0xf0   :  { %v4461_v4 = vunpack.i.h.bf16 %v4459_v5  ;;  %v4460_v55 = vunpack.i.l.bf16 %v4459_v5  ;;  %4753 = vrot.lane.b32.xlu1 %v4752_v31, %s5407_s25  ;;  %v4792_v17 = vpack.i.bf16 %v6494_v14, %v195_v7 }
  0xf1   :  { %4748 = vrot.lane.b32.xlu0 %v4747_v33, %s5408_s26 }
  0xf2   :  { %v1879_v6 = vsel %vm1864_vm6, %v1829_v23, %v4460_v55  ;;  %v1880_v41 = vsel %vm1864_vm6, %v1830_v0, %v4461_v4  ;;  %v4474_v43 = vpop.permute.xlu1 %4473  ;;  %v4797_v23 = vpack.i.bf16 %v6340_v25, %v6270_v12 }
  0xf3   :  { %v4476_v45 = vunpack.i.h.bf16 %v4474_v43  ;;  %v4475_v47 = vunpack.i.l.bf16 %v4474_v43  ;;  %v4469_v48 = vpop.permute.xlu0 %4468  ;;  %v1929_v51 = vsel %vm1914_vm7, %v1879_v6, %v4465_v9  ;;  %v1930_v53 = vsel %vm1914_vm7, %v1880_v41, %v4466_v42  ;;  %v183_v41 = vld [vmem:[%s7957_s0 + $0x4c8] sm:$0xff]  ;;  %v185_v43 = vld [vmem:[%s7957_s0 + $0x4d8] sm:$0xff] }
  0xf4   :  { %v4471_v49 = vunpack.i.h.bf16 %v4469_v48  ;;  %v4470_v34 = vunpack.i.l.bf16 %v4469_v48  ;;  %4763 = vrot.lane.b32.xlu1 %v6253_v3, %s5403_s23  ;;  %v6481_v3 = vld [vmem:[%s7957_s0 + $0x4c0] sm:$0xff] }
  0xf5   :  { %4758 = vrot.lane.b32.xlu0 %v4757_v39, %s5401_s15  ;;  %v4777_v28 = vpack.i.bf16 %v6481_v3, %v180_v36 }
  0xf6   :  { %v1979_v11 = vsel %vm1964_vm8, %v1929_v51, %v4470_v34  ;;  %v1980_v58 = vsel %vm1964_vm8, %v1930_v53, %v4471_v49  ;;  %v4484_v63 = vpop.permute.xlu1 %4483  ;;  %v4812_v51 = vpack.i.bf16 %v185_v43, %v183_v41 }
  0xf7   :  { %v4479_v1 = vpop.permute.xlu0 %4478  ;;  %v2029_v61 = vsel %vm2014_vm9, %v1979_v11, %v4475_v47  ;;  %v2030_v56 = vsel %vm2014_vm9, %v1980_v58, %v4476_v45  ;;  %v4486_v26 = vunpack.i.h.bf16 %v4484_v63  ;;  %v4485_v13 = vunpack.i.l.bf16 %v4484_v63  ;;  %v184_v45 = vld [vmem:[%s7957_s0 + $0x4d0] sm:$0xff] }
  0xf8   :  { %v4481_v52 = vunpack.i.h.bf16 %v4479_v1  ;;  %v4480_v62 = vunpack.i.l.bf16 %v4479_v1  ;;  %4773 = vrot.lane.b32.xlu1 %v4772_v50, %s5402_s22  ;;  %v2071_v8 = vpack.c.bf16 %v2030_v56, %v2029_v61  ;;  %v4807_v7 = vpack.i.bf16 %v184_v45, %v6481_v3  ;;  %v199_v11 = vld [vmem:[%s7957_s0 + $0x550] sm:$0xff] }
  0xf9   :  { %4768 = vrot.lane.b32.xlu0 %v4767_v40, %s5400_s14 }
  0xfa   :  { %v1682_v29 = vsel %vm1664_vm2, %v5365_v59, %v4481_v52  ;;  %v1681_v16 = vsel %vm1664_vm2, %v5366_v60, %v4480_v62  ;;  %4061 = vmatmul.mubr.msk.bf16.gmra.mrb[28].mxu0 %vm2116_vm10, %v2071_v8  ;;  %v4494_v30 = vpop.permute.xlu1 %4493  ;;  %v6576_v60 = vld [vmem:[%s7957_s0 + $0x548] sm:$0xff] }
  0xfb   :  { %v4489_v31 = vpop.permute.xlu0 %4488  ;;  %4064 = vmatprep.mubr.msk.bf16.mxu0 %vm5404_vm0, %v5399_v2  ;;  %v4496_v20 = vunpack.i.h.bf16 %v4494_v30  ;;  %v4495_v35 = vunpack.i.l.bf16 %v4494_v30  ;;  %v1731_v37 = vsel %vm1714_vm3, %v1681_v16, %v4485_v13  ;;  %v1732_v38 = vsel %vm1714_vm3, %v1682_v29, %v4486_v26  ;;  %v6571_v29 = vld [vmem:[%s7957_s0 + $0x560] sm:$0xff]  ;;  %v5367_v16 = vld [vmem:[%s7957_s0 + $0x250] sm:$0xff] }
  0xfc   :  { %v4491_v33 = vunpack.i.h.bf16 %v4489_v31  ;;  %v4490_v15 = vunpack.i.l.bf16 %v4489_v31  ;;  %4783 = vrot.lane.b32.xlu1 %v6487_v21, %s5405_s30  ;;  %v6564_v26 = vpack.i.bf16 %v199_v11, %v6494_v14  ;;  %v6581_v14 = vld [vmem:[%s7957_s0 + $0x558] sm:$0xff]  ;;  %v5368_v31 = vld [vmem:[%s7957_s0 + $0x240] sm:$0xff] }
  0xfd   :  { %4778 = vrot.lane.b32.xlu0 %v4777_v28, %s5406_s12 }
  0xfe   :  { %v1781_v5 = vsel %vm1764_vm4, %v1731_v37, %v4490_v15  ;;  %v1782_v39 = vsel %vm1764_vm4, %v1732_v38, %v4491_v33  ;;  %v4504_v4 = vpop.permute.xlu1 %4503  ;;  %v4827_v37 = vpack.i.bf16 %v6581_v14, %v6576_v60 }
  0xff   :  { %v4499_v55 = vpop.permute.xlu0 %4498  ;;  %v4506_v0 = vunpack.i.h.bf16 %v4504_v4  ;;  %v4505_v57 = vunpack.i.l.bf16 %v4504_v4  ;;  %v1831_v24 = vsel %vm1814_vm5, %v1781_v5, %v4495_v35  ;;  %v1832_v6 = vsel %vm1814_vm5, %v1782_v39, %v4496_v20 }
 0x100   :  { %v4501_v42 = vunpack.i.h.bf16 %v4499_v55  ;;  %v4500_v9 = vunpack.i.l.bf16 %v4499_v55  ;;  %4793 = vrot.lane.b32.xlu1 %v4792_v17, %s5407_s25  ;;  %v4832_v35 = vpack.i.bf16 %v6571_v29, %v199_v11  ;;  %v219_v11 = vld [vmem:[%s7957_s0 + $0x600] sm:$0xff] }
 0x101   :  { %4788 = vrot.lane.b32.xlu0 %v4787_v32, %s5408_s26 }
 0x102   :  { %v1881_v36 = vsel %vm1864_vm6, %v1831_v24, %v4500_v9  ;;  %v1882_v12 = vsel %vm1864_vm6, %v1832_v6, %v4501_v42  ;;  %v4514_v25 = vpop.permute.xlu1 %4513  ;;  %v4842_v24 = vpack.i.bf16 %v6399_v54, %v6335_v22  ;;  %v4837_v6 = vpack.i.bf16 %v6422_v44, %v6345_v19  ;;  %v204_v44 = vld [vmem:[%s7957_s0 + $0x580] sm:$0xff] }
 0x103   :  { %v4516_v47 = vunpack.i.h.bf16 %v4514_v25  ;;  %v4515_v48 = vunpack.i.l.bf16 %v4514_v25  ;;  %v4509_v49 = vpop.permute.xlu0 %4508  ;;  %v1931_v53 = vsel %vm1914_vm7, %v1881_v36, %v4505_v57  ;;  %v1932_v40 = vsel %vm1914_vm7, %v1882_v12, %v4506_v0  ;;  %v187_v25 = vld [vmem:[%s7957_s0 + $0x4e8] sm:$0xff] }
 0x104   :  { %v4511_v34 = vunpack.i.h.bf16 %v4509_v49  ;;  %v4510_v50 = vunpack.i.l.bf16 %v4509_v49  ;;  %4803 = vrot.lane.b32.xlu1 %v6329_v10, %s5403_s23  ;;  %v6558_v10 = vld [vmem:[%s7957_s0 + $0x4e0] sm:$0xff] }
 0x105   :  { %4798 = vrot.lane.b32.xlu0 %v4797_v23, %s5401_s15  ;;  %v4817_v59 = vpack.i.bf16 %v6558_v10, %v184_v45  ;;  %v205_v45 = vld [vmem:[%s7957_s0 + $0x588] sm:$0xff] }
 0x106   :  { %v1981_v58 = vsel %vm1964_vm8, %v1931_v53, %v4510_v50  ;;  %v1982_v63 = vsel %vm1964_vm8, %v1932_v40, %v4511_v34  ;;  %v4524_v1 = vpop.permute.xlu1 %4523 }
 0x107   :  { %v4519_v61 = vpop.permute.xlu0 %4518  ;;  %v2031_v56 = vsel %vm2014_vm9, %v1981_v58, %v4515_v48  ;;  %v2032_v52 = vsel %vm2014_vm9, %v1982_v63, %v4516_v47  ;;  %v4526_v13 = vunpack.i.h.bf16 %v4524_v1  ;;  %v4525_v28 = vunpack.i.l.bf16 %v4524_v1 }
 0x108   :  { %v4521_v3 = vunpack.i.h.bf16 %v4519_v61  ;;  %v4520_v62 = vunpack.i.l.bf16 %v4519_v61  ;;  %4813 = vrot.lane.b32.xlu1 %v4812_v51, %s5402_s22  ;;  %v2072_v8 = vpack.c.bf16 %v2032_v52, %v2031_v56  ;;  %v4852_v51 = vpack.i.bf16 %v205_v45, %v187_v25  ;;  %v188_v61 = vld [vmem:[%s7957_s0 + $0x4f0] sm:$0xff] }
 0x109   :  { %4808 = vrot.lane.b32.xlu0 %v4807_v7, %s5400_s14  ;;  %v4847_v7 = vpack.i.bf16 %v204_v44, %v6558_v10  ;;  %v6639_v56 = vld [vmem:[%s7957_s0 + $0x590] sm:$0xff]  ;;  %v4877_v25 = vpack.i.bf16 %v6499_v46, %v6427_v18  ;;  %v207_v44 = vld [vmem:[%s7957_s0 + $0x598] sm:$0xff] }
 0x10a   :  { %v1684_v30 = vsel %vm1664_vm2, %v5367_v16, %v4521_v3  ;;  %v1683_v33 = vsel %vm1664_vm2, %v5368_v31, %v4520_v62  ;;  %4065 = vmatmul.mubr.msk.bf16.gmra.mrb[32].mxu0 %vm2116_vm10, %v2072_v8  ;;  %v4534_v15 = vpop.permute.xlu1 %4533  ;;  %v4857_v31 = vpack.i.bf16 %v6639_v56, %v188_v61 }
 0x10b   :  { %v4529_v17 = vpop.permute.xlu0 %4528  ;;  %4068 = vmatprep.mubr.msk.bf16.mxu0 %vm5404_vm0, %v5399_v2  ;;  %v4536_v38 = vunpack.i.h.bf16 %v4534_v15  ;;  %v4535_v5 = vunpack.i.l.bf16 %v4534_v15  ;;  %v1733_v39 = vsel %vm1714_vm3, %v1683_v33, %v4525_v28  ;;  %v1734_v4 = vsel %vm1714_vm3, %v1684_v30, %v4526_v13  ;;  %v6655_v33 = vld [vmem:[%s7957_s0 + $0x610] sm:$0xff]  ;;  %v6660_v15 = vld [vmem:[%s7957_s0 + $0x568] sm:$0xff] }
 0x10c   :  { %v4531_v32 = vunpack.i.h.bf16 %v4529_v17  ;;  %v4530_v20 = vunpack.i.l.bf16 %v4529_v17  ;;  %4823 = vrot.lane.b32.xlu1 %v6564_v26, %s5405_s30  ;;  %v4862_v28 = vpack.i.bf16 %v219_v11, %v6571_v29  ;;  %v6665_v17 = vld [vmem:[%s7957_s0 + $0x608] sm:$0xff] }
 0x10d   :  { %4818 = vrot.lane.b32.xlu0 %v4817_v59, %s5406_s12  ;;  %v6648_v59 = vld [vmem:[%s7957_s0 + $0x570] sm:$0xff] }
 0x10e   :  { %v1783_v55 = vsel %vm1764_vm4, %v1733_v39, %v4530_v20  ;;  %v1784_v42 = vsel %vm1764_vm4, %v1734_v4, %v4531_v32  ;;  %v4544_v9 = vpop.permute.xlu1 %4543  ;;  %v5369_v32 = vld [vmem:[%s7957_s0 + $0x300] sm:$0xff] }
 0x10f   :  { %v4539_v23 = vpop.permute.xlu0 %4538  ;;  %v4546_v41 = vunpack.i.h.bf16 %v4544_v9  ;;  %v4545_v43 = vunpack.i.l.bf16 %v4544_v9  ;;  %v1833_v36 = vsel %vm1814_vm5, %v1783_v55, %v4535_v5  ;;  %v1834_v12 = vsel %vm1814_vm5, %v1784_v42, %v4536_v38 }
 0x110   :  { %v4541_v0 = vunpack.i.h.bf16 %v4539_v23  ;;  %v4540_v57 = vunpack.i.l.bf16 %v4539_v23  ;;  %4833 = vrot.lane.b32.xlu1 %v4832_v35, %s5407_s25  ;;  %v5370_v35 = vld [vmem:[%s7957_s0 + $0x260] sm:$0xff]  ;;  %v4872_v55 = vpack.i.bf16 %v6655_v33, %v6648_v59  ;;  %v4867_v42 = vpack.i.bf16 %v6665_v17, %v6660_v15 }
 0x111   :  { %4828 = vrot.lane.b32.xlu0 %v4827_v37, %s5408_s26 }
 0x112   :  { %v1883_v22 = vsel %vm1864_vm6, %v1833_v36, %v4540_v57  ;;  %v1884_v19 = vsel %vm1864_vm6, %v1834_v12, %v4541_v0  ;;  %v4554_v54 = vpop.permute.xlu1 %4553 }
 0x113   :  { %v4556_v47 = vunpack.i.h.bf16 %v4554_v54  ;;  %v4555_v48 = vunpack.i.l.bf16 %v4554_v54  ;;  %v4549_v49 = vpop.permute.xlu0 %4548  ;;  %v1933_v53 = vsel %vm1914_vm7, %v1883_v22, %v4545_v43  ;;  %v1934_v40 = vsel %vm1914_vm7, %v1884_v19, %v4546_v41 }
 0x114   :  { %v4551_v34 = vunpack.i.h.bf16 %v4549_v49  ;;  %v4550_v50 = vunpack.i.l.bf16 %v4549_v49  ;;  %4843 = vrot.lane.b32.xlu1 %v4842_v24, %s5403_s23  ;;  %v208_v49 = vld [vmem:[%s7957_s0 + $0x5a0] sm:$0xff] }
 0x115   :  { %4838 = vrot.lane.b32.xlu0 %v4837_v6, %s5401_s15 }
 0x116   :  { %v1983_v58 = vsel %vm1964_vm8, %v1933_v53, %v4550_v50  ;;  %v1984_v63 = vsel %vm1964_vm8, %v1934_v40, %v4551_v34  ;;  %v4564_v1 = vpop.permute.xlu1 %4563 }
 0x117   :  { %v4559_v52 = vpop.permute.xlu0 %4558  ;;  %v2033_v10 = vsel %vm2014_vm9, %v1983_v58, %v4555_v48  ;;  %v2034_v3 = vsel %vm2014_vm9, %v1984_v63, %v4556_v47  ;;  %v4566_v16 = vunpack.i.h.bf16 %v4564_v1  ;;  %v4565_v30 = vunpack.i.l.bf16 %v4564_v1  ;;  %v209_v47 = vld [vmem:[%s7957_s0 + $0x5a8] sm:$0xff]  ;;  %v223_v1 = vld [vmem:[%s7957_s0 + $0x620] sm:$0xff] }
 0x118   :  { %v4561_v62 = vunpack.i.h.bf16 %v4559_v52  ;;  %v4560_v8 = vunpack.i.l.bf16 %v4559_v52  ;;  %4853 = vrot.lane.b32.xlu1 %v4852_v51, %s5402_s22  ;;  %v2073_v13 = vpack.c.bf16 %v2034_v3, %v2033_v10  ;;  %v4887_v63 = vpack.i.bf16 %v208_v49, %v6639_v56 }
 0x119   :  { %4848 = vrot.lane.b32.xlu0 %v4847_v7, %s5400_s14  ;;  %v4892_v7 = vpack.i.bf16 %v209_v47, %v207_v44 }
 0x11a   :  { %v1686_v20 = vsel %vm1664_vm2, %v5369_v32, %v4561_v62  ;;  %v1685_v37 = vsel %vm1664_vm2, %v5370_v35, %v4560_v8  ;;  %4069 = vmatmul.mubr.msk.bf16.gmra.mrb[36].mxu0 %vm2116_vm10, %v2073_v13  ;;  %v4574_v38 = vpop.permute.xlu1 %4573  ;;  %v6737_v35 = vld [vmem:[%s7957_s0 + $0x618] sm:$0xff] }
 0x11b   :  { %v4569_v5 = vpop.permute.xlu0 %4568  ;;  %4072 = vmatprep.mubr.msk.bf16.mxu0 %vm5404_vm0, %v5399_v2  ;;  %v4576_v9 = vunpack.i.h.bf16 %v4574_v38  ;;  %v4575_v23 = vunpack.i.l.bf16 %v4574_v38  ;;  %v1735_v0 = vsel %vm1714_vm3, %v1685_v37, %v4565_v30  ;;  %v1736_v57 = vsel %vm1714_vm3, %v1686_v20, %v4566_v16  ;;  %v6732_v20 = vld [vmem:[%s7957_s0 + $0x630] sm:$0xff]  ;;  %v5371_v37 = vld [vmem:[%s7957_s0 + $0x320] sm:$0xff] }
 0x11c   :  { %v4571_v39 = vunpack.i.h.bf16 %v4569_v5  ;;  %v4570_v4 = vunpack.i.l.bf16 %v4569_v5  ;;  %4863 = vrot.lane.b32.xlu1 %v4862_v28, %s5405_s30  ;;  %v6725_v16 = vpack.i.bf16 %v223_v1, %v6655_v33  ;;  %v6742_v33 = vld [vmem:[%s7957_s0 + $0x628] sm:$0xff]  ;;  %v5372_v5 = vld [vmem:[%s7957_s0 + $0x310] sm:$0xff] }
 0x11d   :  { %4858 = vrot.lane.b32.xlu0 %v4857_v31, %s5406_s12 }
 0x11e   :  { %v1785_v24 = vsel %vm1764_vm4, %v1735_v0, %v4570_v4  ;;  %v1786_v6 = vsel %vm1764_vm4, %v1736_v57, %v4571_v39  ;;  %v4584_v41 = vpop.permute.xlu1 %4583  ;;  %v4907_v0 = vpack.i.bf16 %v6742_v33, %v6737_v35 }
 0x11f   :  { %v4579_v43 = vpop.permute.xlu0 %4578  ;;  %v4586_v45 = vunpack.i.h.bf16 %v4584_v41  ;;  %v4585_v22 = vunpack.i.l.bf16 %v4584_v41  ;;  %v1835_v19 = vsel %vm1814_vm5, %v1785_v24, %v4575_v23  ;;  %v1836_v54 = vsel %vm1814_vm5, %v1786_v6, %v4576_v9 }
 0x120   :  { %v4581_v36 = vunpack.i.h.bf16 %v4579_v43  ;;  %v4580_v12 = vunpack.i.l.bf16 %v4579_v43  ;;  %4873 = vrot.lane.b32.xlu1 %v4872_v55, %s5407_s25  ;;  %v4912_v23 = vpack.i.bf16 %v6732_v20, %v223_v1 }
 0x121   :  { %4868 = vrot.lane.b32.xlu0 %v4867_v42, %s5408_s26 }
 0x122   :  { %v1885_v48 = vsel %vm1864_vm6, %v1835_v19, %v4580_v12  ;;  %v1886_v18 = vsel %vm1864_vm6, %v1836_v54, %v4581_v36  ;;  %v4594_v46 = vpop.permute.xlu1 %4593  ;;  %v4917_v19 = vpack.i.bf16 %v6576_v60, %v6504_v27 }
 0x123   :  { %v4596_v34 = vunpack.i.h.bf16 %v4594_v46  ;;  %v4595_v50 = vunpack.i.l.bf16 %v4594_v46  ;;  %v4589_v51 = vpop.permute.xlu0 %4588  ;;  %v1935_v11 = vsel %vm1914_vm7, %v1885_v48, %v4585_v22  ;;  %v1936_v58 = vsel %vm1914_vm7, %v1886_v18, %v4586_v45  ;;  %v211_v18 = vld [vmem:[%s7957_s0 + $0x5b8] sm:$0xff]  ;;  %v213_v46 = vld [vmem:[%s7957_s0 + $0x5c8] sm:$0xff] }
 0x124   :  { %v4591_v53 = vunpack.i.h.bf16 %v4589_v51  ;;  %v4590_v40 = vunpack.i.l.bf16 %v4589_v51  ;;  %4883 = vrot.lane.b32.xlu1 %v6487_v21, %s5403_s23  ;;  %v6719_v21 = vld [vmem:[%s7957_s0 + $0x5b0] sm:$0xff] }
 0x125   :  { %4878 = vrot.lane.b32.xlu0 %v4877_v25, %s5401_s15  ;;  %v4897_v32 = vpack.i.bf16 %v6719_v21, %v208_v49 }
 0x126   :  { %v1985_v61 = vsel %vm1964_vm8, %v1935_v11, %v4590_v40  ;;  %v1986_v52 = vsel %vm1964_vm8, %v1936_v58, %v4591_v53  ;;  %v4604_v10 = vpop.permute.xlu1 %4603  ;;  %v4932_v11 = vpack.i.bf16 %v213_v46, %v211_v18 }
 0x127   :  { %v4599_v3 = vpop.permute.xlu0 %4598  ;;  %v2035_v62 = vsel %vm2014_vm9, %v1985_v61, %v4595_v50  ;;  %v2036_v8 = vsel %vm2014_vm9, %v1986_v52, %v4596_v34  ;;  %v4606_v30 = vunpack.i.h.bf16 %v4604_v10  ;;  %v4605_v31 = vunpack.i.l.bf16 %v4604_v10  ;;  %v212_v34 = vld [vmem:[%s7957_s0 + $0x5c0] sm:$0xff] }
 0x128   :  { %v4601_v56 = vunpack.i.h.bf16 %v4599_v3  ;;  %v4600_v13 = vunpack.i.l.bf16 %v4599_v3  ;;  %4893 = vrot.lane.b32.xlu1 %v4892_v7, %s5402_s22  ;;  %v2074_v28 = vpack.c.bf16 %v2036_v8, %v2035_v62  ;;  %v4927_v1 = vpack.i.bf16 %v212_v34, %v6719_v21  ;;  %v227_v61 = vld [vmem:[%s7957_s0 + $0x640] sm:$0xff] }
 0x129   :  { %4888 = vrot.lane.b32.xlu0 %v4887_v63, %s5400_s14 }
 0x12a   :  { %v1688_v38 = vsel %vm1664_vm2, %v5371_v37, %v4601_v56  ;;  %v1687_v39 = vsel %vm1664_vm2, %v5372_v5, %v4600_v13  ;;  %4073 = vmatmul.mubr.msk.bf16.gmra.mrb[40].mxu0 %vm2116_vm10, %v2074_v28  ;;  %v4614_v4 = vpop.permute.xlu1 %4613  ;;  %v6814_v5 = vld [vmem:[%s7957_s0 + $0x638] sm:$0xff] }
 0x12b   :  { %v4609_v55 = vpop.permute.xlu0 %4608  ;;  %4076 = vmatprep.mubr.msk.bf16.mxu0 %vm5404_vm0, %v5399_v2  ;;  %v4616_v57 = vunpack.i.h.bf16 %v4614_v4  ;;  %v4615_v24 = vunpack.i.l.bf16 %v4614_v4  ;;  %v1737_v6 = vsel %vm1714_vm3, %v1687_v39, %v4605_v31  ;;  %v1738_v41 = vsel %vm1714_vm3, %v1688_v38, %v4606_v30  ;;  %v6809_v38 = vld [vmem:[%s7957_s0 + $0x650] sm:$0xff]  ;;  %v5373_v39 = vld [vmem:[%s7957_s0 + $0x340] sm:$0xff] }
 0x12c   :  { %v4611_v42 = vunpack.i.h.bf16 %v4609_v55  ;;  %v4610_v9 = vunpack.i.l.bf16 %v4609_v55  ;;  %4903 = vrot.lane.b32.xlu1 %v6725_v16, %s5405_s30  ;;  %v6802_v30 = vpack.i.bf16 %v227_v61, %v6732_v20  ;;  %v6819_v20 = vld [vmem:[%s7957_s0 + $0x648] sm:$0xff]  ;;  %v5374_v55 = vld [vmem:[%s7957_s0 + $0x330] sm:$0xff] }
 0x12d   :  { %4898 = vrot.lane.b32.xlu0 %v4897_v32, %s5406_s12 }
 0x12e   :  { %v1787_v43 = vsel %vm1764_vm4, %v1737_v6, %v4610_v9  ;;  %v1788_v36 = vsel %vm1764_vm4, %v1738_v41, %v4611_v42  ;;  %v4624_v12 = vpop.permute.xlu1 %4623  ;;  %v4947_v6 = vpack.i.bf16 %v6819_v20, %v6814_v5 }
 0x12f   :  { %v4619_v25 = vpop.permute.xlu0 %4618  ;;  %v4626_v54 = vunpack.i.h.bf16 %v4624_v12  ;;  %v4625_v44 = vunpack.i.l.bf16 %v4624_v12  ;;  %v1837_v47 = vsel %vm1814_vm5, %v1787_v43, %v4615_v24  ;;  %v1838_v48 = vsel %vm1814_vm5, %v1788_v36, %v4616_v57 }
 0x130   :  { %v4621_v45 = vunpack.i.h.bf16 %v4619_v25  ;;  %v4620_v22 = vunpack.i.l.bf16 %v4619_v25  ;;  %4913 = vrot.lane.b32.xlu1 %v4912_v23, %s5407_s25  ;;  %v4952_v24 = vpack.i.bf16 %v6809_v38, %v227_v61  ;;  %v231_v61 = vld [vmem:[%s7957_s0 + $0x660] sm:$0xff] }
 0x131   :  { %4908 = vrot.lane.b32.xlu0 %v4907_v0, %s5408_s26 }
 0x132   :  { %v1887_v49 = vsel %vm1864_vm6, %v1837_v47, %v4620_v22  ;;  %v1888_v27 = vsel %vm1864_vm6, %v1838_v48, %v4621_v45  ;;  %v4634_v60 = vpop.permute.xlu1 %4633  ;;  %v4962_v47 = vpack.i.bf16 %v6648_v59, %v6571_v29  ;;  %v4957_v48 = vpack.i.bf16 %v6660_v15, %v6581_v14  ;;  %v216_v15 = vld [vmem:[%s7957_s0 + $0x5e0] sm:$0xff] }
 0x133   :  { %v4636_v50 = vunpack.i.h.bf16 %v4634_v60  ;;  %v4635_v51 = vunpack.i.l.bf16 %v4634_v60  ;;  %v4629_v53 = vpop.permute.xlu0 %4628  ;;  %v1937_v58 = vsel %vm1914_vm7, %v1887_v49, %v4625_v44  ;;  %v1938_v63 = vsel %vm1914_vm7, %v1888_v27, %v4626_v54  ;;  %v215_v60 = vld [vmem:[%s7957_s0 + $0x5d8] sm:$0xff] }
 0x134   :  { %v4631_v40 = vunpack.i.h.bf16 %v4629_v53  ;;  %v4630_v7 = vunpack.i.l.bf16 %v4629_v53  ;;  %4923 = vrot.lane.b32.xlu1 %v6564_v26, %s5403_s23  ;;  %v6796_v26 = vld [vmem:[%s7957_s0 + $0x5d0] sm:$0xff] }
 0x135   :  { %4918 = vrot.lane.b32.xlu0 %v4917_v19, %s5401_s15  ;;  %v4937_v37 = vpack.i.bf16 %v6796_v26, %v212_v34  ;;  %v217_v34 = vld [vmem:[%s7957_s0 + $0x5e8] sm:$0xff] }
 0x136   :  { %v1987_v52 = vsel %vm1964_vm8, %v1937_v58, %v4630_v7  ;;  %v1988_v10 = vsel %vm1964_vm8, %v1938_v63, %v4631_v40  ;;  %v4644_v3 = vpop.permute.xlu1 %4643 }
 0x137   :  { %v4639_v62 = vpop.permute.xlu0 %4638  ;;  %v2037_v8 = vsel %vm2014_vm9, %v1987_v52, %v4635_v51  ;;  %v2038_v56 = vsel %vm2014_vm9, %v1988_v10, %v4636_v50  ;;  %v4646_v31 = vunpack.i.h.bf16 %v4644_v3  ;;  %v4645_v32 = vunpack.i.l.bf16 %v4644_v3 }
 0x138   :  { %v4641_v21 = vunpack.i.h.bf16 %v4639_v62  ;;  %v4640_v13 = vunpack.i.l.bf16 %v4639_v62  ;;  %4933 = vrot.lane.b32.xlu1 %v4932_v11, %s5402_s22  ;;  %v2075_v28 = vpack.c.bf16 %v2038_v56, %v2037_v8  ;;  %v4972_v11 = vpack.i.bf16 %v217_v34, %v215_v60  ;;  %v218_v62 = vld [vmem:[%s7957_s0 + $0x5f0] sm:$0xff] }
 0x139   :  { %4928 = vrot.lane.b32.xlu0 %v4927_v1, %s5400_s14  ;;  %v4967_v1 = vpack.i.bf16 %v216_v15, %v6796_v26 }
 0x13a   :  { %v1690_v4 = vsel %vm1664_vm2, %v5373_v39, %v4641_v21  ;;  %v1689_v42 = vsel %vm1664_vm2, %v5374_v55, %v4640_v13  ;;  %4077 = vmatmul.mubr.msk.bf16.gmra.mrb[44].mxu0 %vm2116_vm10, %v2075_v28  ;;  %v4654_v9 = vpop.permute.xlu1 %4653  ;;  %v4977_v39 = vpack.i.bf16 %v218_v62, %v216_v15  ;;  %v6889_v55 = vld [vmem:[%s7957_s0 + $0x658] sm:$0xff]  ;;  %v234_v15 = vld [vmem:[%s7957_s0 + $0x680] sm:$0xff] }
 0x13b   :  { %v4649_v23 = vpop.permute.xlu0 %4648  ;;  %4080 = vmatprep.mubr.msk.bf16.mxu0 %vm5404_vm0, %v5399_v2  ;;  %v4656_v41 = vunpack.i.h.bf16 %v4654_v9  ;;  %v4655_v43 = vunpack.i.l.bf16 %v4654_v9  ;;  %v1739_v36 = vsel %vm1714_vm3, %v1689_v42, %v4645_v32  ;;  %v1740_v12 = vsel %vm1714_vm3, %v1690_v4, %v4646_v31  ;;  %v6884_v4 = vld [vmem:[%s7957_s0 + $0x670] sm:$0xff]  ;;  %v5375_v42 = vld [vmem:[%s7957_s0 + $0x360] sm:$0xff] }
 0x13c   :  { %v4651_v0 = vunpack.i.h.bf16 %v4649_v23  ;;  %v4650_v57 = vunpack.i.l.bf16 %v4649_v23  ;;  %4943 = vrot.lane.b32.xlu1 %v6802_v30, %s5405_s30  ;;  %v6878_v31 = vpack.i.bf16 %v231_v61, %v6809_v38  ;;  %v6894_v38 = vld [vmem:[%s7957_s0 + $0x668] sm:$0xff]  ;;  %v5376_v23 = vld [vmem:[%s7957_s0 + $0x350] sm:$0xff] }
 0x13d   :  { %4938 = vrot.lane.b32.xlu0 %v4937_v37, %s5406_s12 }
 0x13e   :  { %v1789_v25 = vsel %vm1764_vm4, %v1739_v36, %v4650_v57  ;;  %v1790_v45 = vsel %vm1764_vm4, %v1740_v12, %v4651_v0  ;;  %v4664_v22 = vpop.permute.xlu1 %4663  ;;  %v4987_v36 = vpack.i.bf16 %v6894_v38, %v6889_v55 }
 0x13f   :  { %v4659_v19 = vpop.permute.xlu0 %4658  ;;  %v4666_v18 = vunpack.i.h.bf16 %v4664_v22  ;;  %v4665_v46 = vunpack.i.l.bf16 %v4664_v22  ;;  %v1839_v49 = vsel %vm1814_vm5, %v1789_v25, %v4655_v43  ;;  %v1840_v27 = vsel %vm1814_vm5, %v1790_v45, %v4656_v41 }
 0x140   :  { %v4661_v54 = vunpack.i.h.bf16 %v4659_v19  ;;  %v4660_v44 = vunpack.i.l.bf16 %v4659_v19  ;;  %4953 = vrot.lane.b32.xlu1 %v4952_v24, %s5407_s25  ;;  %v4992_v43 = vpack.i.bf16 %v6884_v4, %v231_v61 }
 0x141   :  { %4948 = vrot.lane.b32.xlu0 %v4947_v6, %s5408_s26 }
 0x142   :  { %v1889_v29 = vsel %vm1864_vm6, %v1839_v49, %v4660_v44  ;;  %v1890_v14 = vsel %vm1864_vm6, %v1840_v27, %v4661_v54  ;;  %v4674_v59 = vpop.permute.xlu1 %4673 }
 0x143   :  { %v4676_v50 = vunpack.i.h.bf16 %v4674_v59  ;;  %v4675_v51 = vunpack.i.l.bf16 %v4674_v59  ;;  %v4669_v53 = vpop.permute.xlu0 %4668  ;;  %v1939_v58 = vsel %vm1914_vm7, %v1889_v29, %v4665_v46  ;;  %v1940_v63 = vsel %vm1914_vm7, %v1890_v14, %v4666_v18  ;;  %v235_v29 = vld [vmem:[%s7957_s0 + $0x688] sm:$0xff]  ;;  %v237_v14 = vld [vmem:[%s7957_s0 + $0x698] sm:$0xff] }
 0x144   :  { %v4671_v40 = vunpack.i.h.bf16 %v4669_v53  ;;  %v4670_v7 = vunpack.i.l.bf16 %v4669_v53  ;;  %4963 = vrot.lane.b32.xlu1 %v4962_v47, %s5403_s23  ;;  %v4997_v46 = vpack.i.bf16 %v6737_v35, %v6665_v17 }
 0x145   :  { %4958 = vrot.lane.b32.xlu0 %v4957_v48, %s5401_s15 }
 0x146   :  { %v1989_v52 = vsel %vm1964_vm8, %v1939_v58, %v4670_v7  ;;  %v1990_v10 = vsel %vm1964_vm8, %v1940_v63, %v4671_v40  ;;  %v4684_v3 = vpop.permute.xlu1 %4683  ;;  %v5012_v58 = vpack.i.bf16 %v237_v14, %v235_v29 }
 0x147   :  { %v4679_v8 = vpop.permute.xlu0 %4678  ;;  %v2039_v56 = vsel %vm2014_vm9, %v1989_v52, %v4675_v51  ;;  %v2040_v21 = vsel %vm2014_vm9, %v1990_v10, %v4676_v50  ;;  %v4686_v32 = vunpack.i.h.bf16 %v4684_v3  ;;  %v4685_v37 = vunpack.i.l.bf16 %v4684_v3  ;;  %v236_v50 = vld [vmem:[%s7957_s0 + $0x690] sm:$0xff]  ;;  %v249_v52 = vld [vmem:[%s7957_s0 + $0x700] sm:$0xff] }
 0x148   :  { %v4681_v13 = vunpack.i.h.bf16 %v4679_v8  ;;  %v4680_v26 = vunpack.i.l.bf16 %v4679_v8  ;;  %4973 = vrot.lane.b32.xlu1 %v4972_v11, %s5402_s22  ;;  %v2076_v28 = vpack.c.bf16 %v2040_v21, %v2039_v56  ;;  %v5007_v61 = vpack.i.bf16 %v236_v50, %v234_v15  ;;  %v251_v10 = vld [vmem:[%s7957_s0 + $0x710] sm:$0xff]  ;;  %v6953_v8 = vld [vmem:[%s7957_s0 + $0x6a0] sm:$0xff] }
 0x149   :  { %4968 = vrot.lane.b32.xlu0 %v4967_v1, %s5400_s14 }
 0x14a   :  { %v1692_v9 = vsel %vm1664_vm2, %v5375_v42, %v4681_v13  ;;  %v1691_v0 = vsel %vm1664_vm2, %v5376_v23, %v4680_v26  ;;  %4081 = vmatmul.mubr.msk.bf16.gmra.mrb[48].mxu0 %vm2116_vm10, %v2076_v28  ;;  %v4694_v57 = vpop.permute.xlu1 %4693  ;;  %v6963_v23 = vld [vmem:[%s7957_s0 + $0x720] sm:$0xff] }
 0x14b   :  { %v4689_v24 = vpop.permute.xlu0 %4688  ;;  %4084 = vmatprep.mubr.msk.bf16.mxu0 %vm5404_vm0, %v5399_v2  ;;  %v4696_v12 = vunpack.i.h.bf16 %v4694_v57  ;;  %v4695_v25 = vunpack.i.l.bf16 %v4694_v57  ;;  %v1741_v45 = vsel %vm1714_vm3, %v1691_v0, %v4685_v37  ;;  %v1742_v22 = vsel %vm1714_vm3, %v1692_v9, %v4686_v32  ;;  %v250_v0 = vld [vmem:[%s7957_s0 + $0x708] sm:$0xff]  ;;  %v252_v57 = vld [vmem:[%s7957_s0 + $0x718] sm:$0xff] }
 0x14c   :  { %v4691_v6 = vunpack.i.h.bf16 %v4689_v24  ;;  %v4690_v41 = vunpack.i.l.bf16 %v4689_v24  ;;  %4983 = vrot.lane.b32.xlu1 %v6878_v31, %s5405_s30  ;;  %v5022_v37 = vpack.i.bf16 %v251_v10, %v249_v52  ;;  %v5017_v9 = vpack.i.bf16 %v6953_v8, %v236_v50  ;;  %v5377_v24 = vld [vmem:[%s7957_s0 + $0x410] sm:$0xff] }
 0x14d   :  { %4978 = vrot.lane.b32.xlu0 %v4977_v39, %s5406_s12 }
 0x14e   :  { %v1791_v19 = vsel %vm1764_vm4, %v1741_v45, %v4690_v41  ;;  %v1792_v54 = vsel %vm1764_vm4, %v1742_v22, %v4691_v6  ;;  %v4704_v44 = vpop.permute.xlu1 %4703  ;;  %v5378_v41 = vld [vmem:[%s7957_s0 + $0x400] sm:$0xff]  ;;  %v5032_v22 = vpack.i.bf16 %v6963_v23, %v251_v10 }
 0x14f   :  { %v4699_v47 = vpop.permute.xlu0 %4698  ;;  %v4706_v49 = vunpack.i.h.bf16 %v4704_v44  ;;  %v4705_v27 = vunpack.i.l.bf16 %v4704_v44  ;;  %v1841_v60 = vsel %vm1814_vm5, %v1791_v19, %v4695_v25  ;;  %v1842_v34 = vsel %vm1814_vm5, %v1792_v54, %v4696_v12 }
 0x150   :  { %v4701_v48 = vunpack.i.h.bf16 %v4699_v47  ;;  %v4700_v18 = vunpack.i.l.bf16 %v4699_v47  ;;  %4993 = vrot.lane.b32.xlu1 %v4992_v43, %s5407_s25  ;;  %v5027_v19 = vpack.i.bf16 %v252_v57, %v250_v0 }
 0x151   :  { %4988 = vrot.lane.b32.xlu0 %v4987_v36, %s5408_s26 }
 0x152   :  { %v1891_v59 = vsel %vm1864_vm6, %v1841_v60, %v4700_v18  ;;  %v1892_v17 = vsel %vm1864_vm6, %v1842_v34, %v4701_v48  ;;  %v4714_v35 = vpop.permute.xlu1 %4713 }
 0x153   :  { %v4716_v51 = vunpack.i.h.bf16 %v4714_v35  ;;  %v4715_v53 = vunpack.i.l.bf16 %v4714_v35  ;;  %v4709_v40 = vpop.permute.xlu0 %4708  ;;  %v1941_v63 = vsel %vm1914_vm7, %v1891_v59, %v4705_v27  ;;  %v1942_v1 = vsel %vm1914_vm7, %v1892_v17, %v4706_v49 }
 0x154   :  { %v4711_v7 = vunpack.i.h.bf16 %v4709_v40  ;;  %v4710_v11 = vunpack.i.l.bf16 %v4709_v40  ;;  %5003 = vrot.lane.b32.xlu1 %v6725_v16, %s5403_s23  ;;  %v5037_v35 = vpack.i.bf16 %v6814_v5, %v6742_v33  ;;  %v239_v40 = vld [vmem:[%s7957_s0 + $0x6a8] sm:$0xff] }
 0x155   :  { %4998 = vrot.lane.b32.xlu0 %v4997_v46, %s5401_s15 }
 0x156   :  { %v1991_v3 = vsel %vm1964_vm8, %v1941_v63, %v4710_v11  ;;  %v1992_v16 = vsel %vm1964_vm8, %v1942_v1, %v4711_v7  ;;  %v4724_v62 = vpop.permute.xlu1 %4723  ;;  %v241_v7 = vld [vmem:[%s7957_s0 + $0x6b8] sm:$0xff] }
 0x157   :  { %v4719_v56 = vpop.permute.xlu0 %4718  ;;  %v2041_v21 = vsel %vm2014_vm9, %v1991_v3, %v4715_v53  ;;  %v2042_v13 = vsel %vm2014_vm9, %v1992_v16, %v4716_v51  ;;  %v4726_v39 = vunpack.i.h.bf16 %v4724_v62  ;;  %v4725_v42 = vunpack.i.l.bf16 %v4724_v62 }
 0x158   :  { %v4721_v26 = vunpack.i.h.bf16 %v4719_v56  ;;  %v4720_v28 = vunpack.i.l.bf16 %v4719_v56  ;;  %5013 = vrot.lane.b32.xlu1 %v5012_v58, %s5402_s22  ;;  %v2077_v32 = vpack.c.bf16 %v2042_v13, %v2041_v21  ;;  %v240_v58 = vld [vmem:[%s7957_s0 + $0x6b0] sm:$0xff]  ;;  %v5052_v3 = vpack.i.bf16 %v241_v7, %v239_v40 }
 0x159   :  { %5008 = vrot.lane.b32.xlu0 %v5007_v61, %s5400_s14  ;;  %v5047_v56 = vpack.i.bf16 %v240_v58, %v6953_v8  ;;  %v255_v21 = vld [vmem:[%s7957_s0 + $0x730] sm:$0xff] }
 0x15a   :  { %v1694_v6 = vsel %vm1664_vm2, %v5377_v24, %v4721_v26  ;;  %v1693_v43 = vsel %vm1664_vm2, %v5378_v41, %v4720_v28  ;;  %4085 = vmatmul.mubr.msk.bf16.gmra.mrb[52].mxu0 %vm2116_vm10, %v2077_v32  ;;  %v4734_v36 = vpop.permute.xlu1 %4733  ;;  %v5062_v0 = vpack.i.bf16 %v255_v21, %v6963_v23  ;;  %v7035_v41 = vld [vmem:[%s7957_s0 + $0x740] sm:$0xff]  ;;  %v5379_v23 = vld [vmem:[%s7957_s0 + $0x430] sm:$0xff] }
 0x15b   :  { %v4729_v12 = vpop.permute.xlu0 %4728  ;;  %4088 = vmatprep.mubr.msk.bf16.mxu0 %vm5404_vm0, %v5399_v2  ;;  %v4736_v54 = vunpack.i.h.bf16 %v4734_v36  ;;  %v4735_v44 = vunpack.i.l.bf16 %v4734_v36  ;;  %v1743_v47 = vsel %vm1714_vm3, %v1693_v43, %v4725_v42  ;;  %v1744_v48 = vsel %vm1714_vm3, %v1694_v6, %v4726_v39  ;;  %v254_v43 = vld [vmem:[%s7957_s0 + $0x728] sm:$0xff]  ;;  %v256_v36 = vld [vmem:[%s7957_s0 + $0x738] sm:$0xff] }
 0x15c   :  { %v4731_v25 = vunpack.i.h.bf16 %v4729_v12  ;;  %v4730_v45 = vunpack.i.l.bf16 %v4729_v12  ;;  %5023 = vrot.lane.b32.xlu1 %v5022_v37, %s5405_s30 }
 0x15d   :  { %5018 = vrot.lane.b32.xlu0 %v5017_v9, %s5406_s12  ;;  %v6987_v18 = vpop.f32.mrb[0].mxu0 }
 0x15e   :  { %v1793_v46 = vsel %vm1764_vm4, %v1743_v47, %v4730_v45  ;;  %v1794_v49 = vsel %vm1764_vm4, %v1744_v48, %v4731_v25  ;;  %v4034_v27 = vpop.f32.mrb[1].mxu0  ;;  %v4744_v60 = vpop.permute.xlu1 %4743  ;;  %v5380_v25 = vld [vmem:[%s7957_s0 + $0x420] sm:$0xff]  ;;  %v5072_v47 = vpack.i.bf16 %v7035_v41, %v255_v21  ;;  %v5067_v48 = vpack.i.bf16 %v256_v36, %v254_v43 }
 0x15f   :  { %v4739_v34 = vpop.permute.xlu0 %4738  ;;  %v6991_v29 = vpop.f32.mrb[2].mxu0  ;;  %v4746_v15 = vunpack.i.h.bf16 %v4744_v60  ;;  %v4745_v50 = vunpack.i.l.bf16 %v4744_v60  ;;  %v1843_v51 = vsel %vm1814_vm5, %v1793_v46, %v4735_v44  ;;  %v1844_v53 = vsel %vm1814_vm5, %v1794_v49, %v4736_v54  ;;  %v7059_v46 = vld [vmem:[%s7959_s2] ss:$0 sm:$0xff] }
 0x160   :  { %v4741_v14 = vunpack.i.h.bf16 %v4739_v34  ;;  %v4740_v59 = vunpack.i.l.bf16 %v4739_v34  ;;  %v4035_v17 = vpop.f32.mrb[3].mxu0  ;;  %5033 = vrot.lane.b32.xlu1 %v5032_v22, %s5407_s25 }
 0x161   :  { %5028 = vrot.lane.b32.xlu0 %v5027_v19, %s5408_s26 }
 0x162   :  { %v1893_v11 = vsel %vm1864_vm6, %v1843_v51, %v4740_v59  ;;  %v1894_v33 = vsel %vm1864_vm6, %v1844_v53, %v4741_v14  ;;  %v4754_v5 = vpop.permute.xlu1 %4753  ;;  %v2234_v59 = vadd.f32 %v7059_v46, %v6991_v29 }
 0x163   :  { %v4756_v63 = vunpack.i.h.bf16 %v4754_v5  ;;  %v4755_v1 = vunpack.i.l.bf16 %v4754_v5  ;;  %v4749_v61 = vpop.permute.xlu0 %4748  ;;  %v1943_v16 = vsel %vm1914_vm7, %v1893_v11, %v4745_v50  ;;  %v1944_v62 = vsel %vm1914_vm7, %v1894_v33, %v4746_v15 }
 0x164   :  { %v4751_v52 = vunpack.i.h.bf16 %v4749_v61  ;;  %v4750_v10 = vunpack.i.l.bf16 %v4749_v61  ;;  %5043 = vrot.lane.b32.xlu1 %v6802_v30, %s5403_s23  ;;  %v7024_v30 = vld [vmem:[%s7957_s0 + $0x6c0] sm:$0xff]  ;;  %v5077_v5 = vpack.i.bf16 %v6889_v55, %v6819_v20  ;;  %v243_v61 = vld [vmem:[%s7957_s0 + $0x6c8] sm:$0xff] }
 0x165   :  { %5038 = vrot.lane.b32.xlu0 %v5037_v35, %s5401_s15  ;;  %v5057_v6 = vpack.i.bf16 %v7024_v30, %v240_v58 }
 0x166   :  { %v1993_v13 = vsel %vm1964_vm8, %v1943_v16, %v4750_v10  ;;  %v1994_v26 = vsel %vm1964_vm8, %v1944_v62, %v4751_v52  ;;  %v4764_v28 = vpop.permute.xlu1 %4763  ;;  %v245_v52 = vld [vmem:[%s7957_s0 + $0x6d8] sm:$0xff]  ;;  %v2429_v10 = vmax.f32 %v2234_v59, 0.0  ;;  %v244_v62 = vld [vmem:[%s7957_s0 + $0x6d0] sm:$0xff] }
 0x167   :  { %v4759_v32 = vpop.permute.xlu0 %4758  ;;  %v2043_v37 = vsel %vm2014_vm9, %v1993_v13, %v4755_v1  ;;  %v2044_v39 = vsel %vm2014_vm9, %v1994_v26, %v4756_v63  ;;  %v4766_v57 = vunpack.i.h.bf16 %v4764_v28  ;;  %v4765_v24 = vunpack.i.l.bf16 %v4764_v28 }
 0x168   :  { %v4761_v8 = vunpack.i.h.bf16 %v4759_v32  ;;  %v4760_v42 = vunpack.i.l.bf16 %v4759_v32  ;;  %5053 = vrot.lane.b32.xlu1 %v5052_v3, %s5402_s22  ;;  %v2078_v9 = vpack.c.bf16 %v2044_v39, %v2043_v37  ;;  %v5092_v37 = vpack.i.bf16 %v245_v52, %v243_v61 }
 0x169   :  { %5048 = vrot.lane.b32.xlu0 %v5047_v56, %s5400_s14 }
 0x16a   :  { %v1696_v12 = vsel %vm1664_vm2, %v5379_v23, %v4761_v8  ;;  %v1695_v45 = vsel %vm1664_vm2, %v5380_v25, %v4760_v42  ;;  %4089 = vmatmul.mubr.msk.bf16.gmra.mrb[56].mxu0 %vm2116_vm10, %v2078_v9  ;;  %v4774_v22 = vpop.permute.xlu1 %4773  ;;  %v5087_v42 = vpack.i.bf16 %v244_v62, %v7024_v30  ;;  %v259_v9 = vld [vmem:[%s7957_s0 + $0x750] sm:$0xff] }
 0x16b   :  { %v4769_v19 = vpop.permute.xlu0 %4768  ;;  %4092 = vmatprep.mubr.msk.bf16.mxu0 %vm5404_vm0, %v5399_v2  ;;  %v4776_v49 = vunpack.i.h.bf16 %v4774_v22  ;;  %v4775_v27 = vunpack.i.l.bf16 %v4774_v22  ;;  %v1745_v60 = vsel %vm1714_vm3, %v1695_v45, %v4765_v24  ;;  %v1746_v34 = vsel %vm1714_vm3, %v1696_v12, %v4766_v57 }
 0x16c   :  { %v4771_v54 = vunpack.i.h.bf16 %v4769_v19  ;;  %v4770_v44 = vunpack.i.l.bf16 %v4769_v19  ;;  %5063 = vrot.lane.b32.xlu1 %v5062_v0, %s5405_s30  ;;  %v5102_v25 = vpack.i.bf16 %v259_v9, %v7035_v41  ;;  %v5381_v41 = vld [vmem:[%s7957_s0 + $0x450] sm:$0xff] }
 0x16d   :  { %5058 = vrot.lane.b32.xlu0 %v5057_v6, %s5406_s12  ;;  %v7064_v14 = vpop.f32.mrb[4].mxu0 }
 0x16e   :  { %v1795_v17 = vsel %vm1764_vm4, %v1745_v60, %v4770_v44  ;;  %v1796_v35 = vsel %vm1764_vm4, %v1746_v34, %v4771_v54  ;;  %v4038_v15 = vpop.f32.mrb[5].mxu0  ;;  %v4784_v50 = vpop.permute.xlu1 %4783  ;;  %v7115_v54 = vld [vmem:[%s7957_s0 + $0x760] sm:$0xff]  ;;  %v258_v44 = vld [vmem:[%s7957_s0 + $0x748] sm:$0xff] }
 0x16f   :  { %v4779_v51 = vpop.permute.xlu0 %4778  ;;  %v2241_v53 = vpop.f32.mrb[6].mxu0  ;;  %v4786_v58 = vunpack.i.h.bf16 %v4784_v50  ;;  %v4785_v29 = vunpack.i.l.bf16 %v4784_v50  ;;  %v1845_v63 = vsel %vm1814_vm5, %v1795_v17, %v4775_v27  ;;  %v1846_v1 = vsel %vm1814_vm5, %v1796_v35, %v4776_v49  ;;  %v5382_v49 = vld [vmem:[%s7957_s0 + $0x440] sm:$0xff] }
 0x170   :  { %v4781_v40 = vunpack.i.h.bf16 %v4779_v51  ;;  %v4780_v7 = vunpack.i.l.bf16 %v4779_v51  ;;  %v2242_v11 = vadd.f32 %v7059_v46, %v2241_v53  ;;  %v4039_v33 = vpop.f32.mrb[7].mxu0  ;;  %5073 = vrot.lane.b32.xlu1 %v5072_v47, %s5407_s25  ;;  %v260_v47 = vld [vmem:[%s7957_s0 + $0x758] sm:$0xff]  ;;  %v5112_v35 = vpack.i.bf16 %v7115_v54, %v259_v9 }
 0x171   :  { %5068 = vrot.lane.b32.xlu0 %v5067_v48, %s5408_s26  ;;  %v5107_v15 = vpack.i.bf16 %v260_v47, %v258_v44 }
 0x172   :  { %v1895_v3 = vsel %vm1864_vm6, %v1845_v63, %v4780_v7  ;;  %v1896_v20 = vsel %vm1864_vm6, %v1846_v1, %v4781_v40  ;;  %v2431_v55 = vmax.f32 %v2242_v11, 0.0  ;;  %v4794_v16 = vpop.permute.xlu1 %4793 }
 0x173   :  { %v4796_v56 = vunpack.i.h.bf16 %v4794_v16  ;;  %v4795_v21 = vunpack.i.l.bf16 %v4794_v16  ;;  %v4789_v13 = vpop.permute.xlu0 %4788  ;;  %v1945_v39 = vsel %vm1914_vm7, %v1895_v3, %v4785_v29  ;;  %v1946_v8 = vsel %vm1914_vm7, %v1896_v20, %v4786_v58 }
 0x174   :  { %v7088_v26 = vpack.i.bf16 %v2431_v55, %v2429_v10  ;;  %v4791_v28 = vunpack.i.h.bf16 %v4789_v13  ;;  %v4790_v32 = vunpack.i.l.bf16 %v4789_v13  ;;  %5083 = vrot.lane.b32.xlu1 %v6878_v31, %s5403_s23  ;;  %v7104_v31 = vld [vmem:[%s7957_s0 + $0x6e0] sm:$0xff] }
 0x175   :  { %5078 = vrot.lane.b32.xlu0 %v5077_v5, %s5401_s15  ;;  %v5097_v19 = vpack.i.bf16 %v7104_v31, %v244_v62 }
 0x176   :  { %v1995_v0 = vsel %vm1964_vm8, %v1945_v39, %v4790_v32  ;;  %v1996_v57 = vsel %vm1964_vm8, %v1946_v8, %v4791_v28  ;;  %v4804_v24 = vpop.permute.xlu1 %4803 }
 0x177   :  { %v4799_v6 = vpop.permute.xlu0 %4798  ;;  %v2045_v43 = vsel %vm2014_vm9, %v1995_v0, %v4795_v21  ;;  %v2046_v36 = vsel %vm2014_vm9, %v1996_v57, %v4796_v56  ;;  %v4806_v45 = vunpack.i.h.bf16 %v4804_v24  ;;  %v4805_v22 = vunpack.i.l.bf16 %v4804_v24 }
 0x178   :  { %v4801_v30 = vunpack.i.h.bf16 %v4799_v6  ;;  %v4800_v23 = vunpack.i.l.bf16 %v4799_v6  ;;  %5093 = vrot.lane.b32.xlu1 %v5092_v37, %s5402_s22  ;;  %v2079_v12 = vpack.c.bf16 %v2046_v36, %v2045_v43 }
 0x179   :  { %5088 = vrot.lane.b32.xlu0 %v5087_v42, %s5400_s14  ;;  %v247_v42 = vld [vmem:[%s7957_s0 + $0x6e8] sm:$0xff] }
 0x17a   :  { %v1698_v48 = vsel %vm1664_vm2, %v5381_v41, %v4801_v30  ;;  %v1697_v27 = vsel %vm1664_vm2, %v5382_v49, %v4800_v23  ;;  %4093 = vmatmul.mubr.msk.bf16.gmra.mrb[60].mxu0 %vm2116_vm10, %v2079_v12  ;;  %v4814_v60 = vpop.permute.xlu1 %4813  ;;  %v7184_v41 = vadd.f32 %v7059_v46, %v7064_v14  ;;  %v263_v14 = vld [vmem:[%s7957_s0 + $0x770] sm:$0xff] }
 0x17b   :  { %v4809_v34 = vpop.permute.xlu0 %4808  ;;  %4096 = vmatprep.mubr.msk.bf16.mxu0 %vm5404_vm0, %v5399_v2  ;;  %v4816_v50 = vunpack.i.h.bf16 %v4814_v60  ;;  %v4815_v51 = vunpack.i.l.bf16 %v4814_v60  ;;  %v1747_v53 = vsel %vm1714_vm3, %v1697_v27, %v4805_v22  ;;  %v1748_v40 = vsel %vm1714_vm3, %v1698_v48, %v4806_v45  ;;  %v5384_v22 = vld [vmem:[%s7957_s0 + $0x460] sm:$0xff] }
 0x17c   :  { %v4811_v59 = vunpack.i.h.bf16 %v4809_v34  ;;  %v4810_v17 = vunpack.i.l.bf16 %v4809_v34  ;;  %5103 = vrot.lane.b32.xlu1 %v5102_v25, %s5405_s30  ;;  %v5383_v25 = vld [vmem:[%s7957_s0 + $0x500] sm:$0xff] }
 0x17d   :  { %5098 = vrot.lane.b32.xlu0 %v5097_v19, %s5406_s12  ;;  %v2246_v7 = vpop.f32.mrb[8].mxu0 }
 0x17e   :  { %v1797_v11 = vsel %vm1764_vm4, %v1747_v53, %v4810_v17  ;;  %v1798_v33 = vsel %vm1764_vm4, %v1748_v40, %v4811_v59  ;;  %v4042_v5 = vpop.f32.mrb[9].mxu0  ;;  %v4824_v58 = vpop.permute.xlu1 %4823  ;;  %v7166_v12 = vadd.f32 %v7059_v46, %v2246_v7  ;;  %v262_v53 = vld [vmem:[%s7957_s0 + $0x768] sm:$0xff] }
 0x17f   :  { %v4819_v29 = vpop.permute.xlu0 %4818  ;;  %v7141_v63 = vpop.f32.mrb[10].mxu0  ;;  %v4826_v10 = vunpack.i.h.bf16 %v4824_v58  ;;  %v4825_v3 = vunpack.i.l.bf16 %v4824_v58  ;;  %v1847_v20 = vsel %vm1814_vm5, %v1797_v11, %v4815_v51  ;;  %v1848_v55 = vsel %vm1814_vm5, %v1798_v33, %v4816_v50 }
 0x180   :  { %v4821_v1 = vunpack.i.h.bf16 %v4819_v29  ;;  %v4820_v61 = vunpack.i.l.bf16 %v4819_v29  ;;  %v4043_v52 = vpop.f32.mrb[11].mxu0  ;;  %5113 = vrot.lane.b32.xlu1 %v5112_v35, %s5407_s25  ;;  %v2432_v35 = vmax.f32 %v7166_v12, 0.0  ;;  %v2430_v11 = vmax.f32 %v7184_v41, 0.0 }
 0x181   :  { %5108 = vrot.lane.b32.xlu0 %v5107_v15, %s5408_s26 }
 0x182   :  { %v1897_v16 = vsel %vm1864_vm6, %v1847_v20, %v4820_v61  ;;  %v1898_v62 = vsel %vm1864_vm6, %v1848_v55, %v4821_v1  ;;  %v4834_v56 = vpop.permute.xlu1 %4833 }
 0x183   :  { %v4836_v21 = vunpack.i.h.bf16 %v4834_v56  ;;  %v4835_v13 = vunpack.i.l.bf16 %v4834_v56  ;;  %v4829_v28 = vpop.permute.xlu0 %4828  ;;  %v1947_v39 = vsel %vm1914_vm7, %v1897_v16, %v4825_v3  ;;  %v1948_v8 = vsel %vm1914_vm7, %v1898_v62, %v4826_v10 }
 0x184   :  { %v4831_v32 = vunpack.i.h.bf16 %v4829_v28  ;;  %v4830_v37 = vunpack.i.l.bf16 %v4829_v28  ;;  %605 = vrot.lane.b32.xlu1 %v6884_v4, %s5403_s23  ;;  %v5122_v10 = vpack.i.bf16 %v2432_v35, %v2430_v11  ;;  %s5410_s23 = smov 64  }
 0x185   :  { %409 = vrot.lane.b32.xlu0 %v6894_v38, %s5401_s15 }
 0x186   :  { %v1997_v9 = vsel %vm1964_vm8, %v1947_v39, %v4830_v37  ;;  %v1998_v0 = vsel %vm1964_vm8, %v1948_v8, %v4831_v32  ;;  %v4844_v57 = vpop.permute.xlu1 %4843 }
 0x187   :  { %v4839_v24 = vpop.permute.xlu0 %4838  ;;  %v2047_v6 = vsel %vm2014_vm9, %v1997_v9, %v4835_v13  ;;  %v2048_v4 = vsel %vm2014_vm9, %v1998_v0, %v4836_v21  ;;  %v4846_v38 = vunpack.i.h.bf16 %v4844_v57  ;;  %v4845_v23 = vunpack.i.l.bf16 %v4844_v57 }
 0x188   :  { %v4841_v43 = vunpack.i.h.bf16 %v4839_v24  ;;  %v4840_v36 = vunpack.i.l.bf16 %v4839_v24  ;;  %997 = vrot.lane.b32.xlu1 %v247_v42, %s5402_s22  ;;  %v2080_v30 = vpack.c.bf16 %v2048_v4, %v2047_v6 }
 0x189   :  { %801 = vrot.lane.b32.xlu0 %v7104_v31, %s5400_s14  ;;  %v248_v31 = vld [vmem:[%s7957_s0 + $0x6f0] sm:$0xff] }
 0x18a   :  { %v1700_v45 = vsel %vm1664_vm2, %v5383_v25, %v4841_v43  ;;  %v1699_v19 = vsel %vm1664_vm2, %v5384_v22, %v4840_v36  ;;  %4097 = vmatmul.mubr.msk.bf16.gmra.mrb[64].mxu0 %vm2116_vm10, %v2080_v30  ;;  %v4854_v44 = vpop.permute.xlu1 %4853  ;;  %v5385_v36 = vld [vmem:[%s7957_s0 + $0x520] sm:$0xff]  ;;  %v5386_v30 = vld [vmem:[%s7957_s0 + $0x510] sm:$0xff] }
 0x18b   :  { %v4849_v47 = vpop.permute.xlu0 %4848  ;;  %4100 = vmatprep.mubr.msk.bf16.mxu0 %vm5404_vm0, %v5399_v2  ;;  %v4856_v27 = vunpack.i.h.bf16 %v4854_v44  ;;  %v4855_v60 = vunpack.i.l.bf16 %v4854_v44  ;;  %v1749_v34 = vsel %vm1714_vm3, %v1699_v19, %v4845_v23  ;;  %v1750_v59 = vsel %vm1714_vm3, %v1700_v45, %v4846_v38 }
 0x18c   :  { %v4851_v48 = vunpack.i.h.bf16 %v4849_v47  ;;  %v4850_v49 = vunpack.i.l.bf16 %v4849_v47  ;;  %1311 = vrot.lane.b32.xlu1 %v7115_v54, %s5405_s30 }
 0x18d   :  { %1151 = vrot.lane.b32.xlu0 %v248_v31, %s5406_s12  ;;  %v7191_v17 = vpop.f32.mrb[12].mxu0 }
 0x18e   :  { %v1799_v15 = vsel %vm1764_vm4, %v1749_v34, %v4850_v49  ;;  %v1800_v54 = vsel %vm1764_vm4, %v1750_v59, %v4851_v48  ;;  %v4046_v50 = vpop.f32.mrb[13].mxu0  ;;  %v4864_v51 = vpop.permute.xlu1 %4863 }
 0x18f   :  { %v4859_v40 = vpop.permute.xlu0 %4858  ;;  %v2257_v7 = vpop.f32.mrb[14].mxu0  ;;  %v4866_v29 = vunpack.i.h.bf16 %v4864_v51  ;;  %v4865_v1 = vunpack.i.l.bf16 %v4864_v51  ;;  %v1849_v61 = vsel %vm1814_vm5, %v1799_v15, %v4855_v60  ;;  %v1850_v52 = vsel %vm1814_vm5, %v1800_v54, %v4856_v27 }
 0x190   :  { %v4861_v33 = vunpack.i.h.bf16 %v4859_v40  ;;  %v4860_v5 = vunpack.i.l.bf16 %v4859_v40  ;;  %v4047_v58 = vpop.f32.mrb[15].mxu0  ;;  %1613 = vrot.lane.b32.xlu1 %v263_v14, %s5407_s25  ;;  %v2258_v49 = vadd.f32 %v7059_v46, %v2257_v7 }
 0x191   :  { %1465 = vrot.lane.b32.xlu0 %v262_v53, %s5408_s26 }
 0x192   :  { %v1899_v3 = vsel %vm1864_vm6, %v1849_v61, %v4860_v5  ;;  %v1900_v20 = vsel %vm1864_vm6, %v1850_v52, %v4861_v33  ;;  %v4874_v55 = vpop.permute.xlu1 %4873  ;;  %v2435_v58 = vmax.f32 %v2258_v49, 0.0 }
 0x193   :  { %v4876_v16 = vunpack.i.h.bf16 %v4874_v55  ;;  %v4875_v62 = vunpack.i.l.bf16 %v4874_v55  ;;  %v4869_v56 = vpop.permute.xlu0 %4868  ;;  %v1949_v28 = vsel %vm1914_vm7, %v1899_v3, %v4865_v1  ;;  %v1950_v32 = vsel %vm1914_vm7, %v1900_v20, %v4866_v29 }
 0x194   :  { %v4871_v21 = vunpack.i.h.bf16 %v4869_v56  ;;  %v4870_v13 = vunpack.i.l.bf16 %v4869_v56  ;;  %5123 = vrot.lane.b32.xlu1 %v5122_v10, %s5407_s25 }
 0x195   :  { %5118 = vrot.lane.b32.xlu0 %v7088_v26, %s5402_s22 }
 0x196   :  { %v1999_v37 = vsel %vm1964_vm8, %v1949_v28, %v4870_v13  ;;  %v2000_v39 = vsel %vm1964_vm8, %v1950_v32, %v4871_v21  ;;  %v4884_v8 = vpop.permute.xlu1 %4883 }
 0x197   :  { %v4879_v42 = vpop.permute.xlu0 %4878  ;;  %v2049_v9 = vsel %vm2014_vm9, %v1999_v37, %v4875_v62  ;;  %v2050_v0 = vsel %vm2014_vm9, %v2000_v39, %v4876_v16  ;;  %v4886_v4 = vunpack.i.h.bf16 %v4884_v8  ;;  %v4885_v43 = vunpack.i.l.bf16 %v4884_v8 }
 0x198   :  { %v4881_v57 = vunpack.i.h.bf16 %v4879_v42  ;;  %v4880_v24 = vunpack.i.l.bf16 %v4879_v42  ;;  %v2081_v6 = vpack.c.bf16 %v2050_v0, %v2049_v9 }
 0x19a   :  { %v1702_v26 = vsel %vm1664_vm2, %v5385_v36, %v4881_v57  ;;  %v1701_v38 = vsel %vm1664_vm2, %v5386_v30, %v4880_v24  ;;  %4101 = vmatmul.mubr.msk.bf16.gmra.mrb[68].mxu0 %vm2116_vm10, %v2081_v6  ;;  %v4894_v23 = vpop.permute.xlu1 %4893  ;;  %v5387_v6 = vld [vmem:[%s7957_s0 + $0x540] sm:$0xff] }
 0x19b   :  { %v4889_v25 = vpop.permute.xlu0 %4888  ;;  %4104 = vmatprep.mubr.msk.bf16.mxu0 %vm5404_vm0, %v5399_v2  ;;  %v4896_v19 = vunpack.i.h.bf16 %v4894_v23  ;;  %v4895_v44 = vunpack.i.l.bf16 %v4894_v23  ;;  %v1751_v31 = vsel %vm1714_vm3, %v1701_v38, %v4885_v43  ;;  %v1752_v47 = vsel %vm1714_vm3, %v1702_v26, %v4886_v4  ;;  %v5388_v43 = vld [vmem:[%s7957_s0 + $0x530] sm:$0xff] }
 0x19c   :  { %v4891_v45 = vunpack.i.h.bf16 %v4889_v25  ;;  %v4890_v22 = vunpack.i.l.bf16 %v4889_v25 }
 0x19d   :  { %v2262_v48 = vpop.f32.mrb[16].mxu0 }
 0x19e   :  { %v1801_v27 = vsel %vm1764_vm4, %v1751_v31, %v4890_v22  ;;  %v1802_v60 = vsel %vm1764_vm4, %v1752_v47, %v4891_v45  ;;  %v4050_v34 = vpop.f32.mrb[17].mxu0  ;;  %v4904_v59 = vpop.permute.xlu1 %4903  ;;  %v2263_v30 = vadd.f32 %v7059_v46, %v2262_v48 }
 0x19f   :  { %v4899_v14 = vpop.permute.xlu0 %4898  ;;  %v2265_v15 = vpop.f32.mrb[18].mxu0  ;;  %v4906_v40 = vunpack.i.h.bf16 %v4904_v59  ;;  %v4905_v33 = vunpack.i.l.bf16 %v4904_v59  ;;  %v1851_v5 = vsel %vm1814_vm5, %v1801_v27, %v4895_v44  ;;  %v1852_v7 = vsel %vm1814_vm5, %v1802_v60, %v4896_v19 }
 0x1a0   :  { %v4901_v54 = vunpack.i.h.bf16 %v4899_v14  ;;  %v4900_v50 = vunpack.i.l.bf16 %v4899_v14  ;;  %v7239_v51 = vadd.f32 %v7059_v46, %v2265_v15  ;;  %v4051_v53 = vpop.f32.mrb[19].mxu0  ;;  %v2436_v34 = vmax.f32 %v2263_v30, 0.0 }
 0x1a2   :  { %v1901_v29 = vsel %vm1864_vm6, %v1851_v5, %v4900_v50  ;;  %v1902_v1 = vsel %vm1864_vm6, %v1852_v7, %v4901_v54  ;;  %v2437_v61 = vmax.f32 %v7239_v51, 0.0  ;;  %v4914_v52 = vpop.permute.xlu1 %4913 }
 0x1a3   :  { %v4916_v10 = vunpack.i.h.bf16 %v4914_v52  ;;  %v4915_v3 = vunpack.i.l.bf16 %v4914_v52  ;;  %v4909_v20 = vpop.permute.xlu0 %4908  ;;  %v1951_v56 = vsel %vm1914_vm7, %v1901_v29, %v4905_v33  ;;  %v1952_v21 = vsel %vm1914_vm7, %v1902_v1, %v4906_v40 }
 0x1a4   :  { %v5127_v55 = vpack.i.bf16 %v2437_v61, %v2435_v58  ;;  %v4911_v16 = vunpack.i.h.bf16 %v4909_v20  ;;  %v4910_v62 = vunpack.i.l.bf16 %v4909_v20 }
 0x1a6   :  { %v2001_v13 = vsel %vm1964_vm8, %v1951_v56, %v4910_v62  ;;  %v2002_v28 = vsel %vm1964_vm8, %v1952_v21, %v4911_v16  ;;  %5128 = vrot.lane.b32.xlu0 %v5127_v55, %s5409_s18  ;;  %v4924_v32 = vpop.permute.xlu1 %4923 }
 0x1a7   :  { %v4919_v37 = vpop.permute.xlu0 %4918  ;;  %v2051_v39 = vsel %vm2014_vm9, %v2001_v13, %v4915_v3  ;;  %v2052_v8 = vsel %vm2014_vm9, %v2002_v28, %v4916_v10  ;;  %v4926_v57 = vunpack.i.h.bf16 %v4924_v32  ;;  %v4925_v24 = vunpack.i.l.bf16 %v4924_v32 }
 0x1a8   :  { %v4921_v42 = vunpack.i.h.bf16 %v4919_v37  ;;  %v4920_v9 = vunpack.i.l.bf16 %v4919_v37  ;;  %v2082_v0 = vpack.c.bf16 %v2052_v8, %v2051_v39 }
 0x1aa   :  { %v1704_v4 = vsel %vm1664_vm2, %v5387_v6, %v4921_v42  ;;  %v1703_v36 = vsel %vm1664_vm2, %v5388_v43, %v4920_v9  ;;  %4105 = vmatmul.mubr.msk.bf16.gmra.mrb[72].mxu0 %vm2116_vm10, %v2082_v0  ;;  %v4934_v26 = vpop.permute.xlu1 %4933  ;;  %v5412_v42 = vmov 0   ;;  %v5276_v9 = vld [vmem:[%s7960_s3] sm:$0xff]  }
 0x1ab   :  { %v4929_v38 = vpop.permute.xlu0 %4928  ;;  %4108 = vmatprep.mubr.msk.bf16.mxu0 %vm5404_vm0, %v5399_v2  ;;  %v4936_v45 = vunpack.i.h.bf16 %v4934_v26  ;;  %v4935_v22 = vunpack.i.l.bf16 %v4934_v26  ;;  %v1753_v19 = vsel %vm1714_vm3, %v1703_v36, %v4925_v24  ;;  %v1754_v44 = vsel %vm1714_vm3, %v1704_v4, %v4926_v57  ;;  %2885 = vmatprep.subr.bf16.mxu1 %v5412_v42  ;;  %v5389_v43 = vld [vmem:[%s7957_s0 + $0x560] sm:$0xff]  ;;  %v5390_v26 = vld [vmem:[%s7957_s0 + $0x550] sm:$0xff] }
 0x1ac   :  { %v4931_v23 = vunpack.i.h.bf16 %v4929_v38  ;;  %v4930_v25 = vunpack.i.l.bf16 %v4929_v38  ;;  %5272 = vset.pattern.permute.xlu0 %v5412_v42  ;;  %2886 = vmatpush1.bf16.msra.mxu1 %v5276_v9 }
 0x1ad   :  { %v2270_v31 = vpop.f32.mrb[20].mxu0  ;;  %2887 = vmatprep.subr.bf16.mxu1 %v5412_v42 }
 0x1ae   :  { %v1803_v47 = vsel %vm1764_vm4, %v1753_v19, %v4930_v25  ;;  %v1804_v49 = vsel %vm1764_vm4, %v1754_v44, %v4931_v23  ;;  %v2271_v27 = vadd.f32 %v7059_v46, %v2270_v31  ;;  %v4054_v48 = vpop.f32.mrb[21].mxu0  ;;  %v4944_v60 = vpop.permute.xlu1 %4943 }
 0x1af   :  { %v4939_v59 = vpop.permute.xlu0 %4938  ;;  %v2273_v14 = vpop.f32.mrb[22].mxu0  ;;  %v4946_v33 = vunpack.i.h.bf16 %v4944_v60  ;;  %v4945_v5 = vunpack.i.l.bf16 %v4944_v60  ;;  %v1853_v7 = vsel %vm1814_vm5, %v1803_v47, %v4935_v22  ;;  %v1854_v58 = vsel %vm1814_vm5, %v1804_v49, %v4936_v45 }
 0x1b0   :  { %v2438_v15 = vmax.f32 %v2271_v27, 0.0  ;;  %v4941_v54 = vunpack.i.h.bf16 %v4939_v59  ;;  %v4940_v50 = vunpack.i.l.bf16 %v4939_v59  ;;  %v7273_v53 = vadd.f32 %v7059_v46, %v2273_v14  ;;  %v4055_v40 = vpop.f32.mrb[23].mxu0  ;;  %v5277_v14 = vld [vmem:[%s7960_s3 + $0x8] sm:$0xff]  }
 0x1b1   :  { %2888 = vmatpush1.bf16.msra.mxu1 %v5277_v14 }
 0x1b2   :  { %v5132_v29 = vpack.i.bf16 %v2438_v15, %v2436_v34  ;;  %v1903_v1 = vsel %vm1864_vm6, %v1853_v7, %v4940_v50  ;;  %v1904_v52 = vsel %vm1864_vm6, %v1854_v58, %v4941_v54  ;;  %v2439_v10 = vmax.f32 %v7273_v53, 0.0  ;;  %v4954_v3 = vpop.permute.xlu1 %4953  ;;  %2889 = vmatprep.subr.bf16.mxu1 %v5412_v42 }
 0x1b3   :  { %v4956_v20 = vunpack.i.h.bf16 %v4954_v3  ;;  %v4955_v55 = vunpack.i.l.bf16 %v4954_v3  ;;  %v4949_v16 = vpop.permute.xlu0 %4948  ;;  %v1953_v13 = vsel %vm1914_vm7, %v1903_v1, %v4945_v5  ;;  %v1954_v28 = vsel %vm1914_vm7, %v1904_v52, %v4946_v33 }
 0x1b4   :  { %v5137_v62 = vpack.i.bf16 %v2439_v10, %v2437_v61  ;;  %v4951_v56 = vunpack.i.h.bf16 %v4949_v16  ;;  %v4950_v21 = vunpack.i.l.bf16 %v4949_v16  ;;  %5133 = vrot.lane.b32.xlu1 %v5132_v29, %s5410_s23 }
 0x1b6   :  { %v2003_v32 = vsel %vm1964_vm8, %v1953_v13, %v4950_v21  ;;  %v2004_v37 = vsel %vm1964_vm8, %v1954_v28, %v4951_v56  ;;  %5138 = vrot.lane.b32.xlu0 %v5137_v62, %s5411_s24  ;;  %v4964_v51 = vpop.permute.xlu1 %4963 }
 0x1b7   :  { %v4959_v39 = vpop.permute.xlu0 %4958  ;;  %v2053_v61 = vsel %vm2014_vm9, %v2003_v32, %v4955_v55  ;;  %v2054_v8 = vsel %vm2014_vm9, %v2004_v37, %v4956_v20  ;;  %v4966_v6 = vunpack.i.h.bf16 %v4964_v51  ;;  %v4965_v4 = vunpack.i.l.bf16 %v4964_v51  ;;  %v5278_v55 = vld [vmem:[%s7960_s3 + $0x10] sm:$0xff]   ;;  %v5279_v37 = vld [vmem:[%s7960_s3 + $0x18] sm:$0xff]  }
 0x1b8   :  { %v4961_v0 = vunpack.i.h.bf16 %v4959_v39  ;;  %v4960_v57 = vunpack.i.l.bf16 %v4959_v39  ;;  %v2083_v24 = vpack.c.bf16 %v2054_v8, %v2053_v61  ;;  %2890 = vmatpush1.bf16.msra.mxu1 %v5278_v55 }
 0x1b9   :  { %2891 = vmatprep.subr.bf16.mxu1 %v5412_v42 }
 0x1ba   :  { %v1706_v36 = vsel %vm1664_vm2, %v5389_v43, %v4961_v0  ;;  %v1705_v30 = vsel %vm1664_vm2, %v5390_v26, %v4960_v57  ;;  %4109 = vmatmul.mubr.msk.bf16.gmra.mrb[76].mxu0 %vm2116_vm10, %v2083_v24  ;;  %v4974_v38 = vpop.permute.xlu1 %4973 }
 0x1bb   :  { %v4969_v23 = vpop.permute.xlu0 %4968  ;;  %4112 = vmatprep.mubr.msk.bf16.mxu0 %vm5404_vm0, %v5399_v2  ;;  %v4976_v22 = vunpack.i.h.bf16 %v4974_v38  ;;  %v4975_v19 = vunpack.i.l.bf16 %v4974_v38  ;;  %v1755_v44 = vsel %vm1714_vm3, %v1705_v30, %v4965_v4  ;;  %v1756_v31 = vsel %vm1714_vm3, %v1706_v36, %v4966_v6  ;;  %v5280_v6 = vld [vmem:[%s7960_s3 + $0x20] sm:$0xff]   ;;  %v5391_v4 = vld [vmem:[%s7957_s0 + $0x610] sm:$0xff] }
 0x1bc   :  { %v4971_v25 = vunpack.i.h.bf16 %v4969_v23  ;;  %v4970_v45 = vunpack.i.l.bf16 %v4969_v23  ;;  %2892 = vmatpush1.bf16.msra.mxu1 %v5279_v37  ;;  %v5392_v36 = vld [vmem:[%s7957_s0 + $0x600] sm:$0xff] }
 0x1bd   :  { %v7311_v47 = vpop.f32.mrb[24].mxu0  ;;  %2893 = vmatprep.subr.bf16.mxu1 %v5412_v42 }
 0x1be   :  { %v1805_v49 = vsel %vm1764_vm4, %v1755_v44, %v4970_v45  ;;  %v1806_v27 = vsel %vm1764_vm4, %v1756_v31, %v4971_v25  ;;  %v4058_v48 = vpop.f32.mrb[25].mxu0  ;;  %v4984_v60 = vpop.permute.xlu1 %4983 }
 0x1bf   :  { %v4979_v34 = vpop.permute.xlu0 %4978  ;;  %v7315_v59 = vpop.f32.mrb[26].mxu0  ;;  %v4986_v40 = vunpack.i.h.bf16 %v4984_v60  ;;  %v4985_v33 = vunpack.i.l.bf16 %v4984_v60  ;;  %v1855_v5 = vsel %vm1814_vm5, %v1805_v49, %v4975_v19  ;;  %v1856_v7 = vsel %vm1814_vm5, %v1806_v27, %v4976_v22 }
 0x1c0   :  { %v4981_v15 = vunpack.i.h.bf16 %v4979_v34  ;;  %v4980_v54 = vunpack.i.l.bf16 %v4979_v34  ;;  %v4059_v50 = vpop.f32.mrb[27].mxu0  ;;  %2894 = vmatpush1.bf16.msra.mxu1 %v5280_v6  ;;  %v2250_v49 = vadd.f32 %v7059_v46, %v7141_v63 }
 0x1c1   :  { %2895 = vmatprep.subr.bf16.mxu1 %v5412_v42 }
 0x1c2   :  { %v1905_v58 = vsel %vm1864_vm6, %v1855_v5, %v4980_v54  ;;  %v1906_v29 = vsel %vm1864_vm6, %v1856_v7, %v4981_v15  ;;  %v4994_v1 = vpop.permute.xlu1 %4993  ;;  %v5281_v54 = vld [vmem:[%s7960_s3 + $0x28] sm:$0xff]  }
 0x1c3   :  { %v4996_v52 = vunpack.i.h.bf16 %v4994_v1  ;;  %v4995_v3 = vunpack.i.l.bf16 %v4994_v1  ;;  %v4989_v20 = vpop.permute.xlu0 %4988  ;;  %v1955_v56 = vsel %vm1914_vm7, %v1905_v58, %v4985_v33  ;;  %v1956_v21 = vsel %vm1914_vm7, %v1906_v29, %v4986_v40 }
 0x1c4   :  { %v4991_v16 = vunpack.i.h.bf16 %v4989_v20  ;;  %v4990_v62 = vunpack.i.l.bf16 %v4989_v20  ;;  %2896 = vmatpush1.bf16.msra.mxu1 %v5281_v54  ;;  %v2433_v1 = vmax.f32 %v2250_v49, 0.0 }
 0x1c5   :  { %2897 = vmatprep.subr.bf16.mxu1 %v5412_v42 }
 0x1c6   :  { %v2005_v13 = vsel %vm1964_vm8, %v1955_v56, %v4990_v62  ;;  %v2006_v28 = vsel %vm1964_vm8, %v1956_v21, %v4991_v16  ;;  %v5004_v32 = vpop.permute.xlu1 %5003  ;;  %v5282_v21 = vld [vmem:[%s7960_s3 + $0x30] sm:$0xff]  }
 0x1c7   :  { %v4999_v51 = vpop.permute.xlu0 %4998  ;;  %v2055_v39 = vsel %vm2014_vm9, %v2005_v13, %v4995_v3  ;;  %v2056_v61 = vsel %vm2014_vm9, %v2006_v28, %v4996_v52  ;;  %v5006_v57 = vunpack.i.h.bf16 %v5004_v32  ;;  %v5005_v24 = vunpack.i.l.bf16 %v5004_v32 }
 0x1c8   :  { %v5001_v8 = vunpack.i.h.bf16 %v4999_v51  ;;  %v5000_v9 = vunpack.i.l.bf16 %v4999_v51  ;;  %v2084_v0 = vpack.c.bf16 %v2056_v61, %v2055_v39  ;;  %2898 = vmatpush1.bf16.msra.mxu1 %v5282_v21 }
 0x1c9   :  { %2899 = vmatprep.subr.bf16.mxu1 %v5412_v42 }
 0x1ca   :  { %v1708_v43 = vsel %vm1664_vm2, %v5391_v4, %v5001_v8  ;;  %v1707_v26 = vsel %vm1664_vm2, %v5392_v36, %v5000_v9  ;;  %4113 = vmatmul.mubr.msk.bf16.gmra.mrb[80].mxu0 %vm2116_vm10, %v2084_v0  ;;  %v5014_v30 = vpop.permute.xlu1 %5013 }
 0x1cb   :  { %v5009_v38 = vpop.permute.xlu0 %5008  ;;  %4116 = vmatprep.mubr.msk.bf16.mxu0 %vm5404_vm0, %v5399_v2  ;;  %v5016_v45 = vunpack.i.h.bf16 %v5014_v30  ;;  %v5015_v22 = vunpack.i.l.bf16 %v5014_v30  ;;  %v1757_v19 = vsel %vm1714_vm3, %v1707_v26, %v5005_v24  ;;  %v1758_v44 = vsel %vm1714_vm3, %v1708_v43, %v5006_v57  ;;  %v5283_v24 = vld [vmem:[%s7960_s3 + $0x38] sm:$0xff]   ;;  %v5393_v30 = vld [vmem:[%s7957_s0 + $0x630] sm:$0xff] }
 0x1cc   :  { %v5011_v23 = vunpack.i.h.bf16 %v5009_v38  ;;  %v5010_v25 = vunpack.i.l.bf16 %v5009_v38  ;;  %2900 = vmatpush1.bf16.msra.mxu1 %v5283_v24 }
 0x1cd   :  { %v2286_v31 = vpop.f32.mrb[28].mxu0  ;;  %2901 = vmatprep.subr.bf16.mxu1 %v5412_v42 }
 0x1ce   :  { %v1807_v27 = vsel %vm1764_vm4, %v1757_v19, %v5010_v25  ;;  %v1808_v48 = vsel %vm1764_vm4, %v1758_v44, %v5011_v23  ;;  %v4062_v60 = vpop.f32.mrb[29].mxu0  ;;  %v5024_v34 = vpop.permute.xlu1 %5023  ;;  %v5394_v23 = vld [vmem:[%s7957_s0 + $0x620] sm:$0xff] }
 0x1cf   :  { %v5019_v14 = vpop.permute.xlu0 %5018  ;;  %v2289_v15 = vpop.f32.mrb[30].mxu0  ;;  %v5026_v5 = vunpack.i.h.bf16 %v5024_v34  ;;  %v5025_v7 = vunpack.i.l.bf16 %v5024_v34  ;;  %v1857_v58 = vsel %vm1814_vm5, %v1807_v27, %v5015_v22  ;;  %v1858_v29 = vsel %vm1814_vm5, %v1808_v48, %v5016_v45  ;;  %v5284_v44 = vld [vmem:[%s7960_s3 + $0x40] sm:$0xff]   ;;  %s5413_s3 = smov 96  }
 0x1d0   :  { %v5021_v50 = vunpack.i.h.bf16 %v5019_v14  ;;  %v5020_v40 = vunpack.i.l.bf16 %v5019_v14  ;;  %v7364_v33 = vadd.f32 %v7059_v46, %v2289_v15  ;;  %v4063_v63 = vpop.f32.mrb[31].mxu0  ;;  %v7400_v22 = vadd.f32 %v7059_v46, %v2286_v31  ;;  %2902 = vmatpush1.bf16.msra.mxu1 %v5284_v44 }
 0x1d2   :  { %v1907_v52 = vsel %vm1864_vm6, %v1857_v58, %v5020_v40  ;;  %v1908_v3 = vsel %vm1864_vm6, %v1858_v29, %v5021_v50  ;;  %v2443_v20 = vmax.f32 %v7364_v33, 0.0  ;;  %v5034_v55 = vpop.permute.xlu1 %5033 }
 0x1d3   :  { %v5036_v16 = vunpack.i.h.bf16 %v5034_v55  ;;  %v5035_v62 = vunpack.i.l.bf16 %v5034_v55  ;;  %v5029_v56 = vpop.permute.xlu0 %5028  ;;  %v1957_v37 = vsel %vm1914_vm7, %v1907_v52, %v5025_v7  ;;  %v1958_v51 = vsel %vm1914_vm7, %v1908_v3, %v5026_v5 }
 0x1d4   :  { %v7377_v13 = vpack.i.bf16 %v2443_v20, %v2433_v1  ;;  %v5031_v28 = vunpack.i.h.bf16 %v5029_v56  ;;  %v5030_v32 = vunpack.i.l.bf16 %v5029_v56  ;;  %v2255_v5 = vadd.f32 %v7059_v46, %v7191_v17 }
 0x1d5   :  { %v2442_v7 = vmax.f32 %v7400_v22, 0.0 }
 0x1d6   :  { %v2007_v39 = vsel %vm1964_vm8, %v1957_v37, %v5030_v32  ;;  %v2008_v61 = vsel %vm1964_vm8, %v1958_v51, %v5031_v28  ;;  %v5044_v8 = vpop.permute.xlu1 %5043 }
 0x1d7   :  { %v5039_v9 = vpop.permute.xlu0 %5038  ;;  %v2057_v0 = vsel %vm2014_vm9, %v2007_v39, %v5035_v62  ;;  %v2058_v57 = vsel %vm2014_vm9, %v2008_v61, %v5036_v16  ;;  %v5046_v36 = vunpack.i.h.bf16 %v5044_v8  ;;  %v5045_v26 = vunpack.i.l.bf16 %v5044_v8 }
 0x1d8   :  { %v5041_v6 = vunpack.i.h.bf16 %v5039_v9  ;;  %v5040_v4 = vunpack.i.l.bf16 %v5039_v9  ;;  %v2085_v43 = vpack.c.bf16 %v2058_v57, %v2057_v0 }
 0x1da   :  { %v1710_v38 = vsel %vm1664_vm2, %v5393_v30, %v5041_v6  ;;  %v1709_v25 = vsel %vm1664_vm2, %v5394_v23, %v5040_v4  ;;  %4117 = vmatmul.mubr.msk.bf16.gmra.mrb[84].mxu0 %vm2116_vm10, %v2085_v43  ;;  %v5054_v45 = vpop.permute.xlu1 %5053  ;;  %v2434_v4 = vmax.f32 %v2255_v5, 0.0 }
 0x1db   :  { %v5049_v19 = vpop.permute.xlu0 %5048  ;;  %4120 = vmatprep.mubr.msk.bf16.mxu0 %vm5404_vm0, %v5399_v2  ;;  %v5056_v48 = vunpack.i.h.bf16 %v5054_v45  ;;  %v5055_v60 = vunpack.i.l.bf16 %v5054_v45  ;;  %v1759_v34 = vsel %vm1714_vm3, %v1709_v25, %v5045_v26  ;;  %v1760_v14 = vsel %vm1714_vm3, %v1710_v38, %v5046_v36 }
 0x1dc   :  { %v5051_v49 = vunpack.i.h.bf16 %v5049_v19  ;;  %v5050_v27 = vunpack.i.l.bf16 %v5049_v19 }
 0x1dd   :  { %v2294_v15 = vpop.f32.mrb[32].mxu0 }
 0x1de   :  { %v1809_v31 = vsel %vm1764_vm4, %v1759_v34, %v5050_v27  ;;  %v1810_v54 = vsel %vm1764_vm4, %v1760_v14, %v5051_v49  ;;  %v2295_v50 = vadd.f32 %v7059_v46, %v2294_v15  ;;  %v4066_v40 = vpop.f32.mrb[33].mxu0  ;;  %v5064_v63 = vpop.permute.xlu1 %5063  ;;  %v5395_v49 = vld [vmem:[%s7957_s0 + $0x650] sm:$0xff] }
 0x1df   :  { %v5059_v58 = vpop.permute.xlu0 %5058  ;;  %v2297_v29 = vpop.f32.mrb[34].mxu0  ;;  %v5066_v62 = vunpack.i.h.bf16 %v5064_v63  ;;  %v5065_v56 = vunpack.i.l.bf16 %v5064_v63  ;;  %v1859_v21 = vsel %vm1814_vm5, %v1809_v31, %v5055_v60  ;;  %v1860_v28 = vsel %vm1814_vm5, %v1810_v54, %v5056_v48  ;;  %v5396_v48 = vld [vmem:[%s7957_s0 + $0x640] sm:$0xff] }
 0x1e0   :  { %v7415_v1 = vmax.f32 %v2295_v50, 0.0  ;;  %v5061_v52 = vunpack.i.h.bf16 %v5059_v58  ;;  %v5060_v3 = vunpack.i.l.bf16 %v5059_v58  ;;  %v7418_v55 = vadd.f32 %v7059_v46, %v2297_v29  ;;  %v4067_v16 = vpop.f32.mrb[35].mxu0  ;;  %v7462_v29 = vld [vmem:[%s7959_s2] ss:$0 sm:$0xff] }
 0x1e2   :  { %v1909_v17 = vsel %vm1864_vm6, %v1859_v21, %v5060_v3  ;;  %v1910_v32 = vsel %vm1864_vm6, %v1860_v28, %v5061_v52  ;;  %v2445_v37 = vmax.f32 %v7418_v55, 0.0  ;;  %v5074_v51 = vpop.permute.xlu1 %5073  ;;  %v5142_v39 = vpack.i.bf16 %v7415_v1, %v2442_v7  ;;  %v5398_v55 = vld [vmem:[%s7957_s0 + $0x660] sm:$0xff] }
 0x1e3   :  { %v5076_v46 = vunpack.i.h.bf16 %v5074_v51  ;;  %v5075_v61 = vunpack.i.l.bf16 %v5074_v51  ;;  %v5069_v8 = vpop.permute.xlu0 %5068  ;;  %v1959_v24 = vsel %vm1914_vm7, %v1909_v17, %v5065_v56  ;;  %v1960_v6 = vsel %vm1914_vm7, %v1910_v32, %v5066_v62 }
 0x1e4   :  { %v5147_v9 = vpack.i.bf16 %v2445_v37, %v2443_v20  ;;  %v5071_v0 = vunpack.i.h.bf16 %v5069_v8  ;;  %v5070_v57 = vunpack.i.l.bf16 %v5069_v8  ;;  %5143 = vrot.lane.b32.xlu1 %v5142_v39, %s5413_s3  ;;  %v5157_v44 = vpack.i.bf16 %v7415_v1, %v2434_v4 }
 0x1e6   :  { %v2009_v43 = vsel %vm1964_vm8, %v1959_v24, %v5070_v57  ;;  %v2010_v36 = vsel %vm1964_vm8, %v1960_v6, %v5071_v0  ;;  %5148 = vrot.lane.b32.xlu0 %v5147_v9, %s5414_s27  ;;  %v5084_v33 = vpop.permute.xlu1 %5083 }
 0x1e7   :  { %v5086_v26 = vunpack.i.h.bf16 %v5084_v33  ;;  %v5085_v20 = vunpack.i.l.bf16 %v5084_v33  ;;  %v5079_v30 = vpop.permute.xlu0 %5078  ;;  %v2059_v38 = vsel %vm2014_vm9, %v2009_v43, %v5075_v61  ;;  %v2060_v23 = vsel %vm2014_vm9, %v2010_v36, %v5076_v46 }
 0x1e8   :  { %v5081_v25 = vunpack.i.h.bf16 %v5079_v30  ;;  %v5080_v45 = vunpack.i.l.bf16 %v5079_v30  ;;  %5153 = vrot.lane.b32.xlu1 %v7377_v13, %s5402_s22  ;;  %v2086_v19 = vpack.c.bf16 %v2060_v23, %v2059_v38 }
 0x1ea   :  { %v1712_v27 = vsel %vm1664_vm2, %v5395_v49, %v5081_v25  ;;  %v1711_v60 = vsel %vm1664_vm2, %v5396_v48, %v5080_v45  ;;  %4121 = vmatmul.mubr.msk.bf16.gmra.mrb[88].mxu0 %vm2116_vm10, %v2086_v19  ;;  %5158 = vrot.lane.b32.xlu0 %v5157_v44, %s5407_s25  ;;  %v5094_v13 = vpop.permute.xlu1 %5093 }
 0x1eb   :  { %v5096_v34 = vunpack.i.h.bf16 %v5094_v13  ;;  %v5095_v14 = vunpack.i.l.bf16 %v5094_v13  ;;  %v5089_v15 = vpop.permute.xlu0 %5088  ;;  %v1761_v31 = vsel %vm1714_vm3, %v1711_v60, %v5085_v20  ;;  %v1762_v54 = vsel %vm1714_vm3, %v1712_v27, %v5086_v26  ;;  %4124 = vmatprep.mubr.msk.bf16.mxu0 %vm5404_vm0, %v5399_v2 }
 0x1ec   :  { %v5091_v50 = vunpack.i.h.bf16 %v5089_v15  ;;  %v5090_v40 = vunpack.i.l.bf16 %v5089_v15 }
 0x1ed   :  { %v2302_v63 = vpop.f32.mrb[36].mxu0 }
 0x1ee   :  { %v1811_v5 = vsel %vm1764_vm4, %v1761_v31, %v5090_v40  ;;  %v1812_v58 = vsel %vm1764_vm4, %v1762_v54, %v5091_v50  ;;  %v2303_v52 = vadd.f32 %v7462_v29, %v2302_v63  ;;  %v4070_v3 = vpop.f32.mrb[37].mxu0  ;;  %v5104_v16 = vpop.permute.xlu1 %5103 }
 0x1ef   :  { %v5106_v62 = vunpack.i.h.bf16 %v5104_v16  ;;  %v5105_v56 = vunpack.i.l.bf16 %v5104_v16  ;;  %v5099_v21 = vpop.permute.xlu0 %5098  ;;  %v1861_v28 = vsel %vm1814_vm5, %v1811_v5, %v5095_v14  ;;  %v1862_v17 = vsel %vm1814_vm5, %v1812_v58, %v5096_v34  ;;  %v2305_v32 = vpop.f32.mrb[38].mxu0 }
 0x1f0   :  { %v7467_v51 = vmax.f32 %v2303_v52, 0.0  ;;  %v5101_v39 = vunpack.i.h.bf16 %v5099_v21  ;;  %v5100_v46 = vunpack.i.l.bf16 %v5099_v21  ;;  %v7470_v61 = vadd.f32 %v7462_v29, %v2305_v32  ;;  %v4071_v8 = vpop.f32.mrb[39].mxu0 }
 0x1f1   :  { %v2279_v8 = vadd.f32 %v7462_v29, %v7311_v47 }
 0x1f2   :  { %v1911_v9 = vsel %vm1864_vm6, %v1861_v28, %v5100_v46  ;;  %v1912_v0 = vsel %vm1864_vm6, %v1862_v17, %v5101_v39  ;;  %v2447_v57 = vmax.f32 %v7470_v61, 0.0  ;;  %v5114_v24 = vpop.permute.xlu1 %5113  ;;  %v2782_v6 = vpack.c.bf16 %v7467_v51, %v7415_v1 }
 0x1f3   :  { %v5116_v4 = vunpack.i.h.bf16 %v5114_v24  ;;  %v5115_v43 = vunpack.i.l.bf16 %v5114_v24  ;;  %v5109_v36 = vpop.permute.xlu0 %5108  ;;  %v1961_v33 = vsel %vm1914_vm7, %v1911_v9, %v5105_v56  ;;  %v1962_v26 = vsel %vm1914_vm7, %v1912_v0, %v5106_v62 }
 0x1f4   :  { %v5162_v20 = vpack.i.bf16 %v2447_v57, %v2445_v37  ;;  %v5111_v30 = vunpack.i.h.bf16 %v5109_v36  ;;  %v5110_v38 = vunpack.i.l.bf16 %v5109_v36  ;;  %3853 = vmatprep.mubr.msk.bf16.mxu1 %vm1814_vm5, %v2782_v6  ;;  %v2282_v0 = vadd.f32 %v7462_v29, %v7315_v59 }
 0x1f6   :  { %v2011_v23 = vsel %vm1964_vm8, %v1961_v33, %v5110_v38  ;;  %v2012_v25 = vsel %vm1964_vm8, %v1962_v26, %v5111_v30  ;;  %5163 = vrot.lane.b32.xlu0 %v5162_v20, %s5402_s22  ;;  %v606_v45 = vpop.permute.xlu1 %605  ;;  %v2441_v33 = vmax.f32 %v2282_v0, 0.0 }
 0x1f7   :  { %v410_v19 = vpop.permute.xlu0 %409  ;;  %v2061_v44 = vsel %vm2014_vm9, %v2011_v23, %v5115_v43  ;;  %v2062_v49 = vsel %vm2014_vm9, %v2012_v25, %v5116_v4  ;;  %v2440_v43 = vmax.f32 %v2279_v8, 0.0 }
 0x1f8   :  { %v1713_v37 = vsel %vm1664_vm2, %v5398_v55, %v410_v19  ;;  %v2087_v27 = vpack.c.bf16 %v2062_v49, %v2061_v44 }
 0x1f9   :  { %v1763_v48 = vsel %vm1714_vm3, %v1713_v37, %v606_v45 }
 0x1fa   :  { %4125 = vmatmul.mubr.msk.bf16.gmra.mrb[92].mxu0 %vm2116_vm10, %v2087_v27  ;;  %v998_v60 = vpop.permute.xlu1 %997 }
 0x1fb   :  { %v802_v13 = vpop.permute.xlu0 %801  ;;  %4128 = vmatprep.mubr.msk.bf16.mxu0 %vm5404_vm0, %v5399_v2 }
 0x1fc   :  { %v1813_v34 = vsel %vm1764_vm4, %v1763_v48, %v802_v13 }
 0x1fd   :  { %v2310_v14 = vpop.f32.mrb[40].mxu0  ;;  %v1863_v15 = vsel %vm1814_vm5, %v1813_v34, %v998_v60 }
 0x1fe   :  { %v7500_v31 = vadd.f32 %v7462_v29, %v2310_v14  ;;  %v4074_v54 = vpop.f32.mrb[41].mxu0  ;;  %v1312_v50 = vpop.permute.xlu1 %1311 }
 0x1ff   :  { %v1152_v40 = vpop.permute.xlu0 %1151  ;;  %v2313_v63 = vpop.f32.mrb[42].mxu0 }
 0x200   :  { %v2448_v5 = vmax.f32 %v7500_v31, 0.0  ;;  %v1913_v58 = vsel %vm1864_vm6, %v1863_v15, %v1152_v40  ;;  %v2314_v52 = vadd.f32 %v7462_v29, %v2313_v63  ;;  %v4075_v3 = vpop.f32.mrb[43].mxu0 }
 0x201   :  { %v1963_v16 = vsel %vm1914_vm7, %v1913_v58, %v1312_v50 }
 0x202   :  { %v5167_v62 = vpack.i.bf16 %v2448_v5, %v7467_v51  ;;  %v2449_v56 = vmax.f32 %v2314_v52, 0.0  ;;  %v1614_v28 = vpop.permute.xlu1 %1613 }
 0x203   :  { %v1466_v21 = vpop.permute.xlu0 %1465 }
 0x204   :  { %v2013_v17 = vsel %vm1964_vm8, %v1963_v16, %v1466_v21  ;;  %5168 = vrot.lane.b32.xlu1 %v5167_v62, %s5407_s25  ;;  %v5172_v39 = vpack.i.bf16 %v2449_v56, %v2439_v10 }
 0x205   :  { %v2063_v32 = vsel %vm2014_vm9, %v2013_v17, %v1614_v28  ;;  %v2231_v17 = vadd.f32 %v7462_v29, %v6987_v18 }
 0x206   :  { %v2088_v46 = vpack.c.bf16 %v2063_v32, %v2063_v32  ;;  %v5124_v32 = vpop.permute.xlu1 %5123 }
 0x207   :  { %v5119_v28 = vpop.permute.xlu0 %5118 }
 0x208   :  { %5173 = vrot.lane.b32.xlu1 %v5172_v39, %s5409_s18  ;;  %4129 = vmatmul.mubr.msk.bf16.gmra.mrb[96].mxu0 %vm2116_vm10, %v2088_v46  ;;  %v5121_v39 = vunpack.i.h.bf16 %v5119_v28  ;;  %v5120_v46 = vunpack.i.l.bf16 %v5119_v28 }
 0x20a   :  { %v2714_v61 = vsel %vm1814_vm5, %v2430_v11, %v5121_v39 }
 0x20d   :  { %v2318_v9 = vpop.f32.mrb[44].mxu0 }
 0x20e   :  { %v2319_v24 = vadd.f32 %v7462_v29, %v2318_v9  ;;  %v4078_v6 = vpop.f32.mrb[45].mxu0  ;;  %v2428_v9 = vmax.f32 %v2231_v17, 0.0 }
 0x20f   :  { %v2321_v4 = vpop.f32.mrb[46].mxu0  ;;  %v5125_v6 = vunpack.i.l.bf16 %v5124_v32 }
 0x210   :  { %v2450_v36 = vmax.f32 %v2319_v24, 0.0  ;;  %v2322_v53 = vadd.f32 %v7462_v29, %v2321_v4  ;;  %v4079_v10 = vpop.f32.mrb[47].mxu0  ;;  %v5126_v24 = vunpack.i.h.bf16 %v5124_v32 }
 0x212   :  { %v5177_v26 = vpack.i.bf16 %v2450_v36, %v2440_v43  ;;  %v2451_v20 = vmax.f32 %v2322_v53, 0.0 }
 0x214   :  { %v5182_v30 = vpack.i.bf16 %v2451_v20, %v2441_v33  ;;  %5178 = vrot.lane.b32.xlu0 %v5177_v26, %s5410_s23 }
 0x216   :  { %5183 = vrot.lane.b32.xlu1 %v5182_v30, %s5411_s24 }
 0x218   :  { %v5129_v8 = vpop.permute.xlu0 %5128 }
 0x219   :  { %v5131_v36 = vunpack.i.h.bf16 %v5129_v8  ;;  %v5130_v53 = vunpack.i.l.bf16 %v5129_v8 }
 0x21d   :  { %v2326_v47 = vpop.f32.mrb[48].mxu0 }
 0x21e   :  { %v4082_v38 = vpop.f32.mrb[49].mxu0  ;;  %v2327_v44 = vadd.f32 %v7462_v29, %v2326_v47  ;;  %v2723_v47 = vsel %vm2014_vm9, %v2714_v61, %v5126_v24 }
 0x21f   :  { %v2329_v59 = vpop.f32.mrb[50].mxu0  ;;  %v2733_v11 = vsel %vm2731_vm11, %v2723_v47, %v5131_v36 }
 0x220   :  { %v2330_v23 = vadd.f32 %v7462_v29, %v2329_v59  ;;  %v4083_v25 = vpop.f32.mrb[51].mxu0  ;;  %v2452_v48 = vmax.f32 %v2327_v44, 0.0 }
 0x222   :  { %v2453_v45 = vmax.f32 %v2330_v23, 0.0 }
 0x224   :  { %v5187_v19 = vpack.i.bf16 %v2453_v45, %v2451_v20 }
 0x226   :  { %5188 = vrot.lane.b32.xlu0 %v5187_v19, %s5409_s18  ;;  %v5134_v4 = vpop.permute.xlu1 %5133 }
 0x227   :  { %v5136_v26 = vunpack.i.h.bf16 %v5134_v4  ;;  %v5135_v20 = vunpack.i.l.bf16 %v5134_v4 }
 0x228   :  { %v5139_v30 = vpop.permute.xlu0 %5138 }
 0x229   :  { %v5141_v23 = vunpack.i.h.bf16 %v5139_v30  ;;  %v5140_v25 = vunpack.i.l.bf16 %v5139_v30  ;;  %v2743_v44 = vsel %vm2741_vm12, %v2733_v11, %v5136_v26 }
 0x22d   :  { %v2334_v49 = vpop.f32.mrb[52].mxu0 }
 0x22e   :  { %v2335_v55 = vadd.f32 %v7462_v29, %v2334_v49  ;;  %v4086_v37 = vpop.f32.mrb[53].mxu0 }
 0x22f   :  { %v2337_v27 = vpop.f32.mrb[54].mxu0 }
 0x230   :  { %v2454_v60 = vmax.f32 %v2335_v55, 0.0  ;;  %v2338_v13 = vadd.f32 %v7462_v29, %v2337_v27  ;;  %v4087_v34 = vpop.f32.mrb[55].mxu0 }
 0x232   :  { %v5192_v14 = vpack.i.bf16 %v2454_v60, %v2452_v48  ;;  %v2455_v15 = vmax.f32 %v2338_v13, 0.0  ;;  %v2753_v48 = vsel %vm2751_vm13, %v2743_v44, %v5141_v23 }
 0x234   :  { %v5197_v54 = vpack.i.bf16 %v2455_v15, %v2453_v45  ;;  %5193 = vrot.lane.b32.xlu1 %v5192_v14, %s5410_s23 }
 0x236   :  { %5198 = vrot.lane.b32.xlu0 %v5197_v54, %s5411_s24 }
 0x23d   :  { %v2342_v50 = vpop.f32.mrb[56].mxu0 }
 0x23e   :  { %v7532_v40 = vadd.f32 %v7462_v29, %v2342_v50  ;;  %v4090_v63 = vpop.f32.mrb[57].mxu0 }
 0x23f   :  { %v2345_v58 = vpop.f32.mrb[58].mxu0 }
 0x240   :  { %v2456_v52 = vmax.f32 %v7532_v40, 0.0  ;;  %v2346_v3 = vadd.f32 %v7462_v29, %v2345_v58  ;;  %v4091_v16 = vpop.f32.mrb[59].mxu0 }
 0x242   :  { %v5202_v62 = vpack.i.bf16 %v2456_v52, %v7467_v51  ;;  %v2457_v56 = vmax.f32 %v2346_v3, 0.0 }
 0x244   :  { %v5207_v21 = vpack.i.bf16 %v2457_v56, %v2447_v57  ;;  %5203 = vrot.lane.b32.xlu0 %v5202_v62, %s5413_s3  ;;  %v2713_v57 = vsel %vm1814_vm5, %v2428_v9, %v5120_v46 }
 0x245   :  { %v2722_v38 = vsel %vm2014_vm9, %v2713_v57, %v5125_v6 }
 0x246   :  { %5208 = vrot.lane.b32.xlu1 %v5207_v21, %s5414_s27  ;;  %v2732_v59 = vsel %vm2731_vm11, %v2722_v38, %v5130_v53 }
 0x247   :  { %v2742_v49 = vsel %vm2741_vm12, %v2732_v59, %v5135_v20 }
 0x248   :  { %v2752_v60 = vsel %vm2751_vm13, %v2742_v49, %v5140_v25 }
 0x24d   :  { %v2350_v0 = vpop.f32.mrb[60].mxu0 }
 0x24e   :  { %v4094_v43 = vpop.f32.mrb[61].mxu0  ;;  %v2351_v45 = vadd.f32 %v7462_v29, %v2350_v0 }
 0x24f   :  { %v2353_v10 = vpop.f32.mrb[62].mxu0 }
 0x250   :  { %v2354_v18 = vadd.f32 %v7462_v29, %v2353_v10  ;;  %v4095_v33 = vpop.f32.mrb[63].mxu0  ;;  %v7560_v13 = vmax.f32 %v2351_v45, 0.0 }
 0x252   :  { %v2459_v41 = vmax.f32 %v2354_v18, 0.0  ;;  %v2784_v62 = vpack.c.bf16 %v7560_v13, %v2448_v5 }
 0x254   :  { %v5212_v19 = vpack.i.bf16 %v2459_v41, %v2457_v56 }
 0x256   :  { %v5144_v55 = vpop.permute.xlu1 %5143  ;;  %5213 = vrot.lane.b32.xlu1 %v5212_v19, %s5402_s22 }
 0x257   :  { %v5146_v37 = vunpack.i.h.bf16 %v5144_v55  ;;  %v5145_v27 = vunpack.i.l.bf16 %v5144_v55 }
 0x258   :  { %v5149_v34 = vpop.permute.xlu0 %5148 }
 0x259   :  { %v2763_v14 = vsel %vm2761_vm14, %v2753_v48, %v5146_v37  ;;  %v2762_v15 = vsel %vm2761_vm14, %v2752_v60, %v5145_v27  ;;  %v5151_v54 = vunpack.i.h.bf16 %v5149_v34  ;;  %v5150_v50 = vunpack.i.l.bf16 %v5149_v34 }
 0x25a   :  { %v5154_v37 = vpop.permute.xlu1 %5153 }
 0x25b   :  { %v2772_v63 = vsel %vm2771_vm15, %v2762_v15, %v5150_v50  ;;  %v2773_v58 = vsel %vm2771_vm15, %v2763_v14, %v5151_v54  ;;  %v5156_v14 = vunpack.i.h.bf16 %v5154_v37  ;;  %v5155_v15 = vunpack.i.l.bf16 %v5154_v37 }
 0x25c   :  { %v2781_v3 = vpack.c.bf16 %v2773_v58, %v2772_v63  ;;  %v5159_v27 = vpop.permute.xlu0 %5158 }
 0x25d   :  { %v2358_v16 = vpop.f32.mrb[64].mxu0 }
 0x25e   :  { %v2359_v56 = vadd.f32 %v7462_v29, %v2358_v16  ;;  %v4098_v21 = vpop.f32.mrb[65].mxu0  ;;  %2918 = vmatmul.mubr.bf16.vlgmr.msra.gmra.mrb[0].mxu1 %v2781_v3  ;;  %v5161_v3 = vunpack.i.h.bf16 %v5159_v27  ;;  %v5160_v16 = vunpack.i.l.bf16 %v5159_v27 }
 0x25f   :  { %v2361_v28 = vpop.f32.mrb[66].mxu0  ;;  %3854 = vmatprep.mubr.msk.bf16.mxu1 %vm1814_vm5, %v2784_v62  ;;  %v2715_v21 = vsel %vm1814_vm5, %v2432_v35, %v5155_v15 }
 0x260   :  { %v7571_v17 = vmax.f32 %v2359_v56, 0.0  ;;  %v7574_v32 = vadd.f32 %v7462_v29, %v2361_v28  ;;  %v4099_v39 = vpop.f32.mrb[67].mxu0  ;;  %v2716_v56 = vsel %vm1814_vm5, %v2442_v7, %v5156_v14 }
 0x262   :  { %v2461_v46 = vmax.f32 %v7574_v32, 0.0  ;;  %v5222_v31 = vpack.i.bf16 %v7571_v17, %v7560_v13 }
 0x264   :  { %5223 = vrot.lane.b32.xlu0 %v5222_v31, %s5407_s25  ;;  %5218 = vrot.lane.b32.xlu1 %v5222_v31, %s5413_s3  ;;  %v5227_v5 = vpack.i.bf16 %v2461_v46, %v2459_v41 }
 0x268   :  { %5228 = vrot.lane.b32.xlu0 %v5227_v5, %s5414_s27  ;;  %v7601_v48 = vpop.permute.xlu0 %5163 }
 0x269   :  { %v5166_v32 = vunpack.i.h.bf16 %v7601_v48 }
 0x26d   :  { %v2366_v8 = vpop.f32.mrb[68].mxu0 }
 0x26e   :  { %v4102_v9 = vpop.f32.mrb[69].mxu0  ;;  %v2367_v22 = vadd.f32 %v7462_v29, %v2366_v8 }
 0x26f   :  { %v2369_v0 = vpop.f32.mrb[70].mxu0 }
 0x270   :  { %v4103_v24 = vpop.f32.mrb[71].mxu0  ;;  %v2370_v4 = vadd.f32 %v7462_v29, %v2369_v0 }
 0x272   :  { %v2463_v53 = vmax.f32 %v2370_v4, 0.0  ;;  %v2724_v4 = vsel %vm2014_vm9, %v2715_v21, %v5160_v16 }
 0x276   :  { %v7603_v60 = vpop.permute.xlu1 %5168 }
 0x27a   :  { %v5174_v54 = vpop.permute.xlu1 %5173 }
 0x27b   :  { %v5176_v28 = vunpack.i.h.bf16 %v5174_v54  ;;  %v5175_v39 = vunpack.i.l.bf16 %v5174_v54 }
 0x27d   :  { %v2374_v6 = vpop.f32.mrb[72].mxu0  ;;  %v2734_v12 = vsel %vm2731_vm11, %v2724_v4, %v5175_v39  ;;  %v5170_v4 = vunpack.i.l.bf16 %v7603_v60 }
 0x27e   :  { %v4106_v43 = vpop.f32.mrb[73].mxu0  ;;  %v2375_v33 = vadd.f32 %v7462_v29, %v2374_v6  ;;  %v2725_v6 = vsel %vm2014_vm9, %v2716_v56, %v5161_v3 }
 0x27f   :  { %v2377_v61 = vpop.f32.mrb[74].mxu0  ;;  %v2735_v7 = vsel %vm2731_vm11, %v2725_v6, %v5176_v28 }
 0x280   :  { %v2378_v57 = vadd.f32 %v7462_v29, %v2377_v61  ;;  %v4107_v36 = vpop.f32.mrb[75].mxu0  ;;  %v2464_v38 = vmax.f32 %v2375_v33, 0.0  ;;  %v2462_v33 = vmax.f32 %v2367_v22, 0.0 }
 0x282   :  { %v2465_v10 = vmax.f32 %v2378_v57, 0.0 }
 0x284   :  { %v5232_v18 = vpack.i.bf16 %v2465_v10, %v2463_v53 }
 0x286   :  { %5233 = vrot.lane.b32.xlu1 %v5232_v18, %s5409_s18  ;;  %v5179_v34 = vpop.permute.xlu0 %5178 }
 0x287   :  { %v5181_v9 = vunpack.i.h.bf16 %v5179_v34  ;;  %v5180_v0 = vunpack.i.l.bf16 %v5179_v34 }
 0x288   :  { %v5184_v31 = vpop.permute.xlu1 %5183 }
 0x289   :  { %v5186_v43 = vunpack.i.h.bf16 %v5184_v31  ;;  %v5185_v35 = vunpack.i.l.bf16 %v5184_v31  ;;  %v2745_v57 = vsel %vm2741_vm12, %v2735_v7, %v5181_v9  ;;  %v2744_v36 = vsel %vm2741_vm12, %v2734_v12, %v5180_v0 }
 0x28b   :  { %v2754_v8 = vsel %vm2751_vm13, %v2744_v36, %v5185_v35 }
 0x28d   :  { %v2382_v26 = vpop.f32.mrb[76].mxu0 }
 0x28e   :  { %v2383_v20 = vadd.f32 %v7462_v29, %v2382_v26  ;;  %v4110_v30 = vpop.f32.mrb[77].mxu0  ;;  %v2755_v26 = vsel %vm2751_vm13, %v2745_v57, %v5186_v43 }
 0x28f   :  { %v2385_v47 = vpop.f32.mrb[78].mxu0 }
 0x290   :  { %v2466_v41 = vmax.f32 %v2383_v20, 0.0  ;;  %v7590_v11 = vadd.f32 %v7462_v29, %v2385_v47  ;;  %v4111_v59 = vpop.f32.mrb[79].mxu0 }
 0x292   :  { %v5237_v23 = vpack.i.bf16 %v2466_v41, %v2464_v38  ;;  %v2467_v25 = vmax.f32 %v7590_v11, 0.0 }
 0x294   :  { %v5242_v45 = vpack.i.bf16 %v2467_v25, %v2465_v10  ;;  %5238 = vrot.lane.b32.xlu0 %v5237_v23, %s5410_s23 }
 0x296   :  { %5243 = vrot.lane.b32.xlu1 %v5242_v45, %s5411_s24 }
 0x298   :  { %v7605_v63 = vpop.permute.xlu0 %5188 }
 0x299   :  { %v5191_v7 = vunpack.i.h.bf16 %v7605_v63  ;;  %v5190_v12 = vunpack.i.l.bf16 %v7605_v63 }
 0x29d   :  { %v7597_v19 = vpop.f32.mrb[80].mxu0 }
 0x29e   :  { %v4114_v44 = vpop.f32.mrb[81].mxu0 }
 0x29f   :  { %v7599_v49 = vpop.f32.mrb[82].mxu0 }
 0x2a0   :  { %v4115_v55 = vpop.f32.mrb[83].mxu0  ;;  %v2394_v39 = vadd.f32 %v7462_v29, %v7599_v49  ;;  %v5171_v49 = vunpack.i.h.bf16 %v7603_v60  ;;  %v2718_v60 = vsel %vm1814_vm5, %v7467_v51, %v5166_v32 }
 0x2a1   :  { %v2786_v55 = vpack.c.bf16 %v2462_v33, %v7571_v17 }
 0x2a2   :  { %v2469_v9 = vmax.f32 %v2394_v39, 0.0 }
 0x2a6   :  { %v7620_v61 = vpop.permute.xlu1 %5193 }
 0x2a7   :  { %v5196_v35 = vunpack.i.h.bf16 %v7620_v61 }
 0x2a8   :  { %v7613_v24 = vpop.permute.xlu0 %5198 }
 0x2ad   :  { %v2398_v50 = vpop.f32.mrb[84].mxu0 }
 0x2ae   :  { %v4118_v58 = vpop.f32.mrb[85].mxu0  ;;  %v2399_v45 = vadd.f32 %v7462_v29, %v2398_v50 }
 0x2af   :  { %v2401_v62 = vpop.f32.mrb[86].mxu0 }
 0x2b0   :  { %v4119_v5 = vpop.f32.mrb[87].mxu0  ;;  %v2402_v27 = vadd.f32 %v7462_v29, %v2401_v62  ;;  %v2470_v54 = vmax.f32 %v2399_v45, 0.0  ;;  %v2391_v62 = vadd.f32 %v7462_v29, %v7597_v19 }
 0x2b2   :  { %v2471_v56 = vmax.f32 %v2402_v27, 0.0  ;;  %v2468_v31 = vmax.f32 %v2391_v62, 0.0 }
 0x2b6   :  { %v5204_v53 = vpop.permute.xlu0 %5203 }
 0x2b7   :  { %v5206_v10 = vunpack.i.h.bf16 %v5204_v53  ;;  %v5205_v18 = vunpack.i.l.bf16 %v5204_v53 }
 0x2b8   :  { %v5209_v20 = vpop.permute.xlu1 %5208 }
 0x2b9   :  { %v2765_v30 = vsel %vm2761_vm14, %v2755_v26, %v5206_v10  ;;  %v2764_v47 = vsel %vm2761_vm14, %v2754_v8, %v5205_v18  ;;  %v5211_v38 = vunpack.i.h.bf16 %v5209_v20  ;;  %v5210_v41 = vunpack.i.l.bf16 %v5209_v20 }
 0x2ba   :  { %v2727_v10 = vsel %vm2014_vm9, %v2718_v60, %v5171_v49 }
 0x2bb   :  { %v2774_v59 = vsel %vm2771_vm15, %v2764_v47, %v5210_v41  ;;  %v2775_v23 = vsel %vm2771_vm15, %v2765_v30, %v5211_v38  ;;  %v5200_v47 = vunpack.i.l.bf16 %v7613_v24 }
 0x2bc   :  { %v2783_v44 = vpack.c.bf16 %v2775_v23, %v2774_v59 }
 0x2bd   :  { %v2406_v37 = vpop.f32.mrb[88].mxu0 }
 0x2be   :  { %v2407_v34 = vadd.f32 %v7462_v29, %v2406_v37  ;;  %v4122_v14 = vpop.f32.mrb[89].mxu0  ;;  %2926 = vmatmul.mubr.bf16.gmra.mrb[4].mxu1 %v2783_v44 }
 0x2bf   :  { %v2409_v15 = vpop.f32.mrb[90].mxu0  ;;  %3855 = vmatprep.mubr.msk.bf16.mxu1 %vm1814_vm5, %v2786_v55 }
 0x2c0   :  { %v2472_v58 = vmax.f32 %v2407_v34, 0.0  ;;  %v2410_v3 = vadd.f32 %v7462_v29, %v2409_v15  ;;  %v4123_v16 = vpop.f32.mrb[91].mxu0 }
 0x2c2   :  { %v5247_v50 = vpack.i.bf16 %v2472_v58, %v2470_v54  ;;  %v2473_v21 = vmax.f32 %v2410_v3, 0.0 }
 0x2c4   :  { %v5252_v28 = vpack.i.bf16 %v2473_v21, %v2471_v56  ;;  %5248 = vrot.lane.b32.xlu0 %v5247_v50, %s5413_s3 }
 0x2c6   :  { %5253 = vrot.lane.b32.xlu1 %v5252_v28, %s5414_s27 }
 0x2c8   :  { %2502 = vrot.lane.b32.xlu0 %v2461_v46, %s5402_s22  ;;  %v5165_v46 = vunpack.i.l.bf16 %v7601_v48  ;;  %v5214_v43 = vpop.permute.xlu1 %5213  ;;  %v5195_v48 = vunpack.i.l.bf16 %v7620_v61  ;;  %v2737_v61 = vsel %vm2731_vm11, %v2727_v10, %v5191_v7 }
 0x2c9   :  { %v5216_v63 = vunpack.i.h.bf16 %v5214_v43  ;;  %v2747_v8 = vsel %vm2741_vm12, %v2737_v61, %v5196_v35 }
 0x2ca   :  { %2538 = vrot.lane.b32.xlu1 %v2462_v33, %s5407_s25  ;;  %v2717_v53 = vsel %vm1814_vm5, %v7415_v1, %v5165_v46  ;;  %v5215_v33 = vunpack.i.l.bf16 %v5214_v43  ;;  %v5201_v1 = vunpack.i.h.bf16 %v7613_v24 }
 0x2cb   :  { %v2726_v18 = vsel %vm2014_vm9, %v2717_v53, %v5170_v4  ;;  %v2720_v59 = vsel %vm1814_vm5, %v7560_v13, %v5216_v63 }
 0x2cc   :  { %2574 = vrot.lane.b32.xlu0 %v2467_v25, %s5409_s18  ;;  %v2736_v26 = vsel %vm2731_vm11, %v2726_v18, %v5190_v12  ;;  %v2719_v23 = vsel %vm1814_vm5, %v2456_v52, %v5215_v33  ;;  %v2757_v34 = vsel %vm2751_vm13, %v2747_v8, %v5201_v1 }
 0x2cd   :  { %v2414_v5 = vpop.f32.mrb[92].mxu0  ;;  %v2746_v20 = vsel %vm2741_vm12, %v2736_v26, %v5195_v48 }
 0x2ce   :  { %v2415_v0 = vadd.f32 %v7462_v29, %v2414_v5  ;;  %2610 = vrot.lane.b32.xlu1 %v2468_v31, %s5410_s23  ;;  %v4126_v19 = vpop.f32.mrb[93].mxu0  ;;  %v2756_v24 = vsel %vm2751_vm13, %v2746_v20, %v5200_v47 }
 0x2cf   :  { %v2417_v6 = vpop.f32.mrb[94].mxu0 }
 0x2d0   :  { %v2474_v22 = vmax.f32 %v2415_v0, 0.0  ;;  %v2418_v11 = vadd.f32 %v7462_v29, %v2417_v6  ;;  %2640 = vrot.lane.b32.xlu0 %v2469_v9, %s5411_s24  ;;  %v4127_v25 = vpop.f32.mrb[95].mxu0 }
 0x2d2   :  { %v2788_v57 = vpack.c.bf16 %v2474_v22, %v2472_v58  ;;  %v2475_v36 = vmax.f32 %v2418_v11, 0.0  ;;  %2672 = vrot.lane.b32.xlu1 %v2474_v22, %s5413_s3 }
 0x2d4   :  { %2702 = vrot.lane.b32.xlu0 %v2475_v36, %s5414_s27 }
 0x2d6   :  { %v5224_v51 = vpop.permute.xlu0 %5223  ;;  %v5219_v30 = vpop.permute.xlu1 %5218 }
 0x2d7   :  { %v5226_v38 = vunpack.i.h.bf16 %v5224_v51  ;;  %v5225_v41 = vunpack.i.l.bf16 %v5224_v51  ;;  %v5221_v45 = vunpack.i.h.bf16 %v5219_v30  ;;  %v5220_v44 = vunpack.i.l.bf16 %v5219_v30 }
 0x2d9   :  { %v2729_v55 = vsel %vm2014_vm9, %v2720_v59, %v5226_v38  ;;  %v2728_v37 = vsel %vm2014_vm9, %v2719_v23, %v5225_v41  ;;  %v2767_v13 = vsel %vm2761_vm14, %v2757_v34, %v5221_v45  ;;  %v2766_v40 = vsel %vm2761_vm14, %v2756_v24, %v5220_v44 }
 0x2da   :  { %v5229_v27 = vpop.permute.xlu0 %5228 }
 0x2db   :  { %v5231_v14 = vunpack.i.h.bf16 %v5229_v27  ;;  %v5230_v15 = vunpack.i.l.bf16 %v5229_v27  ;;  %v2422_v54 = vpop.f32.mrb[96].mxu0 }
 0x2dc   :  { %v4130_v58 = vpop.f32.mrb[97].mxu0  ;;  %v2423_v46 = vadd.f32 %v7462_v29, %v2422_v54  ;;  %v5285_v54 = vld [vmem:[%s7962_s5 + $0x40] sm:$0xff]  }
 0x2dd   :  { %v2776_v52 = vsel %vm2771_vm15, %v2766_v40, %v5230_v15  ;;  %v2777_v3 = vsel %vm2771_vm15, %v2767_v13, %v5231_v14  ;;  %v2425_v16 = vpop.f32.mrb[98].mxu0  ;;  %v7714_v15 = vld [vmem:[%s7961_s4] ss:$0 sm:$0xff]  ;;  %3957 = vmatprep.subr.bf16.mxu1 %v5285_v54 }
 0x2de   :  { %v2785_v56 = vpack.c.bf16 %v2777_v3, %v2776_v52  ;;  %v4131_v50 = vpop.f32.mrb[99].mxu0  ;;  %v2476_v48 = vmax.f32 %v2423_v46, 0.0  ;;  %v5286_v40 = vld [vmem:[%s7962_s5] sm:$0xff]   ;;  %v5287_v3 = vld [vmem:[%s7962_s5 + $0x48] sm:$0xff]  }
 0x2df   :  { %3958 = vmatpush3.bf16.msra.mxu1 %v5286_v40  ;;  %v5294_v46 = vld [vmem:[%s7962_s5 + $0x20] sm:$0xff]  }
 0x2e0   :  { %2934 = vmatmul.mubr.bf16.gmra.mrb[8].mxu1 %v2785_v56  ;;  %v2790_v8 = vpack.c.bf16 %v2476_v48, %v2476_v48  ;;  %v5288_v56 = vld [vmem:[%s7962_s5 + $0x8] sm:$0xff]   ;;  %3959 = vmatprep.subr.bf16.mxu1 %v5287_v3 }
 0x2e1   :  { %3856 = vmatprep.mubr.msk.bf16.mxu1 %vm1814_vm5, %v2788_v57  ;;  %v5302_v3 = vld [vmem:[%s7962_s5 + $0x88] sm:$0xff]  }
 0x2e3   :  { %3960 = vmatpush3.bf16.msra.mxu1 %v5288_v56  ;;  %v5305_v56 = vld [vmem:[%s7963_s7 + $0x4] ss:$16 sps:$4 sm:$0xff]  }
 0x2f8   :  { %v5234_v21 = vpop.permute.xlu1 %5233 }
 0x2f9   :  { %v5236_v62 = vunpack.i.h.bf16 %v5234_v21  ;;  %v5235_v39 = vunpack.i.l.bf16 %v5234_v21 }
 0x2fb   :  { %v2739_v6 = vsel %vm2731_vm11, %v2729_v55, %v5236_v62  ;;  %v2738_v49 = vsel %vm2731_vm11, %v2728_v37, %v5235_v39 }
 0x306   :  { %v5239_v28 = vpop.permute.xlu0 %5238 }
 0x307   :  { %v5241_v31 = vunpack.i.h.bf16 %v5239_v28  ;;  %v5240_v5 = vunpack.i.l.bf16 %v5239_v28  ;;  %v5289_v28 = vld [vmem:[%s7962_s5 + $0x50] sm:$0xff]  }
 0x308   :  { %v5244_v9 = vpop.permute.xlu1 %5243  ;;  %3961 = vmatprep.subr.bf16.mxu1 %v5289_v28  ;;  %v5311_v28 = vld [vmem:[%s7963_s7 + $0x44] ss:$16 sps:$4 sm:$0xff]  }
 0x309   :  { %v5246_v4 = vunpack.i.h.bf16 %v5244_v9  ;;  %v5245_v22 = vunpack.i.l.bf16 %v5244_v9  ;;  %v2749_v25 = vsel %vm2741_vm12, %v2739_v6, %v5241_v31  ;;  %v2748_v7 = vsel %vm2741_vm12, %v2738_v49, %v5240_v5  ;;  %v5290_v31 = vld [vmem:[%s7962_s5 + $0x10] sm:$0xff]   ;;  %v5291_v9 = vld [vmem:[%s7962_s5 + $0x58] sm:$0xff]   ;;  %v5295_v6 = vld [vmem:[%s7962_s5 + $0x68] sm:$0xff]  }
 0x30a   :  { %3962 = vmatpush3.bf16.msra.mxu1 %v5290_v31  ;;  %v5296_v49 = vld [vmem:[%s7962_s5 + $0x28] sm:$0xff]   ;;  %v5312_v31 = vld [vmem:[%s7963_s7 + $0x60] ss:$16 sps:$4 sm:$0xff]  }
 0x30b   :  { %v2759_v57 = vsel %vm2751_vm13, %v2749_v25, %v5246_v4  ;;  %v2758_v36 = vsel %vm2751_vm13, %v2748_v7, %v5245_v22  ;;  %3963 = vmatprep.subr.bf16.mxu1 %v5291_v9  ;;  %v5297_v4 = vld [vmem:[%s7962_s5 + $0x70] sm:$0xff]   ;;  %v5300_v7 = vld [vmem:[%s7962_s5 + $0x38] sm:$0xff]  }
 0x30c   :  { %v5298_v22 = vld [vmem:[%s7962_s5 + $0x30] sm:$0xff]  }
 0x331   :  { %v7689_v0 = vpop.f32.mrb[0].mxu1 }
 0x332   :  { %v2921_v19 = vpop.f32.mrb[1].mxu1 }
 0x333   :  { %v2922_v32 = vpop.f32.mrb[2].mxu1  ;;  %v5292_v19 = vld [vmem:[%s7962_s5 + $0x18] sm:$0xff]  }
 0x334   :  { %v2924_v11 = vpop.f32.mrb[3].mxu1  ;;  %v2923_v58 = vadd.f32 %v7714_v15, %v2922_v32  ;;  %v5293_v32 = vld [vmem:[%s7962_s5 + $0x60] sm:$0xff]   ;;  %3964 = vmatpush3.bf16.msra.mxu1 %v5292_v19 }
 0x335   :  { %3965 = vmatprep.subr.bf16.mxu1 %v5293_v32  ;;  %v5299_v11 = vld [vmem:[%s7962_s5 + $0x78] sm:$0xff]  }
 0x336   :  { %v5249_v12 = vpop.permute.xlu0 %5248  ;;  %v2958_v62 = vmax.f32 %v2923_v58, 0.0  ;;  %v5301_v58 = vld [vmem:[%s7962_s5 + $0x80] sm:$0xff]  }
 0x337   :  { %v5251_v43 = vunpack.i.h.bf16 %v5249_v12  ;;  %v5250_v35 = vunpack.i.l.bf16 %v5249_v12 }
 0x338   :  { %v5254_v29 = vpop.permute.xlu1 %5253  ;;  %3966 = vmatpush3.bf16.msra.mxu1 %v5294_v46 }
 0x339   :  { %v2769_v60 = vsel %vm2761_vm14, %v2759_v57, %v5251_v43  ;;  %v2768_v53 = vsel %vm2761_vm14, %v2758_v36, %v5250_v35  ;;  %v5256_v10 = vunpack.i.h.bf16 %v5254_v29  ;;  %v5255_v18 = vunpack.i.l.bf16 %v5254_v29  ;;  %3967 = vmatprep.subr.bf16.mxu1 %v5295_v6 }
 0x33a   :  { %v2503_v63 = vpop.permute.xlu0 %2502 }
 0x33b   :  { %v2721_v33 = vsel %vm1814_vm5, %v7571_v17, %v2503_v63  ;;  %v2778_v61 = vsel %vm2771_vm15, %v2768_v53, %v5255_v18  ;;  %v2779_v26 = vsel %vm2771_vm15, %v2769_v60, %v5256_v10 }
 0x33c   :  { %v2539_v20 = vpop.permute.xlu1 %2538  ;;  %v2787_v51 = vpack.c.bf16 %v2779_v26, %v2778_v61  ;;  %3968 = vmatpush3.bf16.msra.mxu1 %v5296_v49  ;;  %v3858_v49 = vld [vmem:[%s7965_s6] ss:$0 sm:$0xff] }
 0x33d   :  { %v2730_v30 = vsel %vm2014_vm9, %v2721_v33, %v2539_v20  ;;  %3969 = vmatprep.subr.bf16.mxu1 %v5297_v4 }
 0x33e   :  { %v2575_v1 = vpop.permute.xlu0 %2574  ;;  %2942 = vmatmul.mubr.bf16.gmra.mrb[12].mxu1 %v2787_v51 }
 0x33f   :  { %v2740_v47 = vsel %vm2731_vm11, %v2730_v30, %v2575_v1  ;;  %3857 = vmatprep.mubr.msk.bf16.mxu1 %vm1814_vm5, %v2790_v8  ;;  %v2920_v30 = vadd.f32 %v7714_v15, %v7689_v0 }
 0x340   :  { %v2611_v38 = vpop.permute.xlu1 %2610  ;;  %3970 = vmatpush3.bf16.msra.mxu1 %v5298_v22 }
 0x341   :  { %v2750_v41 = vsel %vm2741_vm12, %v2740_v47, %v2611_v38  ;;  %3971 = vmatprep.subr.bf16.mxu1 %v5299_v11 }
 0x342   :  { %v2641_v59 = vpop.permute.xlu0 %2640 }
 0x343   :  { %v2760_v17 = vsel %vm2751_vm13, %v2750_v41, %v2641_v59  ;;  %v2957_v41 = vmax.f32 %v2920_v30, 0.0  ;;  %v5336_v30 = vld [vmem:[%s7964_s9 + $0x20] sm:$0xff]  }
 0x344   :  { %v2673_v23 = vpop.permute.xlu1 %2672  ;;  %3972 = vmatpush3.bf16.msra.mxu1 %v5300_v7 }
 0x345   :  { %v2770_v45 = vsel %vm2761_vm14, %v2760_v17, %v2673_v23  ;;  %4132 = vmatprep.subr.bf16.mxu1 %v5399_v2 }
 0x346   :  { %v2703_v44 = vpop.permute.xlu0 %2702 }
 0x347   :  { %v2780_v55 = vsel %vm2771_vm15, %v2770_v45, %v2703_v44 }
 0x348   :  { %v2789_v37 = vpack.c.bf16 %v2780_v55, %v2780_v55 }
 0x34a   :  { %2950 = vmatmul.mubr.bf16.gmra.mrb[16].mxu1 %v2789_v37 }
 0x391   :  { %v2927_v27 = vpop.f32.mrb[4].mxu1 }
 0x392   :  { %v2929_v34 = vpop.f32.mrb[5].mxu1  ;;  %v2928_v25 = vadd.f32 %v7714_v15, %v2927_v27 }
 0x393   :  { %v2930_v24 = vpop.f32.mrb[6].mxu1 }
 0x394   :  { %v2932_v14 = vpop.f32.mrb[7].mxu1  ;;  %v2931_v43 = vadd.f32 %v7714_v15, %v2930_v24  ;;  %v2959_v36 = vmax.f32 %v2928_v25, 0.0 }
 0x396   :  { %v2960_v10 = vmax.f32 %v2931_v43, 0.0 }
 0x3b3   :  { %v7719_v13 = vpop.f32.mrb[8].mxu1 }
 0x3b4   :  { %v2937_v52 = vpop.f32.mrb[9].mxu1  ;;  %v2936_v1 = vadd.f32 %v7714_v15, %v7719_v13 }
 0x3b5   :  { %v2938_v16 = vpop.f32.mrb[10].mxu1 }
 0x3b6   :  { %v2939_v50 = vadd.f32 %v7714_v15, %v2938_v16  ;;  %v2940_v21 = vpop.f32.mrb[11].mxu1  ;;  %v2961_v59 = vmax.f32 %v2936_v1, 0.0  ;;  %v5337_v1 = vld [vmem:[%s7964_s9 + $0x68] sm:$0xff]  }
 0x3b7   :  { %v5308_v21 = vld [vmem:[%s7963_s7 + $0x24] ss:$16 sps:$4 sm:$0xff]  }
 0x3b8   :  { %v2962_v39 = vmax.f32 %v2939_v50, 0.0 }
 0x3ba   :  { %v5257_v5 = vpack.i.bf16 %v2958_v62, %v2962_v39  ;;  %v5309_v62 = vld [vmem:[%s7963_s7 + $0x40] ss:$16 sps:$4 sm:$0xff]   ;;  %v5314_v39 = vld [vmem:[%s7963_s7 + $0x64] ss:$16 sps:$4 sm:$0xff]  }
 0x3bc   :  { %5258 = vrot.lane.b32.xlu1 %v5257_v5, %s5407_s25  ;;  %v5317_v5 = vld [vmem:[%s7963_s7 + $0xc] ss:$16 sps:$4 sm:$0xff]  }
 0x411   :  { %v2943_v12 = vpop.f32.mrb[12].mxu1 }
 0x412   :  { %v2944_v35 = vadd.f32 %v7714_v15, %v2943_v12  ;;  %v2945_v48 = vpop.f32.mrb[13].mxu1 }
 0x413   :  { %v2946_v57 = vpop.f32.mrb[14].mxu1 }
 0x414   :  { %v2963_v29 = vmax.f32 %v2944_v35, 0.0  ;;  %v2947_v60 = vadd.f32 %v7714_v15, %v2946_v57  ;;  %v2948_v53 = vpop.f32.mrb[15].mxu1  ;;  %v5315_v35 = vld [vmem:[%s7963_s7 + $0x8] ss:$16 sps:$4 sm:$0xff]   ;;  %v5320_v57 = vld [vmem:[%s7963_s7 + $0x2c] ss:$16 sps:$4 sm:$0xff]  }
 0x415   :  { %v5326_v53 = vld [vmem:[%s7963_s7 + $0x6c] ss:$16 sps:$4 sm:$0xff]  }
 0x416   :  { %v5262_v18 = vpack.i.bf16 %v2959_v36, %v2963_v29  ;;  %v2964_v63 = vmax.f32 %v2947_v60, 0.0  ;;  %v5318_v36 = vld [vmem:[%s7963_s7 + $0x28] ss:$16 sps:$4 sm:$0xff]   ;;  %v5323_v29 = vld [vmem:[%s7963_s7 + $0x4c] ss:$16 sps:$4 sm:$0xff]  }
 0x417   :  { %v5321_v60 = vld [vmem:[%s7963_s7 + $0x48] ss:$16 sps:$4 sm:$0xff]  }
 0x418   :  { %v5267_v33 = vpack.i.bf16 %v2960_v10, %v2964_v63  ;;  %5263 = vrot.lane.b32.xlu0 %v5262_v18, %s5410_s23  ;;  %v5327_v10 = vld [vmem:[%s7964_s9 + $0x40] sm:$0xff]   ;;  %v5329_v63 = vld [vmem:[%s7964_s9 + $0x48] sm:$0xff]  }
 0x419   :  { %v5328_v18 = vld [vmem:[%s7964_s9] sm:$0xff]  }
 0x41a   :  { %5268 = vrot.lane.b32.xlu1 %v5267_v33, %s5413_s3  ;;  %v5330_v33 = vld [vmem:[%s7964_s9 + $0x8] sm:$0xff]  }
 0x41d   :  { %v2951_v61 = vpop.f32.mrb[16].mxu1 }
 0x41e   :  { %v2953_v26 = vpop.f32.mrb[17].mxu1  ;;  %v2952_v52 = vadd.f32 %v7714_v15, %v2951_v61  ;;  %v5303_v15 = vld [vmem:[%s7963_s7] ss:$16 sps:$4 sm:$0xff]  }
 0x41f   :  { %v2954_v8 = vpop.f32.mrb[18].mxu1  ;;  %v5331_v61 = vld [vmem:[%s7964_s9 + $0x50] sm:$0xff]  }
 0x420   :  { %v2955_v20 = vpop.f32.mrb[19].mxu1  ;;  %v2965_v16 = vmax.f32 %v2952_v52, 0.0  ;;  %v5332_v26 = vld [vmem:[%s7964_s9 + $0x10] sm:$0xff]   ;;  %v5333_v8 = vld [vmem:[%s7964_s9 + $0x58] sm:$0xff]  }
 0x421   :  { %v5334_v20 = vld [vmem:[%s7964_s9 + $0x18] sm:$0xff]  }
 0x422   :  { %v2998_v50 = vpack.c.bf16 %v2965_v16, %v2965_v16 }
 0x42e   :  { %v5259_v51 = vpop.permute.xlu1 %5258 }
 0x42f   :  { %v5261_v47 = vunpack.i.h.bf16 %v5259_v51  ;;  %v5260_v38 = vunpack.i.l.bf16 %v5259_v51  ;;  %v5335_v51 = vld [vmem:[%s7964_s9 + $0x60] sm:$0xff]  }
 0x431   :  { %v2990_v44 = vsel %vm2014_vm9, %v2957_v41, %v5261_v47  ;;  %v2993_v55 = vsel %vm2014_vm9, %v2961_v59, %v5260_v38  ;;  %v5338_v47 = vld [vmem:[%s7964_s9 + $0x28] sm:$0xff]   ;;  %v5339_v38 = vld [vmem:[%s7964_s9 + $0x70] sm:$0xff]   ;;  %v5341_v59 = vld [vmem:[%s7964_s9 + $0x78] sm:$0xff]  }
 0x432   :  { %v5340_v41 = vld [vmem:[%s7964_s9 + $0x30] sm:$0xff]  }
 0x48a   :  { %v5264_v17 = vpop.permute.xlu0 %5263 }
 0x48b   :  { %v5266_v23 = vunpack.i.h.bf16 %v5264_v17  ;;  %v5265_v45 = vunpack.i.l.bf16 %v5264_v17  ;;  %v5342_v17 = vld [vmem:[%s7964_s9 + $0x38] sm:$0xff]  }
 0x48c   :  { %v5269_v37 = vpop.permute.xlu1 %5268 }
 0x48d   :  { %v2991_v27 = vsel %vm2741_vm12, %v2990_v44, %v5266_v23  ;;  %v2994_v34 = vsel %vm2741_vm12, %v2993_v55, %v5265_v45  ;;  %v5271_v0 = vunpack.i.h.bf16 %v5269_v37  ;;  %v5270_v24 = vunpack.i.l.bf16 %v5269_v37  ;;  %v5343_v23 = vld [vmem:[%s7964_s9 + $0xc0] sm:$0xff]  }
 0x48e   :  { %v3253_v45 = vlaneseq  ;;  %v3251_v37 = vld [vmem:[%s7966_s8] sm:$0xf] }
 0x48f   :  { %v2992_v14 = vsel %vm2761_vm14, %v2991_v27, %v5271_v0  ;;  %v2995_v54 = vsel %vm2761_vm14, %v2994_v34, %v5270_v24 }
 0x490   :  { %v2996_v13 = vpack.c.bf16 %v2992_v14, %v2992_v14  ;;  %v2997_v40 = vpack.c.bf16 %v2995_v54, %v2995_v54  ;;  %v3254_v44 = vshrl.u32 %v3253_v45, 7 }
 0x492   :  { %3185 = vmatprep.mubr.bf16.mxu1 %v2997_v40  ;;  %v3255_v55 = vsub.s32 0, %v3254_v44  ;;  %v3259_v27 = vsub.s32 1, %v3254_v44 }
 0x493   :  { %3186 = vmatmul.mubr.bf16.vlgmr.msra.gmra.mrb[20].mxu1 %v2996_v13 }
 0x494   :  { %4133 = vmatpush3.bf16.msra.mxu1 %v5301_v58  ;;  %4136 = vmatprep.mubr.msk.bf16.mxu1 %vm5404_vm0, %v5399_v2  ;;  %v3256_v34 = vrot.slane %v3251_v37, %v3255_v55  ;;  %v3260_v0 = vrot.slane %v3251_v37, %v3259_v27  ;;  %vm3793_vm0 = vcmask 48128  }
 0x495   :  { %4134 = vmatprep.subr.bf16.mxu1 %v5399_v2  ;;  %v5306_v2 = vld [vmem:[%s7963_s7 + $0x20] ss:$16 sps:$4 sm:$0xff]  }
 0x498   :  { %4135 = vmatpush3.bf16.msra.mxu1 %v5302_v3 }
 0x499   :  { %3356 = vmatprep.subr.bf16.mxu1 %v5305_v56  ;;  %v5344_v56 = vld [vmem:[%s7964_s9 + $0x80] sm:$0xff]  }
 0x49b   :  { %4137 = vmatmul.mubr.msk.bf16.vlgmr.msra.gmra.mrb[24].mxu1 %vm2014_vm9, %v2998_v50  ;;  %v5345_v50 = vld [vmem:[%s7964_s9 + $0xc8] sm:$0xff]  }
 0x49c   :  { %3357 = vmatpush1.bf16.msra.mxu1 %v5303_v15  ;;  %3388 = vmatprep.mubr.bf16.mxu1 %v5412_v42 }
 0x49d   :  { %3358 = vmatprep.subr.bf16.mxu1 %v5308_v21  ;;  %v3267_v21 = vsub.s32 3, %v3254_v44 }
 0x4a0   :  { %3359 = vmatpush1.bf16.msra.mxu1 %v5306_v2  ;;  %v5346_v2 = vld [vmem:[%s7964_s9 + $0x88] sm:$0xff]  }
 0x4a1   :  { %3360 = vmatprep.subr.bf16.mxu1 %v5311_v28  ;;  %v5347_v28 = vld [vmem:[%s7964_s9 + $0xd0] sm:$0xff]  }
 0x4a4   :  { %3361 = vmatpush1.bf16.msra.mxu1 %v5309_v62  ;;  %v3268_v62 = vrot.slane %v3251_v37, %v3267_v21 }
 0x4a5   :  { %3362 = vmatprep.subr.bf16.mxu1 %v5314_v39  ;;  %v5348_v39 = vld [vmem:[%s7964_s9 + $0x90] sm:$0xff]  }
 0x4a8   :  { %3363 = vmatpush1.bf16.msra.mxu1 %v5312_v31  ;;  %v5349_v31 = vld [vmem:[%s7964_s9 + $0xd8] sm:$0xff]  }
 0x4a9   :  { %3397 = vmatprep.subr.bf16.mxu1 %v5317_v5 }
 0x566   :  { %v3973_v9 = vpop.f32.mrb[20].mxu1 }
 0x567   :  { %v3974_v19 = vpop.f32.mrb[21].mxu1 }
 0x568   :  { %v3975_v32 = vadd.f32 %v3974_v19, %v3973_v9  ;;  %v3976_v46 = vpop.f32.mrb[22].mxu1 }
 0x569   :  { %v3977_v6 = vpop.f32.mrb[23].mxu1  ;;  %v5350_v46 = vld [vmem:[%s7964_s9 + $0x98] sm:$0xff]  }
 0x56a   :  { %v3188_v4 = vadd.f32 %v3975_v32, %v3858_v49  ;;  %v5351_v49 = vld [vmem:[%s7964_s9 + $0xe0] sm:$0xff]  }
 0x56e   :  { %v3227_v22 = vpop.f32.mrb[24].mxu1 }
 0x56f   :  { %v3228_v11 = vadd.f32 %v3227_v22, %v3188_v4  ;;  %v4138_v25 = vpop.f32.mrb[25].mxu1 }
 0x570   :  { %v3230_v7 = vpop.f32.mrb[26].mxu1  ;;  %v3263_v25 = vsub.s32 2, %v3254_v44 }
 0x571   :  { %v3233_v12 = vmax.f32 %v3228_v11, 0.0  ;;  %v4139_v43 = vpop.f32.mrb[27].mxu1  ;;  %v5352_v11 = vld [vmem:[%s7964_s9 + $0xa0] sm:$0xff]   ;;  %v5353_v7 = vld [vmem:[%s7964_s9 + $0xe8] sm:$0xff]  }
 0x572   :  { %v3264_v43 = vrot.slane %v3251_v37, %v3263_v25 }
 0x573   :  { %v3234_v48 = vpack.c.bf16 %v3233_v12, %v3233_v12  ;;  %v5354_v12 = vld [vmem:[%s7964_s9 + $0xa8] sm:$0xff]  }
 0x575   :  { %3894 = vmatmul.mubr.msk.bf16.vlgmr.msra.gmra.mrb[28].mxu1 %vm2741_vm12, %v3234_v48 }
 0x576   :  { %3398 = vmatpush1.bf16.msra.mxu1 %v5315_v35  ;;  %3429 = vmatprep.mubr.bf16.mxu1 %v5412_v42  ;;  %v5324_v42 = vld [vmem:[%s7963_s7 + $0x68] ss:$16 sps:$4 sm:$0xff]   ;;  %v5355_v35 = vld [vmem:[%s7964_s9 + $0xf0] sm:$0xff]  }
 0x577   :  { %3399 = vmatprep.subr.bf16.mxu1 %v5320_v57 }
 0x57a   :  { %3400 = vmatpush1.bf16.msra.mxu1 %v5318_v36  ;;  %v5357_v36 = vld [vmem:[%s7964_s9 + $0xf8] sm:$0xff]  }
 0x57b   :  { %3401 = vmatprep.subr.bf16.mxu1 %v5323_v29  ;;  %v5358_v29 = vld [vmem:[%s7964_s9 + $0xb8] sm:$0xff]  }
 0x57e   :  { %3402 = vmatpush1.bf16.msra.mxu1 %v5321_v60 }
 0x57f   :  { %3403 = vmatprep.subr.bf16.mxu1 %v5326_v53 }
 0x582   :  { %3404 = vmatpush1.bf16.msra.mxu1 %v5324_v42 }
 0x583   :  { %3982 = vmatprep.subr.bf16.mxu1 %v5327_v10 }
 0x585   :  { %3895 = vmatmul.mubr.msk.bf16.vlgmr.msra.gmra.mrb[32].mxu1 %vm2741_vm12, %v3234_v48  ;;  %v5356_v48 = vld [vmem:[%s7964_s9 + $0xb0] sm:$0xff]   ;;  %s5415_s9 = smov 127  }
 0x586   :  { %3983 = vmatpush3.bf16.msra.mxu1 %v5328_v18 }
 0x587   :  { %3984 = vmatprep.subr.bf16.mxu1 %v5329_v63 }
 0x58a   :  { %3985 = vmatpush3.bf16.msra.mxu1 %v5330_v33 }
 0x58b   :  { %3986 = vmatprep.subr.bf16.mxu1 %v5331_v61  ;;  %v3896_v61 = vld [vmem:[%s7967_s10] ss:$0 sm:$0xff] }
 0x58e   :  { %3987 = vmatpush3.bf16.msra.mxu1 %v5332_v26 }
 0x58f   :  { %3988 = vmatprep.subr.bf16.mxu1 %v5333_v8 }
 0x592   :  { %3989 = vmatpush3.bf16.msra.mxu1 %v5334_v20 }
 0x593   :  { %3990 = vmatprep.subr.bf16.mxu1 %v5335_v51 }
 0x596   :  { %3991 = vmatpush3.bf16.msra.mxu1 %v5336_v30 }
 0x597   :  { %3992 = vmatprep.subr.bf16.mxu1 %v5337_v1 }
 0x59a   :  { %3993 = vmatpush3.bf16.msra.mxu1 %v5338_v47 }
 0x59b   :  { %3994 = vmatprep.subr.bf16.mxu1 %v5339_v38 }
 0x59e   :  { %3995 = vmatpush3.bf16.msra.mxu1 %v5340_v41 }
 0x59f   :  { %3996 = vmatprep.subr.bf16.mxu1 %v5341_v59 }
 0x5a2   :  { %3997 = vmatpush3.bf16.msra.mxu1 %v5342_v17 }
 0x5a3   :  { %4004 = vmatprep.subr.bf16.mxu1 %v5343_v23 }
 0x648   :  { %v3390_v24 = vpop.f32.mrb[28].mxu1 }
 0x649   :  { %v3391_v14 = vadd.f32 %v3390_v24, %v3256_v34  ;;  %v3392_v54 = vpop.f32.mrb[29].mxu1 }
 0x64a   :  { %v3393_v13 = vadd.f32 %v3392_v54, %v3260_v0  ;;  %v3394_v40 = vpop.f32.mrb[30].mxu1 }
 0x64b   :  { %v3438_v58 = vmax.f32 %v3391_v14, 0.0  ;;  %v3395_v52 = vpop.f32.mrb[31].mxu1 }
 0x64c   :  { %v3439_v3 = vmax.f32 %v3393_v13, 0.0 }
 0x64d   :  { %v3442_v15 = vpack.c.bf16 %v3438_v58, %v3438_v58 }
 0x64e   :  { %v3443_v16 = vpack.c.bf16 %v3439_v3, %v3439_v3 }
 0x650   :  { %3741 = vmatprep.mubr.bf16.mxu1 %v3443_v16 }
 0x651   :  { %3742 = vmatmul.mubr.bf16.vlgmr.msra.gmra.mrb[36].mxu1 %v3442_v15 }
 0x652   :  { %4005 = vmatpush3.bf16.msra.mxu1 %v5344_v56 }
 0x653   :  { %4006 = vmatprep.subr.bf16.mxu1 %v5345_v50 }
 0x656   :  { %4007 = vmatpush3.bf16.msra.mxu1 %v5346_v2 }
 0x657   :  { %4008 = vmatprep.subr.bf16.mxu1 %v5347_v28 }
 0x658   :  { %v3431_v5 = vpop.f32.mrb[32].mxu1 }
 0x659   :  { %v3433_v9 = vpop.f32.mrb[33].mxu1  ;;  %v3432_v57 = vadd.f32 %v3431_v5, %v3264_v43 }
 0x65a   :  { %v3434_v19 = vadd.f32 %v3433_v9, %v3268_v62  ;;  %v3435_v32 = vpop.f32.mrb[34].mxu1  ;;  %4009 = vmatpush3.bf16.msra.mxu1 %v5348_v39 }
 0x65b   :  { %v3436_v6 = vpop.f32.mrb[35].mxu1  ;;  %4010 = vmatprep.subr.bf16.mxu1 %v5349_v31  ;;  %v3440_v60 = vmax.f32 %v3432_v57, 0.0 }
 0x65c   :  { %v3441_v4 = vmax.f32 %v3434_v19, 0.0 }
 0x65d   :  { %v3444_v53 = vpack.c.bf16 %v3440_v60, %v3440_v60 }
 0x65e   :  { %v3445_v22 = vpack.c.bf16 %v3441_v4, %v3441_v4  ;;  %4011 = vmatpush3.bf16.msra.mxu1 %v5350_v46 }
 0x65f   :  { %4012 = vmatprep.subr.bf16.mxu1 %v5351_v49 }
 0x660   :  { %3781 = vmatprep.mubr.bf16.mxu1 %v3445_v22 }
 0x662   :  { %4013 = vmatpush3.bf16.msra.mxu1 %v5352_v11 }
 0x663   :  { %4014 = vmatprep.subr.bf16.mxu1 %v5353_v7 }
 0x666   :  { %4015 = vmatpush3.bf16.msra.mxu1 %v5354_v12 }
 0x667   :  { %4016 = vmatprep.subr.bf16.mxu1 %v5355_v35 }
 0x66a   :  { %4017 = vmatpush3.bf16.msra.mxu1 %v5356_v48 }
 0x66b   :  { %4018 = vmatprep.subr.bf16.mxu1 %v5357_v36 }
 0x66e   :  { %4019 = vmatpush3.bf16.msra.mxu1 %v5358_v29 }
 0x671   :  { %3782 = vmatmul.mubr.bf16.vlgmr.msra.gmra.mrb[40].mxu1 %v3444_v53 }
 0x724   :  { %v3998_v42 = vpop.f32.mrb[36].mxu1 }
 0x725   :  { %v3999_v10 = vpop.f32.mrb[37].mxu1 }
 0x726   :  { %v4000_v18 = vadd.f32 %v3999_v10, %v3998_v42  ;;  %v4001_v63 = vpop.f32.mrb[38].mxu1 }
 0x727   :  { %v4002_v33 = vpop.f32.mrb[39].mxu1 }
 0x728   :  { %v3744_v20 = vadd.f32 %v4000_v18, %v3896_v61 }
 0x744   :  { %v4020_v26 = vpop.f32.mrb[40].mxu1 }
 0x745   :  { %v4021_v8 = vpop.f32.mrb[41].mxu1 }
 0x746   :  { %v4022_v51 = vadd.f32 %v4021_v8, %v4020_v26  ;;  %v4023_v30 = vpop.f32.mrb[42].mxu1 }
 0x747   :  { %v4024_v1 = vpop.f32.mrb[43].mxu1 }
 0x748   :  { %v3784_v47 = vadd.f32 %v4022_v51, %v3744_v20 }
 0x74a   :  { %3790 = vrot.lane.b32.xlu0 %v3784_v47, %s5415_s9 }
 0x7bc   :  { %v3791_v38 = vpop.permute.xlu0 %3790 }
 0x7bd   :  { %v3794_v41 = vsel %vm3793_vm0, %v3791_v38, 0.0 }
 0x7be   :  { %3795 = vadd.xlane.f32.xlu1 %v3794_v41 }
 0x84b   :  { %v3796_v59 = vpop.xlane.xlu1 %3795 }
 0x84c   :  { %v3797_v17 = vmul.f32 0.16666667, %v3796_v59 }
 0x84e   :  { %v3798_v23 = vsub.f32 %v3784_v47, %v3797_v17 }
 0x850   :  { %3801 = vperm.xlu0 %5272, %v3798_v23  }
 0x8cf   :  { %v3802_v45 = vpop.permute.xlu0 %3801 }
 0x8d0   :  { %v3804_v44 = vadd.f32 %v3802_v45, %v3784_v47 }
 0x8d2   :  { %3806 = vrot.lane.b32.xlu0 %v3804_v44, %s5415_s9 }
 0x944   :  { %v3807_v55 = vpop.permute.xlu0 %3806 }
 0x945   :  { %3809 = vst.msk [vmem:[%s7968_s11] sm:$0xff] %vm3793_vm0, %v3807_v55 }

</bundles_post_ra>
